<compile_context>
chip_gen: v5e
topology: v5e:2x2
jax: 0.10.0
libtpu: 0.0.40
codegen_flags: <defaults>
</compile_context>

<pallas_src>
import functools

import jax
import jax.numpy as jnp
from jax.experimental import pallas as pl
from jax.experimental.pallas import tpu as pltpu

EPS = 1e-5


def _bn_fold(g, b, m, v):
    """BatchNorm1d (eval mode) -> elementwise y = x*s + t (per channel)."""
    s = g / jnp.sqrt(v + EPS)
    return s, b - m * s


# ---------------------------------------------------------------------------
# Fused kernel.
#
# grid = (B, N // tile_p): batch axis is "parallel" (megacore split on v7x),
# the point-tile axis is "arbitrary" (it carries the running max reduction
# and the head epilogue).
#
# Per point tile it runs the four folded 1x1 convs in channel-major layout,
# writes x_ori directly in the PyTorch (B, 512, N) layout (conv4 done in two
# 256-row chunks), and keeps the running max over points in a VMEM scratch.
# On the last point tile of each batch row it also runs fc1/bn1, fc2/bn2 and
# the merged regression heads.
# ---------------------------------------------------------------------------
def pointnet_kernel(x_ref,
                    b1_ref, d1_ref, b2_ref, d2_ref, b3_ref, d3_ref,
                    b4_ref, d4_ref,
                    bf1_ref, df1_ref, bf2_ref, df2_ref,
                    wh1_ref, bh1_ref, wh2_ref,
                    xori_ref, out_ref, feat_ref,
                    max_sc):
    t = pl.program_id(1)
    cdt = b2_ref.dtype  # MXU operand dtype (bf16 by default, f32 for checks)

    @pl.when(t == 0)
    def _():
        max_sc[...] = jnp.full(max_sc.shape, -jnp.inf, max_sc.dtype)

    # conv1 stays in f32: the pre_bn 1/sqrt(var) scale is folded into its
    # weight, and K=4 makes the f32 matmul essentially free.
    x = x_ref[0].astype(jnp.float32)                               # (Cin, P)
    h = jnp.maximum(
        jnp.dot(b1_ref[...], x, preferred_element_type=jnp.float32)
        + d1_ref[...], 0.0).astype(cdt)                            # (64,  P)
    h = jnp.maximum(
        jnp.dot(b2_ref[...], h, preferred_element_type=jnp.float32)
        + d2_ref[...], 0.0).astype(cdt)                            # (128, P)
    h = jnp.maximum(
        jnp.dot(b3_ref[...], h, preferred_element_type=jnp.float32)
        + d3_ref[...], 0.0).astype(cdt)                            # (256, P)

    # conv4 / bn4 (no ReLU): two 256-row chunks so only a (256, P) f32
    # intermediate is live at a time; store bf16, keep the max in f32.
    for ci in range(2):
        sl = slice(256 * ci, 256 * (ci + 1))
        x4c = jnp.dot(b4_ref[sl, :], h,
                      preferred_element_type=jnp.float32) + d4_ref[sl, :]
        xori_ref[0, sl, :] = x4c.astype(xori_ref.dtype)
        max_sc[sl, :] = jnp.maximum(max_sc[sl, :],
                                    jnp.max(x4c, axis=1, keepdims=True))

    # Head epilogue: once per batch row, after the max over all its points.
    @pl.when(t == pl.num_programs(1) - 1)
    def _():
        pooled = max_sc[...].astype(cdt)                           # (512, 1)
        hf = jnp.maximum(
            jnp.dot(bf1_ref[...], pooled, preferred_element_type=jnp.float32)
            + df1_ref[...], 0.0)                                   # (256, 1)
        feat = jnp.maximum(
            jnp.dot(bf2_ref[...], hf.astype(cdt),
                    preferred_element_type=jnp.float32)
            + df2_ref[...], 0.0)                                   # (C,   1)
        feat_ref[0] = feat
        hh = jnp.maximum(
            jnp.dot(wh1_ref[...], feat.astype(cdt),
                    preferred_element_type=jnp.float32)
            + bh1_ref[...], 0.0)                                   # (768, 1)
        out_ref[0] = jnp.dot(wh2_ref[...], hh.astype(cdt),
                             preferred_element_type=jnp.float32)   # (7, 1)


# ---------------------------------------------------------------------------
# Parameter init (deterministic, synthetic) and weight-folding glue.
# ---------------------------------------------------------------------------
def init_params(key, input_dim, channels):
    keys = iter(jax.random.split(key, 128))

    def nrm(shape, fan_in):
        return (2.0 / fan_in) ** 0.5 * jax.random.normal(next(keys), shape, jnp.float32)

    def bn(c):
        return dict(
            g=1.0 + 0.1 * jax.random.normal(next(keys), (c,), jnp.float32),
            b=0.1 * jax.random.normal(next(keys), (c,), jnp.float32),
            m=0.1 * jax.random.normal(next(keys), (c,), jnp.float32),
            v=jax.random.uniform(next(keys), (c,), jnp.float32, 0.5, 1.5),
        )

    p = {}
    p['pre_bn'] = bn(input_dim)
    feat_dims = [(input_dim, 64), (64, 128), (128, 256), (256, 512)]
    for i, (cin, cout) in enumerate(feat_dims, 1):
        p[f'conv{i}_w'] = nrm((cout, cin), cin)                 # Conv1d k=1 weight (out, in)
        p[f'conv{i}_b'] = 0.1 * jax.random.normal(next(keys), (cout,), jnp.float32)
        p[f'featbn{i}'] = bn(cout)

    p['fc1_w'] = nrm((256, 512), 512)
    p['fc1_b'] = 0.1 * jax.random.normal(next(keys), (256,), jnp.float32)
    p['bn1'] = bn(256)
    p['fc2_w'] = nrm((channels, 256), 256)
    p['fc2_b'] = 0.1 * jax.random.normal(next(keys), (channels,), jnp.float32)
    p['bn2'] = bn(channels)

    for name, out in [('ce', 3), ('s', 3), ('hr', 1)]:
        p[f'fc_{name}1_w'] = nrm((256, channels), channels)
        p[f'fc_{name}1_b'] = 0.1 * jax.random.normal(next(keys), (256,), jnp.float32)
        p[f'fc_{name}2_w'] = nrm((out, 256), 256)               # no bias (matches module)
    return p


def _fold_weights(params, compute_dtype):
    """Fold all BN layers; channel-major (Cout, Cin) weights, (Cout, 1) biases."""
    # pre_bn + conv1 + bn1 of the feature extractor
    s0, t0 = _bn_fold(**params['pre_bn'])
    s1, t1 = _bn_fold(**params['featbn1'])
    W1, b1 = params['conv1_w'], params['conv1_b']
    feat_w = [((s1[:, None] * W1) * s0[None, :],
               s1 * (W1 @ t0 + b1) + t1)]
    for i in range(2, 5):
        s, t = _bn_fold(**params[f'featbn{i}'])
        W, b = params[f'conv{i}_w'], params[f'conv{i}_b']
        feat_w.append((s[:, None] * W, s * b + t))

    # fc1 + bn1, fc2 + bn2
    sf1, tf1 = _bn_fold(**params['bn1'])
    Bf1 = sf1[:, None] * params['fc1_w']                        # (256, 512)
    df1 = sf1 * params['fc1_b'] + tf1
    sf2, tf2 = _bn_fold(**params['bn2'])
    Bf2 = sf2[:, None] * params['fc2_w']                        # (channels, 256)
    df2 = sf2 * params['fc2_b'] + tf2

    # Merge fc_ce1 / fc_s1 / fc_hr1 into one first-layer weight and build a
    # block-diagonal second-layer weight so the 3 heads become 2 matmuls.
    Wh1 = jnp.concatenate([params['fc_ce1_w'], params['fc_s1_w'],
                           params['fc_hr1_w']], axis=0)         # (768, channels)
    bh1 = jnp.concatenate([params['fc_ce1_b'], params['fc_s1_b'],
                           params['fc_hr1_b']], axis=0)         # (768,)
    Wh2 = jnp.zeros((7, 768), jnp.float32)
    Wh2 = Wh2.at[0:3, 0:256].set(params['fc_ce2_w'])
    Wh2 = Wh2.at[3:6, 256:512].set(params['fc_s2_w'])
    Wh2 = Wh2.at[6:7, 512:768].set(params['fc_hr2_w'])

    args = []
    for i, (Bw, d) in enumerate(feat_w):
        # conv1 (index 0) keeps f32: pre_bn's 1/sqrt(var) is folded into it.
        w_dt = jnp.float32 if i == 0 else compute_dtype
        args.append(Bw.astype(w_dt))            # MXU operand (bf16 by default)
        args.append(d.reshape(-1, 1))           # bias added in f32
    args += [Bf1.astype(compute_dtype), df1.reshape(-1, 1),
             Bf2.astype(compute_dtype), df2.reshape(-1, 1),
             Wh1.astype(compute_dtype), bh1.reshape(-1, 1),
             Wh2.astype(compute_dtype)]
    return args


def pointnet_forward(params, x, *, channels, tile_p=1024,
                     compute_dtype=jnp.bfloat16):
    """x: (B, input_dim, N) in PyTorch Conv1d NCL layout (kept end-to-end).

    Returns (out, feat, feat_traj); feat_traj (x_ori) is stored in
    `compute_dtype` (bf16 in the production path) to halve the dominant HBM
    writeback.  Use compute_dtype=jnp.float32 for exact checks.
    """
    B, Cin, N = x.shape
    tile_p = min(tile_p, N)
    # TODO(synk): N must be a multiple of tile_p; padded point columns would
    # need -inf-safe sentinels so they cannot win the channel max.
    assert N % tile_p == 0, "number of points must be a multiple of tile_p"
    x = x.astype(compute_dtype)            # halves the input DMA on bf16 path

    weights = _fold_weights(params, compute_dtype)
    xori_dtype = compute_dtype             # bf16 x_ori is the production path

    in_specs = [pl.BlockSpec((1, Cin, tile_p), lambda b, t: (b, 0, t))]
    # Constant-index weight blocks (fetched once; ~3 MiB even double-buffered,
    # so no pipeline_mode override is needed on any generation).
    in_specs += [pl.BlockSpec(w.shape, lambda b, t: (0, 0)) for w in weights]

    out_shape = (
        jax.ShapeDtypeStruct((B, 512, N), xori_dtype),         # x_ori (NCL)
        jax.ShapeDtypeStruct((B, 7, 1), jnp.float32),          # [centers,sizes,headings]
        jax.ShapeDtypeStruct((B, channels, 1), jnp.float32),   # feat
    )
    out_specs = [
        pl.BlockSpec((1, 512, tile_p), lambda b, t: (b, 0, t)),
        pl.BlockSpec((1, 7, 1), lambda b, t: (b, 0, 0)),
        pl.BlockSpec((1, channels, 1), lambda b, t: (b, 0, 0)),
    ]

    xori, out7, featc = pl.pallas_call(
        pointnet_kernel,
        out_shape=out_shape,
        grid=(B, N // tile_p),
        in_specs=in_specs,
        out_specs=out_specs,
        scratch_shapes=[pltpu.VMEM((512, 1), jnp.float32)],    # running max
        compiler_params=pltpu.CompilerParams(
            # Batch axis is the parallel (megacore) axis; point tiles carry
            # the max reduction + head epilogue, so they stay "arbitrary".
            # TODO(synk): on v7x (2 TCs/chip) a B=1 or odd batch leaves a core
            # idle; splitting the point axis across cores with a cross-core
            # max combine would be needed to use both.
            dimension_semantics=("parallel", "arbitrary"),
            # ~10 MiB actually used at tile_p=1024 with bf16 x_ori; 32 MiB
            # clears v5e's 16 MiB default scoped VMEM and stays comfortably
            # inside v7x's 64 MiB physical (keep <= ~48 MiB there).
            vmem_limit_bytes=32 * 1024 * 1024,
        ),
    )(x, *weights)

    out = out7.reshape(B, 7)
    feat = featc.reshape(B, channels)
    feat_traj = xori                       # already (B, 512, N), like x_ori
    return out, feat, feat_traj


# ---------------------------------------------------------------------------
# Pure-JAX f32 reference (eval-mode BN) for correctness check.
# ---------------------------------------------------------------------------
def reference_forward(params, x, *, channels):
    B, Cin, N = x.shape
    h = jnp.transpose(x, (0, 2, 1)).reshape(B * N, Cin).astype(jnp.float32)
    s0, t0 = _bn_fold(**params['pre_bn'])
    h = h * s0 + t0
    for i in range(1, 5):
        h = h @ params[f'conv{i}_w'].T + params[f'conv{i}_b']
        s, t = _bn_fold(**params[f'featbn{i}'])
        h = h * s + t
        if i < 4:
            h = jnp.maximum(h, 0.0)
    xori = h.reshape(B, N, 512)
    pooled = jnp.max(xori, axis=1)                                  # (B, 512)

    s, t = _bn_fold(**params['bn1'])
    h = jnp.maximum((pooled @ params['fc1_w'].T + params['fc1_b']) * s + t, 0.0)
    s, t = _bn_fold(**params['bn2'])
    feat = jnp.maximum((h @ params['fc2_w'].T + params['fc2_b']) * s + t, 0.0)

    def head(name):
        hh = jnp.maximum(feat @ params[f'fc_{name}1_w'].T + params[f'fc_{name}1_b'], 0.0)
        return hh @ params[f'fc_{name}2_w'].T

    out = jnp.concatenate([head('ce'), head('s'), head('hr')], axis=-1)
    return out, feat, jnp.transpose(xori, (0, 2, 1))


# TODO(synk): the joint_feat=True branch (reusing an externally supplied feat)
# is not implemented; only the default joint_feat=False forward path is.
if __name__ == "__main__":
    B, INPUT_DIM, N = 2, 4, 16        # small test shapes; N = number of points
    CHANNELS = 128                    # model_cfg.TRANS_INPUT

    key = jax.random.PRNGKey(0)
    pkey, xkey = jax.random.split(key)
    params = init_params(pkey, INPUT_DIM, CHANNELS)
    x = jax.random.normal(xkey, (B, INPUT_DIM, N), jnp.float32)

    ref_out, ref_feat, ref_traj = reference_forward(params, x, channels=CHANNELS)

    # 1) f32 compute path: tight check of the kernel mechanics (f32 x_ori).
    fwd_f32 = jax.jit(functools.partial(pointnet_forward, channels=CHANNELS,
                                        compute_dtype=jnp.float32))
    out32, feat32, traj32 = fwd_f32(params, x)
    jax.block_until_ready((out32, feat32, traj32))
    assert out32.shape == (B, 7) and feat32.shape == (B, CHANNELS)
    assert traj32.shape == (B, 512, N)
    assert jnp.allclose(out32, ref_out, atol=1e-4, rtol=1e-4)
    assert jnp.allclose(feat32, ref_feat, atol=1e-4, rtol=1e-4)
    assert jnp.allclose(traj32, ref_traj, atol=1e-4, rtol=1e-4)

    # 2) default bf16 MXU path (f32 accumulation, bf16 x_ori): looser tolerance.
    fwd = jax.jit(functools.partial(pointnet_forward, channels=CHANNELS))
    out, feat, feat_traj = fwd(params, x)
    jax.block_until_ready((out, feat, feat_traj))
    assert out.shape == (B, 7) and feat.shape == (B, CHANNELS)
    assert feat_traj.shape == (B, 512, N)
    assert feat_traj.dtype == jnp.bfloat16
    assert jnp.allclose(out, ref_out, atol=1e-1, rtol=1e-1)
    assert jnp.allclose(feat, ref_feat, atol=1e-1, rtol=1e-1)
    assert jnp.allclose(feat_traj.astype(jnp.float32), ref_traj, atol=1e-1, rtol=1e-1)

    print("KERNEL_OK")
</pallas_src>

<mosaic_0001>
module attributes {stable_mosaic.version = 11 : i64} {
  func.func @pointnet_kernel(%arg0: i32, %arg1: i32, %arg2: memref<1x4x16xf32, #tpu.memory_space<vmem>>, %arg3: memref<64x4xf32, #tpu.memory_space<vmem>>, %arg4: memref<64x1xf32, #tpu.memory_space<vmem>>, %arg5: memref<128x64xf32, #tpu.memory_space<vmem>>, %arg6: memref<128x1xf32, #tpu.memory_space<vmem>>, %arg7: memref<256x128xf32, #tpu.memory_space<vmem>>, %arg8: memref<256x1xf32, #tpu.memory_space<vmem>>, %arg9: memref<512x256xf32, #tpu.memory_space<vmem>>, %arg10: memref<512x1xf32, #tpu.memory_space<vmem>>, %arg11: memref<256x512xf32, #tpu.memory_space<vmem>>, %arg12: memref<256x1xf32, #tpu.memory_space<vmem>>, %arg13: memref<128x256xf32, #tpu.memory_space<vmem>>, %arg14: memref<128x1xf32, #tpu.memory_space<vmem>>, %arg15: memref<768x128xf32, #tpu.memory_space<vmem>>, %arg16: memref<768x1xf32, #tpu.memory_space<vmem>>, %arg17: memref<7x768xf32, #tpu.memory_space<vmem>>, %arg18: memref<1x512x16xf32, #tpu.memory_space<vmem>>, %arg19: memref<1x7x1xf32, #tpu.memory_space<vmem>>, %arg20: memref<1x128x1xf32, #tpu.memory_space<vmem>>, %arg21: memref<512x1xf32, #tpu.memory_space<vmem>>) attributes {dimension_semantics = [#tpu.dimension_semantics<parallel>, #tpu.dimension_semantics<arbitrary>], iteration_bounds = array<i64: 2, 1>, scalar_prefetch = 0 : i64, scratch_operands = 1 : i64, tpu.core_type = #tpu.core_type<tc>, window_params = [{transform_indices = @transform_0, window_bounds = array<i64: 1, 4, 16>}, {pipeline_mode = #tpu.pipeline_mode<synchronous>, transform_indices = @transform_1, window_bounds = array<i64: 64, 4>}, {pipeline_mode = #tpu.pipeline_mode<synchronous>, transform_indices = @transform_2, window_bounds = array<i64: 64, 1>}, {pipeline_mode = #tpu.pipeline_mode<synchronous>, transform_indices = @transform_3, window_bounds = array<i64: 128, 64>}, {pipeline_mode = #tpu.pipeline_mode<synchronous>, transform_indices = @transform_4, window_bounds = array<i64: 128, 1>}, {pipeline_mode = #tpu.pipeline_mode<synchronous>, transform_indices = @transform_5, window_bounds = array<i64: 256, 128>}, {pipeline_mode = #tpu.pipeline_mode<synchronous>, transform_indices = @transform_6, window_bounds = array<i64: 256, 1>}, {pipeline_mode = #tpu.pipeline_mode<synchronous>, transform_indices = @transform_7, window_bounds = array<i64: 512, 256>}, {pipeline_mode = #tpu.pipeline_mode<synchronous>, transform_indices = @transform_8, window_bounds = array<i64: 512, 1>}, {pipeline_mode = #tpu.pipeline_mode<synchronous>, transform_indices = @transform_9, window_bounds = array<i64: 256, 512>}, {pipeline_mode = #tpu.pipeline_mode<synchronous>, transform_indices = @transform_10, window_bounds = array<i64: 256, 1>}, {pipeline_mode = #tpu.pipeline_mode<synchronous>, transform_indices = @transform_11, window_bounds = array<i64: 128, 256>}, {pipeline_mode = #tpu.pipeline_mode<synchronous>, transform_indices = @transform_12, window_bounds = array<i64: 128, 1>}, {pipeline_mode = #tpu.pipeline_mode<synchronous>, transform_indices = @transform_13, window_bounds = array<i64: 768, 128>}, {pipeline_mode = #tpu.pipeline_mode<synchronous>, transform_indices = @transform_14, window_bounds = array<i64: 768, 1>}, {pipeline_mode = #tpu.pipeline_mode<synchronous>, transform_indices = @transform_15, window_bounds = array<i64: 7, 768>}, {transform_indices = @transform_16, window_bounds = array<i64: 1, 512, 16>}, {transform_indices = @transform_17, window_bounds = array<i64: 1, 7, 1>}, {transform_indices = @transform_18, window_bounds = array<i64: 1, 128, 1>}]} {
    %c0_i32 = arith.constant 0 : i32
    %0 = arith.cmpi eq, %arg1, %c0_i32 : i32
    %1 = arith.extui %0 : i1 to i32
    %c0_i32_0 = arith.constant 0 : i32
    %2 = arith.cmpi ne, %1, %c0_i32_0 : i32
    scf.if %2 {
      %cst_47 = arith.constant 0xFF800000 : f32
      %55 = vector.broadcast %cst_47 : f32 to vector<512x1xf32>
      %c0_48 = arith.constant 0 : index
      %c0_49 = arith.constant 0 : index
      %56 = vector.load %arg21[%c0_48, %c0_49] : memref<512x1xf32, #tpu.memory_space<vmem>>, vector<512x1xf32>
      tpu.vector_store %arg21[%c0_48, %c0_49], %55 {strides = array<i32>} : memref<512x1xf32, #tpu.memory_space<vmem>>, vector<512x1xf32>,
    } else {
    }
    %c0 = arith.constant 0 : index
    %c0_1 = arith.constant 0 : index
    %c0_2 = arith.constant 0 : index
    %3 = vector.load %arg2[%c0, %c0_1, %c0_2] : memref<1x4x16xf32, #tpu.memory_space<vmem>>, vector<1x4x16xf32>
    %4 = vector.shape_cast %3 : vector<1x4x16xf32> to vector<4x16xf32>
    %c0_3 = arith.constant 0 : index
    %c0_4 = arith.constant 0 : index
    %5 = vector.load %arg3[%c0_3, %c0_4] : memref<64x4xf32, #tpu.memory_space<vmem>>, vector<64x4xf32>
    %cst = arith.constant dense<0.000000e+00> : vector<64x16xf32>
    %6 = tpu.matmul %5, %4, %cst {dimension_numbers = #tpu.dot_dimension_numbers<[1], [0], [0], [1], [0, 0, 1, 1], [], []>} : vector<64x4xf32>, vector<4x16xf32>, vector<64x16xf32> -> vector<64x16xf32>
    %c0_5 = arith.constant 0 : index
    %c0_6 = arith.constant 0 : index
    %7 = vector.load %arg4[%c0_5, %c0_6] : memref<64x1xf32, #tpu.memory_space<vmem>>, vector<64x1xf32>
    %8 = vector.broadcast %7 : vector<64x1xf32> to vector<64x16xf32>
    %9 = arith.addf %6, %8 : vector<64x16xf32>
    %cst_7 = arith.constant 0.000000e+00 : f32
    %10 = vector.broadcast %cst_7 : f32 to vector<64x16xf32>
    %11 = arith.maximumf %9, %10 : vector<64x16xf32>
    %c0_8 = arith.constant 0 : index
    %c0_9 = arith.constant 0 : index
    %12 = vector.load %arg5[%c0_8, %c0_9] : memref<128x64xf32, #tpu.memory_space<vmem>>, vector<128x64xf32>
    %cst_10 = arith.constant dense<0.000000e+00> : vector<128x16xf32>
    %13 = tpu.matmul %12, %11, %cst_10 {dimension_numbers = #tpu.dot_dimension_numbers<[1], [0], [0], [1], [0, 0, 1, 1], [], []>} : vector<128x64xf32>, vector<64x16xf32>, vector<128x16xf32> -> vector<128x16xf32>
    %c0_11 = arith.constant 0 : index
    %c0_12 = arith.constant 0 : index
    %14 = vector.load %arg6[%c0_11, %c0_12] : memref<128x1xf32, #tpu.memory_space<vmem>>, vector<128x1xf32>
    %15 = vector.broadcast %14 : vector<128x1xf32> to vector<128x16xf32>
    %16 = arith.addf %13, %15 : vector<128x16xf32>
    %cst_13 = arith.constant 0.000000e+00 : f32
    %17 = vector.broadcast %cst_13 : f32 to vector<128x16xf32>
    %18 = arith.maximumf %16, %17 : vector<128x16xf32>
    %c0_14 = arith.constant 0 : index
    %c0_15 = arith.constant 0 : index
    %19 = vector.load %arg7[%c0_14, %c0_15] : memref<256x128xf32, #tpu.memory_space<vmem>>, vector<256x128xf32>
    %cst_16 = arith.constant dense<0.000000e+00> : vector<256x16xf32>
    %20 = tpu.matmul %19, %18, %cst_16 {dimension_numbers = #tpu.dot_dimension_numbers<[1], [0], [0], [1], [0, 0, 1, 1], [], []>} : vector<256x128xf32>, vector<128x16xf32>, vector<256x16xf32> -> vector<256x16xf32>
    %c0_17 = arith.constant 0 : index
    %c0_18 = arith.constant 0 : index
    %21 = vector.load %arg8[%c0_17, %c0_18] : memref<256x1xf32, #tpu.memory_space<vmem>>, vector<256x1xf32>
    %22 = vector.broadcast %21 : vector<256x1xf32> to vector<256x16xf32>
    %23 = arith.addf %20, %22 : vector<256x16xf32>
    %cst_19 = arith.constant 0.000000e+00 : f32
    %24 = vector.broadcast %cst_19 : f32 to vector<256x16xf32>
    %25 = arith.maximumf %23, %24 : vector<256x16xf32>
    %c0_20 = arith.constant 0 : index
    %c0_21 = arith.constant 0 : index
    %26 = vector.load %arg9[%c0_20, %c0_21] : memref<512x256xf32, #tpu.memory_space<vmem>>, vector<256x256xf32>
    %cst_22 = arith.constant dense<0.000000e+00> : vector<256x16xf32>
    %27 = tpu.matmul %26, %25, %cst_22 {dimension_numbers = #tpu.dot_dimension_numbers<[1], [0], [0], [1], [0, 0, 1, 1], [], []>} : vector<256x256xf32>, vector<256x16xf32>, vector<256x16xf32> -> vector<256x16xf32>
    %c0_23 = arith.constant 0 : index
    %c0_24 = arith.constant 0 : index
    %28 = vector.load %arg10[%c0_23, %c0_24] : memref<512x1xf32, #tpu.memory_space<vmem>>, vector<256x1xf32>
    %29 = vector.broadcast %28 : vector<256x1xf32> to vector<256x16xf32>
    %30 = arith.addf %27, %29 : vector<256x16xf32>
    %c0_25 = arith.constant 0 : index
    %c0_26 = arith.constant 0 : index
    %c0_27 = arith.constant 0 : index
    %31 = vector.load %arg18[%c0_25, %c0_26, %c0_27] : memref<1x512x16xf32, #tpu.memory_space<vmem>>, vector<1x256x16xf32>
    %32 = vector.shape_cast %31 : vector<1x256x16xf32> to vector<256x16xf32>
    %33 = vector.shape_cast %30 : vector<256x16xf32> to vector<1x256x16xf32>
    tpu.vector_store %arg18[%c0_25, %c0_26, %c0_27], %33 {strides = array<i32>} : memref<1x512x16xf32, #tpu.memory_space<vmem>>, vector<1x256x16xf32>,
    %c0_28 = arith.constant 0 : index
    %c0_29 = arith.constant 0 : index
    %34 = vector.load %arg21[%c0_28, %c0_29] : memref<512x1xf32, #tpu.memory_space<vmem>>, vector<256x1xf32>
    %cst_30 = arith.constant dense<0xFF800000> : vector<256xf32>
    %35 = vector.multi_reduction <maximumf>, %30, %cst_30 [1] : vector<256x16xf32> to vector<256xf32>
    %36 = vector.shape_cast %35 : vector<256xf32> to vector<256x1xf32>
    %37 = arith.maximumf %34, %36 : vector<256x1xf32>
    %c0_31 = arith.constant 0 : index
    %c0_32 = arith.constant 0 : index
    %38 = vector.load %arg21[%c0_31, %c0_32] : memref<512x1xf32, #tpu.memory_space<vmem>>, vector<256x1xf32>
    tpu.vector_store %arg21[%c0_31, %c0_32], %37 {strides = array<i32>} : memref<512x1xf32, #tpu.memory_space<vmem>>, vector<256x1xf32>,
    %c256 = arith.constant 256 : index
    %c0_33 = arith.constant 0 : index
    %39 = vector.load %arg9[%c256, %c0_33] : memref<512x256xf32, #tpu.memory_space<vmem>>, vector<256x256xf32>
    %cst_34 = arith.constant dense<0.000000e+00> : vector<256x16xf32>
    %40 = tpu.matmul %39, %25, %cst_34 {dimension_numbers = #tpu.dot_dimension_numbers<[1], [0], [0], [1], [0, 0, 1, 1], [], []>} : vector<256x256xf32>, vector<256x16xf32>, vector<256x16xf32> -> vector<256x16xf32>
    %c256_35 = arith.constant 256 : index
    %c0_36 = arith.constant 0 : index
    %41 = vector.load %arg10[%c256_35, %c0_36] : memref<512x1xf32, #tpu.memory_space<vmem>>, vector<256x1xf32>
    %42 = vector.broadcast %41 : vector<256x1xf32> to vector<256x16xf32>
    %43 = arith.addf %40, %42 : vector<256x16xf32>
    %c0_37 = arith.constant 0 : index
    %c256_38 = arith.constant 256 : index
    %c0_39 = arith.constant 0 : index
    %44 = vector.load %arg18[%c0_37, %c256_38, %c0_39] : memref<1x512x16xf32, #tpu.memory_space<vmem>>, vector<1x256x16xf32>
    %45 = vector.shape_cast %44 : vector<1x256x16xf32> to vector<256x16xf32>
    %46 = vector.shape_cast %43 : vector<256x16xf32> to vector<1x256x16xf32>
    tpu.vector_store %arg18[%c0_37, %c256_38, %c0_39], %46 {strides = array<i32>} : memref<1x512x16xf32, #tpu.memory_space<vmem>>, vector<1x256x16xf32>,
    %c256_40 = arith.constant 256 : index
    %c0_41 = arith.constant 0 : index
    %47 = vector.load %arg21[%c256_40, %c0_41] : memref<512x1xf32, #tpu.memory_space<vmem>>, vector<256x1xf32>
    %cst_42 = arith.constant dense<0xFF800000> : vector<256xf32>
    %48 = vector.multi_reduction <maximumf>, %43, %cst_42 [1] : vector<256x16xf32> to vector<256xf32>
    %49 = vector.shape_cast %48 : vector<256xf32> to vector<256x1xf32>
    %50 = arith.maximumf %47, %49 : vector<256x1xf32>
    %c256_43 = arith.constant 256 : index
    %c0_44 = arith.constant 0 : index
    %51 = vector.load %arg21[%c256_43, %c0_44] : memref<512x1xf32, #tpu.memory_space<vmem>>, vector<256x1xf32>
    tpu.vector_store %arg21[%c256_43, %c0_44], %50 {strides = array<i32>} : memref<512x1xf32, #tpu.memory_space<vmem>>, vector<256x1xf32>,
    %c0_i32_45 = arith.constant 0 : i32
    %52 = arith.cmpi eq, %arg1, %c0_i32_45 : i32
    %53 = arith.extui %52 : i1 to i32
    %c0_i32_46 = arith.constant 0 : i32
    %54 = arith.cmpi ne, %53, %c0_i32_46 : i32
    scf.if %54 {
      %c0_47 = arith.constant 0 : index
      %c0_48 = arith.constant 0 : index
      %55 = vector.load %arg21[%c0_47, %c0_48] : memref<512x1xf32, #tpu.memory_space<vmem>>, vector<512x1xf32>
      %c0_49 = arith.constant 0 : index
      %c0_50 = arith.constant 0 : index
      %56 = vector.load %arg11[%c0_49, %c0_50] : memref<256x512xf32, #tpu.memory_space<vmem>>, vector<256x512xf32>
      %cst_51 = arith.constant dense<0.000000e+00> : vector<256x1xf32>
      %57 = tpu.matmul %56, %55, %cst_51 {dimension_numbers = #tpu.dot_dimension_numbers<[1], [0], [0], [1], [0, 0, 1, 1], [], []>} : vector<256x512xf32>, vector<512x1xf32>, vector<256x1xf32> -> vector<256x1xf32>
      %c0_52 = arith.constant 0 : index
      %c0_53 = arith.constant 0 : index
      %58 = vector.load %arg12[%c0_52, %c0_53] : memref<256x1xf32, #tpu.memory_space<vmem>>, vector<256x1xf32>
      %59 = arith.addf %57, %58 : vector<256x1xf32>
      %cst_54 = arith.constant 0.000000e+00 : f32
      %60 = vector.broadcast %cst_54 : f32 to vector<256x1xf32>
      %61 = arith.maximumf %59, %60 : vector<256x1xf32>
      %c0_55 = arith.constant 0 : index
      %c0_56 = arith.constant 0 : index
      %62 = vector.load %arg13[%c0_55, %c0_56] : memref<128x256xf32, #tpu.memory_space<vmem>>, vector<128x256xf32>
      %cst_57 = arith.constant dense<0.000000e+00> : vector<128x1xf32>
      %63 = tpu.matmul %62, %61, %cst_57 {dimension_numbers = #tpu.dot_dimension_numbers<[1], [0], [0], [1], [0, 0, 1, 1], [], []>} : vector<128x256xf32>, vector<256x1xf32>, vector<128x1xf32> -> vector<128x1xf32>
      %c0_58 = arith.constant 0 : index
      %c0_59 = arith.constant 0 : index
      %64 = vector.load %arg14[%c0_58, %c0_59] : memref<128x1xf32, #tpu.memory_space<vmem>>, vector<128x1xf32>
      %65 = arith.addf %63, %64 : vector<128x1xf32>
      %cst_60 = arith.constant 0.000000e+00 : f32
      %66 = vector.broadcast %cst_60 : f32 to vector<128x1xf32>
      %67 = arith.maximumf %65, %66 : vector<128x1xf32>
      %c0_61 = arith.constant 0 : index
      %c0_62 = arith.constant 0 : index
      %c0_63 = arith.constant 0 : index
      %68 = vector.load %arg20[%c0_61, %c0_62, %c0_63] : memref<1x128x1xf32, #tpu.memory_space<vmem>>, vector<1x128x1xf32>
      %69 = vector.shape_cast %68 : vector<1x128x1xf32> to vector<128x1xf32>
      %70 = vector.shape_cast %67 : vector<128x1xf32> to vector<1x128x1xf32>
      tpu.vector_store %arg20[%c0_61, %c0_62, %c0_63], %70 {strides = array<i32>} : memref<1x128x1xf32, #tpu.memory_space<vmem>>, vector<1x128x1xf32>,
      %c0_64 = arith.constant 0 : index
      %c0_65 = arith.constant 0 : index
      %71 = vector.load %arg15[%c0_64, %c0_65] : memref<768x128xf32, #tpu.memory_space<vmem>>, vector<768x128xf32>
      %cst_66 = arith.constant dense<0.000000e+00> : vector<768x1xf32>
      %72 = tpu.matmul %71, %67, %cst_66 {dimension_numbers = #tpu.dot_dimension_numbers<[1], [0], [0], [1], [0, 0, 1, 1], [], []>} : vector<768x128xf32>, vector<128x1xf32>, vector<768x1xf32> -> vector<768x1xf32>
      %c0_67 = arith.constant 0 : index
      %c0_68 = arith.constant 0 : index
      %73 = vector.load %arg16[%c0_67, %c0_68] : memref<768x1xf32, #tpu.memory_space<vmem>>, vector<768x1xf32>
      %74 = arith.addf %72, %73 : vector<768x1xf32>
      %cst_69 = arith.constant 0.000000e+00 : f32
      %75 = vector.broadcast %cst_69 : f32 to vector<768x1xf32>
      %76 = arith.maximumf %74, %75 : vector<768x1xf32>
      %c0_70 = arith.constant 0 : index
      %c0_71 = arith.constant 0 : index
      %77 = vector.load %arg17[%c0_70, %c0_71] : memref<7x768xf32, #tpu.memory_space<vmem>>, vector<7x768xf32>
      %cst_72 = arith.constant dense<0.000000e+00> : vector<7x1xf32>
      %78 = tpu.matmul %77, %76, %cst_72 {dimension_numbers = #tpu.dot_dimension_numbers<[1], [0], [0], [1], [0, 0, 1, 1], [], []>} : vector<7x768xf32>, vector<768x1xf32>, vector<7x1xf32> -> vector<7x1xf32>
      %c0_73 = arith.constant 0 : index
      %c0_74 = arith.constant 0 : index
      %c0_75 = arith.constant 0 : index
      %79 = vector.load %arg19[%c0_73, %c0_74, %c0_75] : memref<1x7x1xf32, #tpu.memory_space<vmem>>, vector<1x7x1xf32>
      %80 = vector.shape_cast %79 : vector<1x7x1xf32> to vector<7x1xf32>
      %81 = vector.shape_cast %78 : vector<7x1xf32> to vector<1x7x1xf32>
      tpu.vector_store %arg19[%c0_73, %c0_74, %c0_75], %81 {strides = array<i32>} : memref<1x7x1xf32, #tpu.memory_space<vmem>>, vector<1x7x1xf32>,
    } else {
    }
    return
  }
  func.func @transform_0(%arg0: i32, %arg1: i32) -> (i32, i32, i32) {
    %c0_i32 = arith.constant 0 : i32
    %c0_i32_0 = arith.constant 0 : i32
    return %arg0, %c0_i32, %arg1 : i32, i32, i32
  }
  func.func @transform_1(%arg0: i32, %arg1: i32) -> (i32, i32) {
    %c0_i32 = arith.constant 0 : i32
    %c0_i32_0 = arith.constant 0 : i32
    %c0_i32_1 = arith.constant 0 : i32
    return %c0_i32, %c0_i32_0 : i32, i32
  }
  func.func @transform_2(%arg0: i32, %arg1: i32) -> (i32, i32) {
    %c0_i32 = arith.constant 0 : i32
    %c0_i32_0 = arith.constant 0 : i32
    %c0_i32_1 = arith.constant 0 : i32
    return %c0_i32, %c0_i32_0 : i32, i32
  }
  func.func @transform_3(%arg0: i32, %arg1: i32) -> (i32, i32) {
    %c0_i32 = arith.constant 0 : i32
    %c0_i32_0 = arith.constant 0 : i32
    %c0_i32_1 = arith.constant 0 : i32
    return %c0_i32, %c0_i32_0 : i32, i32
  }
  func.func @transform_4(%arg0: i32, %arg1: i32) -> (i32, i32) {
    %c0_i32 = arith.constant 0 : i32
    %c0_i32_0 = arith.constant 0 : i32
    %c0_i32_1 = arith.constant 0 : i32
    return %c0_i32, %c0_i32_0 : i32, i32
  }
  func.func @transform_5(%arg0: i32, %arg1: i32) -> (i32, i32) {
    %c0_i32 = arith.constant 0 : i32
    %c0_i32_0 = arith.constant 0 : i32
    %c0_i32_1 = arith.constant 0 : i32
    return %c0_i32, %c0_i32_0 : i32, i32
  }
  func.func @transform_6(%arg0: i32, %arg1: i32) -> (i32, i32) {
    %c0_i32 = arith.constant 0 : i32
    %c0_i32_0 = arith.constant 0 : i32
    %c0_i32_1 = arith.constant 0 : i32
    return %c0_i32, %c0_i32_0 : i32, i32
  }
  func.func @transform_7(%arg0: i32, %arg1: i32) -> (i32, i32) {
    %c0_i32 = arith.constant 0 : i32
    %c0_i32_0 = arith.constant 0 : i32
    %c0_i32_1 = arith.constant 0 : i32
    return %c0_i32, %c0_i32_0 : i32, i32
  }
  func.func @transform_8(%arg0: i32, %arg1: i32) -> (i32, i32) {
    %c0_i32 = arith.constant 0 : i32
    %c0_i32_0 = arith.constant 0 : i32
    %c0_i32_1 = arith.constant 0 : i32
    return %c0_i32, %c0_i32_0 : i32, i32
  }
  func.func @transform_9(%arg0: i32, %arg1: i32) -> (i32, i32) {
    %c0_i32 = arith.constant 0 : i32
    %c0_i32_0 = arith.constant 0 : i32
    %c0_i32_1 = arith.constant 0 : i32
    return %c0_i32, %c0_i32_0 : i32, i32
  }
  func.func @transform_10(%arg0: i32, %arg1: i32) -> (i32, i32) {
    %c0_i32 = arith.constant 0 : i32
    %c0_i32_0 = arith.constant 0 : i32
    %c0_i32_1 = arith.constant 0 : i32
    return %c0_i32, %c0_i32_0 : i32, i32
  }
  func.func @transform_11(%arg0: i32, %arg1: i32) -> (i32, i32) {
    %c0_i32 = arith.constant 0 : i32
    %c0_i32_0 = arith.constant 0 : i32
    %c0_i32_1 = arith.constant 0 : i32
    return %c0_i32, %c0_i32_0 : i32, i32
  }
  func.func @transform_12(%arg0: i32, %arg1: i32) -> (i32, i32) {
    %c0_i32 = arith.constant 0 : i32
    %c0_i32_0 = arith.constant 0 : i32
    %c0_i32_1 = arith.constant 0 : i32
    return %c0_i32, %c0_i32_0 : i32, i32
  }
  func.func @transform_13(%arg0: i32, %arg1: i32) -> (i32, i32) {
    %c0_i32 = arith.constant 0 : i32
    %c0_i32_0 = arith.constant 0 : i32
    %c0_i32_1 = arith.constant 0 : i32
    return %c0_i32, %c0_i32_0 : i32, i32
  }
  func.func @transform_14(%arg0: i32, %arg1: i32) -> (i32, i32) {
    %c0_i32 = arith.constant 0 : i32
    %c0_i32_0 = arith.constant 0 : i32
    %c0_i32_1 = arith.constant 0 : i32
    return %c0_i32, %c0_i32_0 : i32, i32
  }
  func.func @transform_15(%arg0: i32, %arg1: i32) -> (i32, i32) {
    %c0_i32 = arith.constant 0 : i32
    %c0_i32_0 = arith.constant 0 : i32
    %c0_i32_1 = arith.constant 0 : i32
    return %c0_i32, %c0_i32_0 : i32, i32
  }
  func.func @transform_16(%arg0: i32, %arg1: i32) -> (i32, i32, i32) {
    %c0_i32 = arith.constant 0 : i32
    %c0_i32_0 = arith.constant 0 : i32
    return %arg0, %c0_i32, %arg1 : i32, i32, i32
  }
  func.func @transform_17(%arg0: i32, %arg1: i32) -> (i32, i32, i32) {
    %c0_i32 = arith.constant 0 : i32
    %c0_i32_0 = arith.constant 0 : i32
    %c0_i32_1 = arith.constant 0 : i32
    return %arg0, %c0_i32, %c0_i32_0 : i32, i32, i32
  }
  func.func @transform_18(%arg0: i32, %arg1: i32) -> (i32, i32, i32) {
    %c0_i32 = arith.constant 0 : i32
    %c0_i32_0 = arith.constant 0 : i32
    %c0_i32_1 = arith.constant 0 : i32
    return %arg0, %c0_i32, %c0_i32_0 : i32, i32, i32
  }
}

</mosaic_0001>

<bundles_post_ra>
// kernel: pointnet_forward.1
= control target key start
LH: loop header
LB: loop body
LE: loop exit
PB: predicated region body
PF: predicated region fallthrough
CT: control target
= control target key end

     0   :  { %s4912_s27 = smov 0   ;;  %s4914_s28 = smov 0   ;;  %s8426_s0 = inlined_call_operand.vmem [shape: f32[2,4,16], index: 0, kind: input, shape index: {}]   ;;  %s8427_s1 = inlined_call_operand.vmem [shape: f32[64,4], index: 1, kind: input, shape index: {}]   ;;  %s8428_s2 = inlined_call_operand.vmem [shape: f32[64,1], index: 2, kind: input, shape index: {}]   ;;  %s8429_s3 = inlined_call_operand.vmem [shape: f32[128,64], index: 3, kind: input, shape index: {}]   ;;  %s8430_s4 = inlined_call_operand.vmem [shape: f32[128,1], index: 4, kind: input, shape index: {}]   ;;  %s8431_s5 = inlined_call_operand.vmem [shape: f32[256,128], index: 5, kind: input, shape index: {}]   ;;  %s8432_s6 = inlined_call_operand.vmem [shape: f32[256,1], index: 6, kind: input, shape index: {}]   ;;  %s8433_s7 = inlined_call_operand.vmem [shape: f32[512,256], index: 7, kind: input, shape index: {}]   ;;  %s8434_s8 = inlined_call_operand.vmem [shape: f32[512,1], index: 8, kind: input, shape index: {}]   ;;  %s8435_s9 = inlined_call_operand.vmem [shape: f32[256,512], index: 9, kind: input, shape index: {}]   ;;  %s8436_s10 = inlined_call_operand.vmem [shape: f32[256,1], index: 10, kind: input, shape index: {}]   ;;  %s8437_s11 = inlined_call_operand.vmem [shape: f32[128,256], index: 11, kind: input, shape index: {}]   ;;  %s8438_s12 = inlined_call_operand.vmem [shape: f32[128,1], index: 12, kind: input, shape index: {}]   ;;  %s8439_s13 = inlined_call_operand.vmem [shape: f32[768,128], index: 13, kind: input, shape index: {}]   ;;  %s8440_s14 = inlined_call_operand.vmem [shape: f32[768,1], index: 14, kind: input, shape index: {}]   ;;  %s8441_s15 = inlined_call_operand.vmem [shape: f32[7,768], index: 15, kind: input, shape index: {}]   ;;  %s8442_s16 = inlined_call_operand.vmem [shape: f32[2,512,16], index: 16, kind: output, shape index: {0}]   ;;  %s8443_s17 = inlined_call_operand.vmem [shape: f32[2,7,1], index: 17, kind: output, shape index: {1}]   ;;  %s8444_s18 = inlined_call_operand.vmem [shape: f32[2,128,1], index: 18, kind: output, shape index: {2}]  }
   0x1   :  { %8449 = sst [smem:[#allocation12_spill]] %s8426_s0  ;;  %s4916_s29 = smov 0  }
   0x2   :  { %8450 = sst [smem:[#allocation13_spill]] %s8427_s1 }
   0x3   :  { %8451 = sst [smem:[#allocation14_spill]] %s8428_s2 }
   0x4 LB: > { %8452 = sst [smem:[#allocation3_spill]] %s4809_s28  ;;  %s41_s30 = sadd.s32 1, %s4809_s28  ;;  %s4813_s29 = sphi %s4916_s29, %s29_s29   ;;  %s4809_s28 = sphi %s4914_s28, %s8472_s28   ;;  %s4805_s27 = sphi %s4912_s27, %s8471_s27  }
   0x5   : > { %8453 = sst [smem:[#allocation4_spill]] %s4813_s29  ;;  %p4646_p0 = scmp.ge.s32.totalorder %s4813_s29, 1 }
   0x6   : > { %p43_p1 = scmp.ge.s32.totalorder %s41_s30, 2  ;;  %p535_p2 = scmp.lt.s32.totalorder %s4813_s29, 3 }
   0x8   : > { %s8474_s30 = smov (%p43_p1, %s41_s30), 0  ;;  %p536_p3 = pnand %p4646_p0, %p535_p2 }
   0x9   : > { %8454 = sst [smem:[#allocation5_spill]] %s8474_s30 }
   0xa   : > { %539 = sbr.rel (%p536_p3) target bundleno = 3437 (0xd6d), region = 84 }
   0xf   : > { %s8455_s1 = sld [smem:[#allocation14_spill]]  ;;  %p603_p4 = scmp.lt.s32.totalorder %s4805_s27, 1  ;;  %v4815_v3 = vmov 0   ;;  %vm778_vm0 = vcmask 1043456   ;;  %vm753_vm1 = vcmask 31744   ;;  %v862_v11 = vld [vmem:[%s8430_s4 + $0x78] sm:$0xff] }
  0x10   : > { %4790 = vset.pattern.permute.xlu2 %v4815_v3  ;;  %4789 = vset.pattern.permute.xlu1 %v4815_v3  ;;  %s8456_s26 = sld [smem:[#allocation12_spill]]  ;;  %v860_v14 = vld [vmem:[%s8430_s4 + $0x68] sm:$0xff]  ;;  %v859_v15 = vld [vmem:[%s8430_s4 + $0x60] sm:$0xff]  ;;  %v861_v16 = vld [vmem:[%s8430_s4 + $0x70] sm:$0xff]  ;;  %vm943_vm2 = vcmask 523264   ;;  %vm1924_vm3 = vcmask 130048  }
  0x11   : > { %4788 = vset.pattern.permute.xlu0 %v4815_v3  ;;  %s8476_s27 = smov (!%p603_p4, %s4805_s27), 1  ;;  %s8457_s21 = sld [smem:[#allocation13_spill]]  ;;  %v857_v18 = vld [vmem:[%s8430_s4 + $0x50] sm:$0xff]  ;;  %v856_v19 = vld [vmem:[%s8430_s4 + $0x48] sm:$0xff]  ;;  %v858_v20 = vld [vmem:[%s8430_s4 + $0x58] sm:$0xff]  ;;  %vm631_vm4 = vcmask 7168  }
  0x12   : > { %s4647_s23 = sshll.u32 %s8476_s27, 2  ;;  %v854_v22 = vld [vmem:[%s8430_s4 + $0x38] sm:$0xff]  ;;  %v853_v23 = vld [vmem:[%s8430_s4 + $0x30] sm:$0xff]  ;;  %v855_v24 = vld [vmem:[%s8430_s4 + $0x40] sm:$0xff]  ;;  %s4680_s19 = sshll.u32 %s8476_s27, 9  ;;  %vm4496_vm5 = vcmask 6144  }
  0x13   : > { %v851_v26 = vld [vmem:[%s8430_s4 + $0x20] sm:$0xff]  ;;  %v850_v27 = vld [vmem:[%s8430_s4 + $0x18] sm:$0xff]  ;;  %v852_v28 = vld [vmem:[%s8430_s4 + $0x28] sm:$0xff]  ;;  %s5689_s29 = scalar_lea.vmem %s8442_s16, %s4680_s19 }
  0x14   : > { %v848_v30 = vld [vmem:[%s8430_s4 + $0x8] sm:$0xff]  ;;  %v847_v31 = vld [vmem:[%s8430_s4] sm:$0xff]  ;;  %v849_v32 = vld [vmem:[%s8430_s4 + $0x10] sm:$0xff] }
  0x15   : > { %v712_v0 = vld [vmem:[%s8455_s1 + $0x38] sm:$0xff]  ;;  %v710_v1 = vld [vmem:[%s8455_s1 + $0x28] sm:$0xff]  ;;  %v709_v6 = vld [vmem:[%s8455_s1 + $0x20] sm:$0xff] }
  0x16   : > { %v708_v2 = vld [vmem:[%s8455_s1 + $0x18] sm:$0xff]  ;;  %740 = vperm.xlu1 %4789, %v710_v1   ;;  %750 = vperm.xlu0 %4788, %v712_v0   ;;  %s609_s0 = scalar_lea.vmem %s8456_s26, %s4647_s23  ;;  %v711_v7 = vld [vmem:[%s8455_s1 + $0x30] sm:$0xff]  ;;  %v705_v10 = vld [vmem:[%s8455_s1] sm:$0xff]  ;;  %s4681_s23 = sshll.u32 %s8476_s27, 7 }
  0x17   : > { %730 = vperm.xlu2 %4790, %v708_v2   ;;  %v697_v4 = vld [vmem:[%s8457_s21] sm:$0xff]  ;;  %v707_v8 = vld [vmem:[%s8455_s1 + $0x10] sm:$0xff]  ;;  %v698_v9 = vld [vmem:[%s8457_s21 + $0x8] sm:$0xff]  ;;  %s7581_s19 = scalar_lea.vmem %s8444_s18, %s4681_s23 }
  0x18   : > { %v696_v5 = vld [vmem:[%s609_s0] sm:$0xf]  ;;  %v706_v12 = vld [vmem:[%s8455_s1 + $0x8] sm:$0xff]  ;;  %v699_v13 = vld [vmem:[%s8457_s21 + $0x10] sm:$0xff] }
  0x19   : > { %4653 = vmatpush.msk.msra.mxu0 %vm778_vm0, %v696_v5  ;;  %v700_v17 = vld [vmem:[%s8457_s21 + $0x18] sm:$0xff]  ;;  %v701_v21 = vld [vmem:[%s8457_s21 + $0x20] sm:$0xff]  ;;  %v702_v25 = vld [vmem:[%s8457_s21 + $0x28] sm:$0xff] }
  0x1a   : > { %4654 = vmatmul.msk.f32.vlgmr.msra.gmra.mxu0 %vm753_vm1, %v697_v4  ;;  %v703_v29 = vld [vmem:[%s8457_s21 + $0x30] sm:$0xff]  ;;  %v704_v33 = vld [vmem:[%s8457_s21 + $0x38] sm:$0xff]  ;;  %v1118_v35 = vld [vmem:[%s8432_s6 + $0x68] sm:$0xff] }
  0x1b   : > { %v1119_v34 = vld [vmem:[%s8432_s6 + $0x70] sm:$0xff]  ;;  %v1120_v36 = vld [vmem:[%s8432_s6 + $0x78] sm:$0xff]  ;;  %v1117_v39 = vld [vmem:[%s8432_s6 + $0x60] sm:$0xff] }
  0x1c   : > { %v1116_v37 = vld [vmem:[%s8432_s6 + $0x58] sm:$0xff]  ;;  %v1115_v38 = vld [vmem:[%s8432_s6 + $0x50] sm:$0xff]  ;;  %v1113_v40 = vld [vmem:[%s8432_s6 + $0x40] sm:$0xff] }
  0x1d   : > { %v1112_v41 = vld [vmem:[%s8432_s6 + $0x38] sm:$0xff]  ;;  %v1114_v42 = vld [vmem:[%s8432_s6 + $0x48] sm:$0xff]  ;;  %v1109_v44 = vld [vmem:[%s8432_s6 + $0x20] sm:$0xff] }
  0x1e   : > { %735 = vperm.xlu1 %4789, %v709_v6   ;;  %745 = vperm.xlu0 %4788, %v711_v7   ;;  %v1110_v43 = vld [vmem:[%s8432_s6 + $0x28] sm:$0xff]  ;;  %v1111_v45 = vld [vmem:[%s8432_s6 + $0x30] sm:$0xff]  ;;  %v1108_v48 = vld [vmem:[%s8432_s6 + $0x18] sm:$0xff] }
  0x1f   : > { %725 = vperm.xlu2 %4790, %v707_v8   ;;  %v1107_v46 = vld [vmem:[%s8432_s6 + $0x10] sm:$0xff]  ;;  %v1106_v47 = vld [vmem:[%s8432_s6 + $0x8] sm:$0xff]  ;;  %v1136_v49 = vld [vmem:[%s8432_s6 + $0xf8] sm:$0xff] }
  0x20   : > { %v1135_v50 = vld [vmem:[%s8432_s6 + $0xf0] sm:$0xff]  ;;  %v1105_v51 = vld [vmem:[%s8432_s6] sm:$0xff]  ;;  %v1132_v53 = vld [vmem:[%s8432_s6 + $0xd8] sm:$0xff] }
  0x21   : > { %v1133_v52 = vld [vmem:[%s8432_s6 + $0xe0] sm:$0xff]  ;;  %v1134_v54 = vld [vmem:[%s8432_s6 + $0xe8] sm:$0xff]  ;;  %v1131_v57 = vld [vmem:[%s8432_s6 + $0xd0] sm:$0xff] }
  0x22   : > { %4655 = vmatmul.msk.f32.gmra.mxu0 %vm753_vm1, %v698_v9  ;;  %v1130_v55 = vld [vmem:[%s8432_s6 + $0xc8] sm:$0xff]  ;;  %v1129_v56 = vld [vmem:[%s8432_s6 + $0xc0] sm:$0xff]  ;;  %v1127_v58 = vld [vmem:[%s8432_s6 + $0xb0] sm:$0xff] }
  0x23   : > { %v1126_v59 = vld [vmem:[%s8432_s6 + $0xa8] sm:$0xff]  ;;  %v1128_v60 = vld [vmem:[%s8432_s6 + $0xb8] sm:$0xff]  ;;  %v1123_v63 = vld [vmem:[%s8432_s6 + $0x90] sm:$0xff] }
  0x24   : > { %v1124_v62 = vld [vmem:[%s8432_s6 + $0x98] sm:$0xff]  ;;  %v1125_v0 = vld [vmem:[%s8432_s6 + $0xa0] sm:$0xff]  ;;  %v1122_v4 = vld [vmem:[%s8432_s6 + $0x88] sm:$0xff] }
  0x25   : > { %v1121_v2 = vld [vmem:[%s8432_s6 + $0x80] sm:$0xff]  ;;  %v1521_v3 = vld [vmem:[%s8434_s8 + $0x78] sm:$0xff]  ;;  %v1519_v6 = vld [vmem:[%s8434_s8 + $0x68] sm:$0xff] }
  0x26   : > { %715 = vperm.xlu1 %4789, %v705_v10   ;;  %720 = vperm.xlu0 %4788, %v706_v12   ;;  %v1518_v7 = vld [vmem:[%s8434_s8 + $0x60] sm:$0xff]  ;;  %v1520_v8 = vld [vmem:[%s8434_s8 + $0x70] sm:$0xff]  ;;  %v1517_v12 = vld [vmem:[%s8434_s8 + $0x58] sm:$0xff] }
  0x27   : > { %940 = vperm.xlu2 %4790, %v862_v11   ;;  %v1516_v10 = vld [vmem:[%s8434_s8 + $0x50] sm:$0xff]  ;;  %v1515_v11 = vld [vmem:[%s8434_s8 + $0x48] sm:$0xff] }
  0x2a   : > { %4656 = vmatmul.msk.f32.gmra.mxu0 %vm753_vm1, %v699_v13 }
  0x2e   : > { %930 = vperm.xlu1 %4789, %v860_v14   ;;  %935 = vperm.xlu0 %4788, %v861_v16   ;;  %v1513_v14 = vld [vmem:[%s8434_s8 + $0x38] sm:$0xff]  ;;  %v1514_v16 = vld [vmem:[%s8434_s8 + $0x40] sm:$0xff] }
  0x2f   : > { %925 = vperm.xlu2 %4790, %v859_v15   ;;  %v1512_v15 = vld [vmem:[%s8434_s8 + $0x30] sm:$0xff] }
  0x32   : > { %4657 = vmatmul.msk.f32.gmra.mxu0 %vm753_vm1, %v700_v17 }
  0x36   : > { %915 = vperm.xlu1 %4789, %v857_v18   ;;  %920 = vperm.xlu0 %4788, %v858_v20   ;;  %v1510_v18 = vld [vmem:[%s8434_s8 + $0x20] sm:$0xff]  ;;  %v1511_v20 = vld [vmem:[%s8434_s8 + $0x28] sm:$0xff] }
  0x37   : > { %910 = vperm.xlu2 %4790, %v856_v19   ;;  %v1509_v19 = vld [vmem:[%s8434_s8 + $0x18] sm:$0xff] }
  0x3a   : > { %4658 = vmatmul.msk.f32.gmra.mxu0 %vm753_vm1, %v701_v21 }
  0x3e   : > { %900 = vperm.xlu1 %4789, %v854_v22   ;;  %905 = vperm.xlu0 %4788, %v855_v24   ;;  %v1507_v24 = vld [vmem:[%s8434_s8 + $0x8] sm:$0xff] }
  0x3f   : > { %895 = vperm.xlu2 %4790, %v853_v23  }
  0x42   : > { %4659 = vmatmul.msk.f32.gmra.mxu0 %vm753_vm1, %v702_v25  ;;  %v1506_v25 = vld [vmem:[%s8434_s8] sm:$0xff] }
  0x46   : > { %885 = vperm.xlu1 %4789, %v851_v26   ;;  %890 = vperm.xlu0 %4788, %v852_v28   ;;  %v1508_v26 = vld [vmem:[%s8434_s8 + $0x10] sm:$0xff] }
  0x47   : > { %880 = vperm.xlu2 %4790, %v850_v27  }
  0x4a   : > { %4660 = vmatmul.msk.f32.gmra.mxu0 %vm753_vm1, %v703_v29 }
  0x4e   : > { %870 = vperm.xlu1 %4789, %v848_v30   ;;  %875 = vperm.xlu0 %4788, %v849_v32  }
  0x4f   : > { %865 = vperm.xlu2 %4790, %v847_v31   ;;  %v1537_v31 = vld [vmem:[%s8434_s8 + $0xf8] sm:$0xff] }
  0x52   : > { %4661 = vmatmul.msk.f32.gmra.mxu0 %vm753_vm1, %v704_v33 }
  0x56   : > { %1209 = vperm.xlu1 %4789, %v1119_v34   ;;  %1214 = vperm.xlu0 %4788, %v1120_v36   ;;  %v2244_v34 = vld [vmem:[%s8434_s8 + $0x1f0] sm:$0xff] }
  0x57   : > { %1204 = vperm.xlu2 %4790, %v1118_v35   ;;  %v2245_v35 = vld [vmem:[%s8434_s8 + $0x1f8] sm:$0xff] }
  0x5e   : > { %1194 = vperm.xlu1 %4789, %v1116_v37   ;;  %1199 = vperm.xlu0 %4788, %v1117_v39  }
  0x5f   : > { %1189 = vperm.xlu2 %4790, %v1115_v38  }
  0x66   : > { %1179 = vperm.xlu1 %4789, %v1113_v40   ;;  %1184 = vperm.xlu0 %4788, %v1114_v42  }
  0x67   : > { %1174 = vperm.xlu2 %4790, %v1112_v41  }
  0x6e   : > { %1164 = vperm.xlu1 %4789, %v1110_v43   ;;  %1169 = vperm.xlu0 %4788, %v1111_v45   ;;  %v2243_v43 = vld [vmem:[%s8434_s8 + $0x1e8] sm:$0xff] }
  0x6f   : > { %1159 = vperm.xlu2 %4790, %v1109_v44  }
  0x71   : > { %v731_v27 = vpop.permute.xlu2 %730 }
  0x76   : > { %1149 = vperm.xlu1 %4789, %v1107_v46   ;;  %1154 = vperm.xlu0 %4788, %v1108_v48   ;;  %v2242_v46 = vld [vmem:[%s8434_s8 + $0x1e0] sm:$0xff] }
  0x77   : > { %1144 = vperm.xlu2 %4790, %v1106_v47   ;;  %v1536_v47 = vld [vmem:[%s8434_s8 + $0xf0] sm:$0xff] }
  0x79   : > { %v726_v42 = vpop.permute.xlu2 %725 }
  0x7e   : > { %1294 = vperm.xlu1 %4789, %v1136_v49   ;;  %1139 = vperm.xlu0 %4788, %v1105_v51  }
  0x7f   : > { %1289 = vperm.xlu2 %4790, %v1135_v50  }
  0x86   : > { %1279 = vperm.xlu1 %4789, %v1133_v52   ;;  %1284 = vperm.xlu0 %4788, %v1134_v54  }
  0x87   : > { %1274 = vperm.xlu2 %4790, %v1132_v53  }
  0x88   : > { %v751_v21 = vpop.permute.xlu0 %750  ;;  %v741_v22 = vpop.permute.xlu1 %740 }
  0x8e   : > { %1264 = vperm.xlu1 %4789, %v1130_v55   ;;  %1269 = vperm.xlu0 %4788, %v1131_v57   ;;  %v1535_v57 = vld [vmem:[%s8434_s8 + $0xe8] sm:$0xff] }
  0x8f   : > { %1259 = vperm.xlu2 %4790, %v1129_v56   ;;  %v831_v56 = vld [vmem:[%s8429_s3] sm:$0xff] }
  0x90   : > { %v746_v29 = vpop.permute.xlu0 %745  ;;  %v736_v30 = vpop.permute.xlu1 %735 }
  0x96   : > { %1249 = vperm.xlu1 %4789, %v1127_v58   ;;  %1254 = vperm.xlu0 %4788, %v1128_v60   ;;  %v832_v58 = vld [vmem:[%s8429_s3 + $0x8] sm:$0xff]  ;;  %v834_v60 = vld [vmem:[%s8429_s3 + $0x18] sm:$0xff] }
  0x97   : > { %1244 = vperm.xlu2 %4790, %v1126_v59   ;;  %v5121_v61 = vpop.f32.mrf.mxu0  ;;  %v833_v59 = vld [vmem:[%s8429_s3 + $0x10] sm:$0xff] }
  0x98   : > { %v721_v48 = vpop.permute.xlu0 %720  ;;  %v716_v49 = vpop.permute.xlu1 %715 }
  0x99   : > { %v800_v52 = vadd.f32 %v5121_v61, %v716_v49  ;;  %v835_v61 = vld [vmem:[%s8429_s3 + $0x20] sm:$0xff] }
  0x9b   : > { %v823_v55 = vmax.f32 %v800_v52, 0.0 }
  0x9e   : > { %1234 = vperm.xlu1 %4789, %v1124_v62   ;;  %1239 = vperm.xlu0 %4788, %v1125_v0   ;;  %v836_v62 = vld [vmem:[%s8429_s3 + $0x28] sm:$0xff]  ;;  %v838_v0 = vld [vmem:[%s8429_s3 + $0x38] sm:$0xff] }
  0x9f   : > { %1229 = vperm.xlu2 %4790, %v1123_v63   ;;  %v5132_v1 = vpop.f32.mrf.mxu0  ;;  %v837_v63 = vld [vmem:[%s8429_s3 + $0x30] sm:$0xff] }
  0xa0   : > { %v803_v50 = vadd.f32 %v5132_v1, %v721_v48  ;;  %v839_v1 = vld [vmem:[%s8429_s3 + $0x40] sm:$0xff] }
  0xa2   : > { %v824_v54 = vmax.f32 %v803_v50, 0.0 }
  0xa6   : > { %1219 = vperm.xlu1 %4789, %v1121_v2   ;;  %1224 = vperm.xlu0 %4788, %v1122_v4   ;;  %v840_v2 = vld [vmem:[%s8429_s3 + $0x48] sm:$0xff]  ;;  %v842_v4 = vld [vmem:[%s8429_s3 + $0x58] sm:$0xff] }
  0xa7   : > { %1615 = vperm.xlu2 %4790, %v1521_v3   ;;  %v805_v5 = vpop.f32.mrf.mxu0  ;;  %v841_v3 = vld [vmem:[%s8429_s3 + $0x50] sm:$0xff] }
  0xa8   : > { %v806_v44 = vadd.f32 %v805_v5, %v726_v42  ;;  %v843_v5 = vld [vmem:[%s8429_s3 + $0x60] sm:$0xff] }
  0xaa   : > { %v825_v53 = vmax.f32 %v806_v44, 0.0 }
  0xae   : > { %1605 = vperm.xlu1 %4789, %v1519_v6   ;;  %1610 = vperm.xlu0 %4788, %v1520_v8   ;;  %v844_v6 = vld [vmem:[%s8429_s3 + $0x68] sm:$0xff]  ;;  %v846_v8 = vld [vmem:[%s8429_s3 + $0x78] sm:$0xff] }
  0xaf   : > { %1600 = vperm.xlu2 %4790, %v1518_v7   ;;  %v808_v9 = vpop.f32.mrf.mxu0  ;;  %v845_v7 = vld [vmem:[%s8429_s3 + $0x70] sm:$0xff] }
  0xb0   : > { %v809_v40 = vadd.f32 %v808_v9, %v731_v27 }
  0xb2   : > { %v826_v51 = vmax.f32 %v809_v40, 0.0 }
  0xb6   : > { %1590 = vperm.xlu1 %4789, %v1516_v10   ;;  %1595 = vperm.xlu0 %4788, %v1517_v12  }
  0xb7   : > { %1585 = vperm.xlu2 %4790, %v1515_v11   ;;  %v811_v13 = vpop.f32.mrf.mxu0 }
  0xb8   : > { %v812_v38 = vadd.f32 %v811_v13, %v736_v30 }
  0xba   : > { %v827_v45 = vmax.f32 %v812_v38, 0.0 }
  0xbe   : > { %1575 = vperm.xlu1 %4789, %v1513_v14   ;;  %1580 = vperm.xlu0 %4788, %v1514_v16  }
  0xbf   : > { %1570 = vperm.xlu2 %4790, %v1512_v15   ;;  %v814_v17 = vpop.f32.mrf.mxu0 }
  0xc0   : > { %v815_v37 = vadd.f32 %v814_v17, %v741_v22  ;;  %v941_v22 = vpop.permute.xlu2 %940 }
  0xc2   : > { %v828_v41 = vmax.f32 %v815_v37, 0.0 }
  0xc6   : > { %1560 = vperm.xlu1 %4789, %v1510_v18   ;;  %1565 = vperm.xlu0 %4788, %v1511_v20  }
  0xc7   : > { %1555 = vperm.xlu2 %4790, %v1509_v19   ;;  %v817_v23 = vpop.f32.mrf.mxu0 }
  0xc8   : > { %v818_v33 = vadd.f32 %v817_v23, %v746_v29  ;;  %v936_v23 = vpop.permute.xlu0 %935 }
  0xca   : > { %v829_v39 = vmax.f32 %v818_v33, 0.0 }
  0xce   : > { %1545 = vperm.xlu1 %4789, %v1507_v24   ;;  %1550 = vperm.xlu0 %4788, %v1508_v26   ;;  %v926_v26 = vpop.permute.xlu2 %925 }
  0xcf   : > { %1540 = vperm.xlu2 %4790, %v1506_v25   ;;  %v820_v28 = vpop.f32.mrf.mxu0  ;;  %v931_v25 = vpop.permute.xlu1 %930 }
  0xd0   : > { %v821_v32 = vadd.f32 %v820_v28, %v751_v21  ;;  %v921_v28 = vpop.permute.xlu0 %920 }
  0xd2   : > { %v830_v36 = vmax.f32 %v821_v32, 0.0 }
  0xd4   : > { %1000 = vmatpush.msra.mxu1 %v830_v36 }
  0xd6   : > { %1695 = vperm.xlu1 %4789, %v1537_v31   ;;  %2403 = vperm.xlu0 %4788, %v2245_v35   ;;  %v911_v30 = vpop.permute.xlu2 %910 }
  0xd7   : > { %2398 = vperm.xlu2 %4790, %v2244_v34   ;;  %1001 = vmatpush.msra.mxu1 %v829_v39  ;;  %v916_v29 = vpop.permute.xlu1 %915 }
  0xd8   : > { %v906_v36 = vpop.permute.xlu0 %905 }
  0xd9   : > { %1002 = vmatpush.msra.mxu1 %v828_v41 }
  0xdb   : > { %1003 = vmatpush.msra.mxu1 %v827_v45 }
  0xdd   : > { %1004 = vmatpush.msra.mxu1 %v826_v51 }
  0xde   : > { %2393 = vperm.xlu1 %4789, %v2243_v43   ;;  %1690 = vperm.xlu0 %4788, %v1536_v47   ;;  %v896_v42 = vpop.permute.xlu2 %895 }
  0xdf   : > { %2388 = vperm.xlu2 %4790, %v2242_v46   ;;  %1005 = vmatpush.msra.mxu1 %v825_v53  ;;  %v901_v39 = vpop.permute.xlu1 %900 }
  0xe0   : > { %v891_v49 = vpop.permute.xlu0 %890 }
  0xe1   : > { %1006 = vmatpush.msra.mxu1 %v824_v54 }
  0xe3   : > { %1007 = vmatpush.msra.mxu1 %v823_v55 }
  0xe4   : > { %4662 = vmatmul.msk.f32.vlgmr.msra.gmra.mxu1 %vm943_vm2, %v831_v56 }
  0xe6   : > { %1685 = vperm.xlu0 %4788, %v1535_v57   ;;  %v881_v55 = vpop.permute.xlu2 %880 }
  0xe7   : > { %v886_v52 = vpop.permute.xlu1 %885 }
  0xec   : > { %4663 = vmatmul.msk.f32.gmra.mxu1 %vm943_vm2, %v832_v58 }
  0xf4   : > { %4664 = vmatmul.msk.f32.gmra.mxu1 %vm943_vm2, %v833_v59 }
  0xfc   : > { %4665 = vmatmul.msk.f32.gmra.mxu1 %vm943_vm2, %v834_v60 }
 0x104   : > { %4666 = vmatmul.msk.f32.gmra.mxu1 %vm943_vm2, %v835_v61 }
 0x10c   : > { %4667 = vmatmul.msk.f32.gmra.mxu1 %vm943_vm2, %v836_v62  ;;  %v876_v62 = vpop.permute.xlu0 %875 }
 0x114   : > { %4668 = vmatmul.msk.f32.gmra.mxu1 %vm943_vm2, %v837_v63 }
 0x11c   : > { %4669 = vmatmul.msk.f32.gmra.mxu1 %vm943_vm2, %v838_v0 }
 0x124   : > { %4670 = vmatmul.msk.f32.gmra.mxu1 %vm943_vm2, %v839_v1  ;;  %v871_v1 = vpop.permute.xlu1 %870 }
 0x12c   : > { %4671 = vmatmul.msk.f32.gmra.mxu1 %vm943_vm2, %v840_v2 }
 0x134   : > { %4672 = vmatmul.msk.f32.gmra.mxu1 %vm943_vm2, %v841_v3 }
 0x13c   : > { %4673 = vmatmul.msk.f32.gmra.mxu1 %vm943_vm2, %v842_v4  ;;  %v866_v4 = vpop.permute.xlu2 %865 }
 0x144   : > { %4674 = vmatmul.msk.f32.gmra.mxu1 %vm943_vm2, %v843_v5 }
 0x14c   : > { %4675 = vmatmul.msk.f32.gmra.mxu1 %vm943_vm2, %v844_v6 }
 0x154   : > { %4676 = vmatmul.msk.f32.gmra.mxu1 %vm943_vm2, %v845_v7 }
 0x15c   : > { %4677 = vmatmul.msk.f32.gmra.mxu1 %vm943_vm2, %v846_v8 }
 0x161   : > { %v5275_v9 = vpop.f32.mrf.mxu1 }
 0x162   : > { %v1010_v5 = vadd.f32 %v5275_v9, %v866_v4  ;;  %v1075_v9 = vld [vmem:[%s8431_s5 + $0x10] sm:$0xff] }
 0x164   : > { %v1057_v8 = vmax.f32 %v1010_v5, 0.0 }
 0x169   : > { %v5277_v10 = vpop.f32.mrf.mxu1 }
 0x16a   : > { %v1013_v2 = vadd.f32 %v5277_v10, %v871_v1  ;;  %v1074_v10 = vld [vmem:[%s8431_s5 + $0x8] sm:$0xff] }
 0x16c   : > { %v1058_v7 = vmax.f32 %v1013_v2, 0.0 }
 0x171   : > { %v1015_v11 = vpop.f32.mrf.mxu1 }
 0x172   : > { %v1016_v63 = vadd.f32 %v1015_v11, %v876_v62  ;;  %v1073_v11 = vld [vmem:[%s8431_s5] sm:$0xff] }
 0x174   : > { %v1059_v6 = vmax.f32 %v1016_v63, 0.0 }
 0x179   : > { %v1018_v12 = vpop.f32.mrf.mxu1 }
 0x17a   : > { %v1019_v60 = vadd.f32 %v1018_v12, %v881_v55  ;;  %v1076_v12 = vld [vmem:[%s8431_s5 + $0x18] sm:$0xff]  ;;  %v1205_v55 = vpop.permute.xlu2 %1204 }
 0x17c   : > { %v1060_v3 = vmax.f32 %v1019_v60, 0.0  ;;  %v1104_v60 = vld [vmem:[%s8431_s5 + $0xf8] sm:$0xff] }
 0x181   : > { %v1021_v13 = vpop.f32.mrf.mxu1 }
 0x182   : > { %v1022_v58 = vadd.f32 %v1021_v13, %v886_v52  ;;  %v1077_v13 = vld [vmem:[%s8431_s5 + $0x20] sm:$0xff]  ;;  %v1102_v52 = vld [vmem:[%s8431_s5 + $0xe8] sm:$0xff] }
 0x184   : > { %v1061_v0 = vmax.f32 %v1022_v58, 0.0 }
 0x189   : > { %v1024_v14 = vpop.f32.mrf.mxu1 }
 0x18a   : > { %v1025_v56 = vadd.f32 %v1024_v14, %v891_v49  ;;  %v1078_v14 = vld [vmem:[%s8431_s5 + $0x28] sm:$0xff]  ;;  %v1101_v49 = vld [vmem:[%s8431_s5 + $0xe0] sm:$0xff] }
 0x18c   : > { %v1062_v61 = vmax.f32 %v1025_v56, 0.0  ;;  %v1103_v56 = vld [vmem:[%s8431_s5 + $0xf0] sm:$0xff] }
 0x191   : > { %v1027_v15 = vpop.f32.mrf.mxu1 }
 0x192   : > { %v1028_v53 = vadd.f32 %v1027_v15, %v896_v42  ;;  %v1079_v15 = vld [vmem:[%s8431_s5 + $0x30] sm:$0xff] }
 0x194   : > { %v1063_v59 = vmax.f32 %v1028_v53, 0.0  ;;  %v1210_v53 = vpop.permute.xlu1 %1209 }
 0x199   : > { %v1030_v16 = vpop.f32.mrf.mxu1 }
 0x19a   : > { %v1031_v50 = vadd.f32 %v1030_v16, %v901_v39  ;;  %v1080_v16 = vld [vmem:[%s8431_s5 + $0x38] sm:$0xff] }
 0x19b   : > { %v1096_v39 = vld [vmem:[%s8431_s5 + $0xb8] sm:$0xff] }
 0x19c   : > { %v1064_v57 = vmax.f32 %v1031_v50, 0.0 }
 0x1a1   : > { %v1033_v17 = vpop.f32.mrf.mxu1 }
 0x1a2   : > { %v1034_v47 = vadd.f32 %v1033_v17, %v906_v36  ;;  %v1081_v17 = vld [vmem:[%s8431_s5 + $0x40] sm:$0xff] }
 0x1a4   : > { %v1065_v54 = vmax.f32 %v1034_v47, 0.0  ;;  %v1100_v47 = vld [vmem:[%s8431_s5 + $0xd8] sm:$0xff] }
 0x1a9   : > { %v1036_v18 = vpop.f32.mrf.mxu1 }
 0x1aa   : > { %v1037_v45 = vadd.f32 %v1036_v18, %v911_v30  ;;  %v1082_v18 = vld [vmem:[%s8431_s5 + $0x48] sm:$0xff] }
 0x1ac   : > { %v1066_v51 = vmax.f32 %v1037_v45, 0.0  ;;  %v1099_v45 = vld [vmem:[%s8431_s5 + $0xd0] sm:$0xff] }
 0x1b1   : > { %v1039_v19 = vpop.f32.mrf.mxu1 }
 0x1b2   : > { %v1040_v43 = vadd.f32 %v1039_v19, %v916_v29  ;;  %v1083_v19 = vld [vmem:[%s8431_s5 + $0x50] sm:$0xff] }
 0x1b3   : > { %v1091_v29 = vld [vmem:[%s8431_s5 + $0x90] sm:$0xff] }
 0x1b4   : > { %v1067_v48 = vmax.f32 %v1040_v43, 0.0  ;;  %v1098_v43 = vld [vmem:[%s8431_s5 + $0xc8] sm:$0xff] }
 0x1b9   : > { %v1042_v20 = vpop.f32.mrf.mxu1 }
 0x1ba   : > { %v1043_v40 = vadd.f32 %v1042_v20, %v921_v28  ;;  %v1084_v20 = vld [vmem:[%s8431_s5 + $0x58] sm:$0xff] }
 0x1bc   : > { %v1068_v46 = vmax.f32 %v1043_v40, 0.0 }
 0x1c1   : > { %v1045_v21 = vpop.f32.mrf.mxu1 }
 0x1c2   : > { %v1046_v37 = vadd.f32 %v1045_v21, %v926_v26  ;;  %v1085_v21 = vld [vmem:[%s8431_s5 + $0x60] sm:$0xff] }
 0x1c4   : > { %v1069_v44 = vmax.f32 %v1046_v37, 0.0  ;;  %v1095_v37 = vld [vmem:[%s8431_s5 + $0xb0] sm:$0xff] }
 0x1c9   : > { %v1048_v24 = vpop.f32.mrf.mxu1 }
 0x1ca   : > { %v1049_v34 = vadd.f32 %v1048_v24, %v931_v25  ;;  %v1088_v24 = vld [vmem:[%s8431_s5 + $0x78] sm:$0xff]  ;;  %v1089_v25 = vld [vmem:[%s8431_s5 + $0x80] sm:$0xff] }
 0x1cc   : > { %v1070_v41 = vmax.f32 %v1049_v34, 0.0 }
 0x1d1   : > { %v1051_v27 = vpop.f32.mrf.mxu1 }
 0x1d2   : > { %v1052_v32 = vadd.f32 %v1051_v27, %v936_v23  ;;  %v1087_v23 = vld [vmem:[%s8431_s5 + $0x70] sm:$0xff]  ;;  %v1090_v27 = vld [vmem:[%s8431_s5 + $0x88] sm:$0xff] }
 0x1d4   : > { %v1071_v38 = vmax.f32 %v1052_v32, 0.0 }
 0x1d9   : > { %v1054_v31 = vpop.f32.mrf.mxu1 }
 0x1da   : > { %v1055_v33 = vadd.f32 %v1054_v31, %v941_v22  ;;  %v1086_v22 = vld [vmem:[%s8431_s5 + $0x68] sm:$0xff]  ;;  %v1092_v31 = vld [vmem:[%s8431_s5 + $0x98] sm:$0xff] }
 0x1dc   : > { %v1072_v35 = vmax.f32 %v1055_v33, 0.0  ;;  %v1093_v33 = vld [vmem:[%s8431_s5 + $0xa0] sm:$0xff] }
 0x1de   : > { %1297 = vmatpush.msra.mxu2 %v1072_v35  ;;  %v1094_v35 = vld [vmem:[%s8431_s5 + $0xa8] sm:$0xff] }
 0x1e0   : > { %1298 = vmatpush.msra.mxu2 %v1071_v38 }
 0x1e2   : > { %1299 = vmatpush.msra.mxu2 %v1070_v41  ;;  %v1097_v41 = vld [vmem:[%s8431_s5 + $0xc0] sm:$0xff] }
 0x1e4   : > { %1300 = vmatpush.msra.mxu2 %v1069_v44 }
 0x1e6   : > { %1301 = vmatpush.msra.mxu2 %v1068_v46 }
 0x1e8   : > { %1302 = vmatpush.msra.mxu2 %v1067_v48 }
 0x1ea   : > { %1303 = vmatpush.msra.mxu2 %v1066_v51  ;;  %v1215_v51 = vpop.permute.xlu0 %1214 }
 0x1ec   : > { %1304 = vmatpush.msra.mxu2 %v1065_v54 }
 0x1ee   : > { %1305 = vmatpush.msra.mxu2 %v1064_v57 }
 0x1f0   : > { %1306 = vmatpush.msra.mxu2 %v1063_v59  ;;  %v1195_v59 = vpop.permute.xlu1 %1194 }
 0x1f2   : > { %1307 = vmatpush.msra.mxu2 %v1062_v61  ;;  %v1200_v57 = vpop.permute.xlu0 %1199  ;;  %v1190_v61 = vpop.permute.xlu2 %1189 }
 0x1f4   : > { %1308 = vmatpush.msra.mxu2 %v1061_v0 }
 0x1f6   : > { %1309 = vmatpush.msra.mxu2 %v1060_v3 }
 0x1f8   : > { %1310 = vmatpush.msra.mxu2 %v1059_v6  ;;  %v1180_v4 = vpop.permute.xlu1 %1179 }
 0x1fa   : > { %1311 = vmatpush.msra.mxu2 %v1058_v7  ;;  %v1185_v62 = vpop.permute.xlu0 %1184  ;;  %v1175_v7 = vpop.permute.xlu2 %1174 }
 0x1fc   : > { %1312 = vmatpush.msra.mxu2 %v1057_v8 }
 0x1fd   : > { %1313 = vmatmul.f32.vlgmr.msra.gmra.mxu2 %v1073_v11 }
 0x205   : > { %1316 = vmatmul.f32.gmra.mxu2 %v1074_v10  ;;  %v1170_v10 = vpop.permute.xlu0 %1169 }
 0x20d   : > { %1319 = vmatmul.f32.gmra.mxu2 %v1075_v9 }
 0x215   : > { %1322 = vmatmul.f32.gmra.mxu2 %v1076_v12 }
 0x21d   : > { %1325 = vmatmul.f32.gmra.mxu2 %v1077_v13 }
 0x225   : > { %1328 = vmatmul.f32.gmra.mxu2 %v1078_v14 }
 0x22d   : > { %1331 = vmatmul.f32.gmra.mxu2 %v1079_v15 }
 0x235   : > { %1334 = vmatmul.f32.gmra.mxu2 %v1080_v16 }
 0x23d   : > { %1337 = vmatmul.f32.gmra.mxu2 %v1081_v17 }
 0x245   : > { %1340 = vmatmul.f32.gmra.mxu2 %v1082_v18  ;;  %v1165_v18 = vpop.permute.xlu1 %1164 }
 0x24d   : > { %1343 = vmatmul.f32.gmra.mxu2 %v1083_v19 }
 0x255   : > { %1346 = vmatmul.f32.gmra.mxu2 %v1084_v20 }
 0x25d   : > { %1349 = vmatmul.f32.gmra.mxu2 %v1085_v21  ;;  %v1160_v21 = vpop.permute.xlu2 %1159 }
 0x265   : > { %1352 = vmatmul.f32.gmra.mxu2 %v1086_v22 }
 0x26d   : > { %1355 = vmatmul.f32.gmra.mxu2 %v1087_v23 }
 0x275   : > { %1358 = vmatmul.f32.gmra.mxu2 %v1088_v24 }
 0x27d   : > { %1361 = vmatmul.f32.gmra.mxu2 %v1089_v25  ;;  %v1155_v25 = vpop.permute.xlu0 %1154 }
 0x280   : > { %v5332_v26 = vpop.f32.mrf.mxu2 }
 0x285   : > { %1364 = vmatmul.f32.gmra.mxu2 %v1090_v27 }
 0x288   : > { %v5337_v28 = vpop.f32.mrf.mxu2 }
 0x28d   : > { %1367 = vmatmul.f32.gmra.mxu2 %v1091_v29 }
 0x290   : > { %v5342_v30 = vpop.f32.mrf.mxu2 }
 0x295   : > { %1370 = vmatmul.f32.gmra.mxu2 %v1092_v31 }
 0x298   : > { %v5347_v32 = vpop.f32.mrf.mxu2 }
 0x29d   : > { %1373 = vmatmul.f32.gmra.mxu2 %v1093_v33 }
 0x2a0   : > { %v5352_v34 = vpop.f32.mrf.mxu2 }
 0x2a1   : > { %v1327_v31 = vadd.f32 %v5352_v34, %v1160_v21 }
 0x2a5   : > { %1376 = vmatmul.f32.gmra.mxu2 %v1094_v35  ;;  %v1324_v35 = vadd.f32 %v5347_v32, %v1155_v25  ;;  %v1145_v32 = vpop.permute.xlu2 %1144 }
 0x2a8   : > { %v5357_v36 = vpop.f32.mrf.mxu2 }
 0x2a9   : > { %v1330_v27 = vadd.f32 %v5357_v36, %v1165_v18 }
 0x2ab   : > { %v5449_v36 = vmax.f32 %v1330_v27, 0.0  ;;  %v1480_v27 = vld [vmem:[%s8433_s7 + $0x130] sm:$0xff] }
 0x2ad   : > { %1379 = vmatmul.f32.gmra.mxu2 %v1095_v37  ;;  %v1150_v37 = vpop.permute.xlu1 %1149 }
 0x2b0   : > { %v5362_v38 = vpop.f32.mrf.mxu2 }
 0x2b1   : > { %v1333_v23 = vadd.f32 %v5362_v38, %v1170_v10  ;;  %v1321_v38 = vadd.f32 %v5342_v30, %v1150_v37 }
 0x2b3   : > { %v5443_v33 = vmax.f32 %v1333_v23, 0.0 }
 0x2b5   : > { %1382 = vmatmul.f32.gmra.mxu2 %v1096_v39  ;;  %v5457_v39 = vmax.f32 %v1327_v31, 0.0  ;;  %v1295_v10 = vpop.permute.xlu1 %1294 }
 0x2b8   : > { %v5367_v40 = vpop.f32.mrf.mxu2 }
 0x2b9   : > { %v1336_v19 = vadd.f32 %v5367_v40, %v1175_v7  ;;  %v1318_v40 = vadd.f32 %v5337_v28, %v1145_v32  ;;  %v1474_v7 = vld [vmem:[%s8433_s7 + $0x100] sm:$0xff] }
 0x2bb   : > { %v5437_v29 = vmax.f32 %v1336_v19, 0.0  ;;  %v5474_v28 = vmax.f32 %v1318_v40, 0.0  ;;  %v1478_v19 = vld [vmem:[%s8433_s7 + $0x120] sm:$0xff] }
 0x2bc   : > { %v1482_v40 = vld [vmem:[%s8433_s7 + $0x140] sm:$0xff] }
 0x2bd   : > { %1385 = vmatmul.f32.gmra.mxu2 %v1097_v41  ;;  %v5463_v41 = vmax.f32 %v1324_v35, 0.0  ;;  %v1280_v21 = vpop.permute.xlu1 %1279 }
 0x2c0   : > { %v1338_v42 = vpop.f32.mrf.mxu2 }
 0x2c1   : > { %v1339_v16 = vadd.f32 %v1338_v42, %v1180_v4  ;;  %v1140_v42 = vpop.permute.xlu0 %1139  ;;  %v1472_v4 = vld [vmem:[%s8433_s7 + $0xf0] sm:$0xff] }
 0x2c2   : > { %v1315_v30 = vadd.f32 %v5332_v26, %v1140_v42  ;;  %v1442_v26 = vld [vmem:[%s8433_s7] sm:$0xff] }
 0x2c3   : > { %v5431_v24 = vmax.f32 %v1339_v16, 0.0 }
 0x2c5   : > { %1388 = vmatmul.f32.gmra.mxu2 %v1098_v43  ;;  %v5469_v43 = vmax.f32 %v1321_v38, 0.0  ;;  %v1265_v35 = vpop.permute.xlu1 %1264 }
 0x2c8   : > { %v1341_v44 = vpop.f32.mrf.mxu2 }
 0x2c9   : > { %v1342_v14 = vadd.f32 %v1341_v44, %v1185_v62  ;;  %v1285_v18 = vpop.permute.xlu0 %1284 }
 0x2cb   : > { %v5423_v20 = vmax.f32 %v1342_v14, 0.0  ;;  %v1290_v14 = vpop.permute.xlu2 %1289 }
 0x2cd   : > { %1391 = vmatmul.f32.gmra.mxu2 %v1099_v45  ;;  %v5481_v45 = vmax.f32 %v1315_v30, 0.0 }
 0x2d0   : > { %v1344_v46 = vpop.f32.mrf.mxu2 }
 0x2d1   : > { %v1345_v12 = vadd.f32 %v1344_v46, %v1190_v61  ;;  %v1450_v46 = vld [vmem:[%s8433_s7 + $0x40] sm:$0xff]  ;;  %v1270_v31 = vpop.permute.xlu0 %1269 }
 0x2d2   : > { %v1466_v61 = vld [vmem:[%s8433_s7 + $0xc0] sm:$0xff] }
 0x2d3   : > { %v5417_v17 = vmax.f32 %v1345_v12, 0.0  ;;  %v1476_v12 = vld [vmem:[%s8433_s7 + $0x110] sm:$0xff]  ;;  %v1275_v25 = vpop.permute.xlu2 %1274 }
 0x2d5   : > { %1394 = vmatmul.f32.gmra.mxu2 %v1100_v47  ;;  %v1458_v47 = vld [vmem:[%s8433_s7 + $0x80] sm:$0xff] }
 0x2d8   : > { %v1347_v48 = vpop.f32.mrf.mxu2 }
 0x2d9   : > { %v1348_v8 = vadd.f32 %v1347_v48, %v1195_v59  ;;  %v1464_v59 = vld [vmem:[%s8433_s7 + $0xb0] sm:$0xff] }
 0x2db   : > { %v5412_v15 = vmax.f32 %v1348_v8, 0.0 }
 0x2dd   : > { %1397 = vmatmul.f32.gmra.mxu2 %v1101_v49  ;;  %v1444_v49 = vld [vmem:[%s8433_s7 + $0x10] sm:$0xff] }
 0x2e0   : > { %v1350_v50 = vpop.f32.mrf.mxu2 }
 0x2e1   : > { %v1351_v5 = vadd.f32 %v1350_v50, %v1200_v57  ;;  %v1452_v50 = vld [vmem:[%s8433_s7 + $0x50] sm:$0xff] }
 0x2e2   : > { %v1448_v57 = vld [vmem:[%s8433_s7 + $0x30] sm:$0xff] }
 0x2e3   : > { %v5407_v13 = vmax.f32 %v1351_v5, 0.0 }
 0x2e5   : > { %1400 = vmatmul.f32.gmra.mxu2 %v1102_v52 }
 0x2e8   : > { %v1353_v54 = vpop.f32.mrf.mxu2 }
 0x2e9   : > { %v1354_v2 = vadd.f32 %v1353_v54, %v1205_v55  ;;  %v1454_v54 = vld [vmem:[%s8433_s7 + $0x60] sm:$0xff] }
 0x2ea   : > { %v1462_v55 = vld [vmem:[%s8433_s7 + $0xa0] sm:$0xff] }
 0x2eb   : > { %v5400_v11 = vmax.f32 %v1354_v2, 0.0 }
 0x2ed   : > { %1403 = vmatmul.f32.gmra.mxu2 %v1103_v56 }
 0x2f0   : > { %v1356_v58 = vpop.f32.mrf.mxu2 }
 0x2f1   : > { %v1357_v0 = vadd.f32 %v1356_v58, %v1210_v53  ;;  %v1446_v53 = vld [vmem:[%s8433_s7 + $0x20] sm:$0xff]  ;;  %v1456_v58 = vld [vmem:[%s8433_s7 + $0x70] sm:$0xff] }
 0x2f3   : > { %v5395_v6 = vmax.f32 %v1357_v0, 0.0 }
 0x2f5   : > { %1406 = vmatmul.f32.gmra.mxu2 %v1104_v60 }
 0x2f8   : > { %v1359_v63 = vpop.f32.mrf.mxu2 }
 0x2f9   : > { %v1360_v1 = vadd.f32 %v1359_v63, %v1215_v51  ;;  %v1460_v51 = vld [vmem:[%s8433_s7 + $0x90] sm:$0xff] }
 0x2fa   : > { %v1468_v63 = vld [vmem:[%s8433_s7 + $0xd0] sm:$0xff] }
 0x2fb   : > { %v5393_v3 = vmax.f32 %v1360_v1, 0.0  ;;  %v1470_v1 = vld [vmem:[%s8433_s7 + $0xe0] sm:$0xff] }
 0x2fd   : > { %1698 = vmatpush.msrb.mxu0 %v5393_v3  ;;  %4682 = vmatpush.msrb.mxu2 %v5393_v3 }
 0x2fe   : > { %4683 = vmatpush.msra.mxu3 %v5393_v3 }
 0x2ff   : > { %1699 = vmatpush.msrb.mxu0 %v5395_v6  ;;  %4684 = vmatpush.msrb.mxu2 %v5395_v6 }
 0x300   : > { %4685 = vmatpush.msra.mxu3 %v5395_v6  ;;  %v5405_v9 = vpop.f32.mrf.mxu2 }
 0x301   : > { %1700 = vmatpush.msrb.mxu0 %v5400_v11  ;;  %4686 = vmatpush.msrb.mxu2 %v5400_v11 }
 0x302   : > { %4687 = vmatpush.msra.mxu3 %v5400_v11 }
 0x303   : > { %1701 = vmatpush.msrb.mxu0 %v5407_v13  ;;  %4688 = vmatpush.msrb.mxu2 %v5407_v13 }
 0x304   : > { %4689 = vmatpush.msra.mxu3 %v5407_v13 }
 0x305   : > { %1702 = vmatpush.msrb.mxu0 %v5412_v15  ;;  %4690 = vmatpush.msrb.mxu2 %v5412_v15 }
 0x306   : > { %4691 = vmatpush.msra.mxu3 %v5412_v15 }
 0x307   : > { %1703 = vmatpush.msrb.mxu0 %v5417_v17  ;;  %4692 = vmatpush.msrb.mxu2 %v5417_v17 }
 0x308   : > { %4693 = vmatpush.msra.mxu3 %v5417_v17  ;;  %v5428_v22 = vpop.f32.mrf.mxu2 }
 0x309   : > { %1704 = vmatpush.msrb.mxu0 %v5423_v20  ;;  %4694 = vmatpush.msrb.mxu2 %v5423_v20 }
 0x30a   : > { %4695 = vmatpush.msra.mxu3 %v5423_v20 }
 0x30b   : > { %1705 = vmatpush.msrb.mxu0 %v5431_v24  ;;  %4696 = vmatpush.msrb.mxu2 %v5431_v24 }
 0x30c   : > { %4697 = vmatpush.msra.mxu3 %v5431_v24 }
 0x30d   : > { %1706 = vmatpush.msrb.mxu0 %v5437_v29  ;;  %4698 = vmatpush.msrb.mxu2 %v5437_v29 }
 0x30e   : > { %4699 = vmatpush.msra.mxu3 %v5437_v29 }
 0x30f   : > { %1707 = vmatpush.msrb.mxu0 %v5443_v33  ;;  %4700 = vmatpush.msrb.mxu2 %v5443_v33 }
 0x310   : > { %4701 = vmatpush.msra.mxu3 %v5443_v33  ;;  %v5454_v34 = vpop.f32.mrf.mxu2 }
 0x311   : > { %1708 = vmatpush.msrb.mxu0 %v5449_v36  ;;  %4702 = vmatpush.msrb.mxu2 %v5449_v36 }
 0x312   : > { %4703 = vmatpush.msra.mxu3 %v5449_v36 }
 0x313   : > { %1709 = vmatpush.msrb.mxu0 %v5457_v39  ;;  %4704 = vmatpush.msrb.mxu2 %v5457_v39 }
 0x314   : > { %4705 = vmatpush.msra.mxu3 %v5457_v39 }
 0x315   : > { %1710 = vmatpush.msrb.mxu0 %v5463_v41  ;;  %4706 = vmatpush.msrb.mxu2 %v5463_v41 }
 0x316   : > { %4707 = vmatpush.msra.mxu3 %v5463_v41 }
 0x317   : > { %1711 = vmatpush.msrb.mxu0 %v5469_v43  ;;  %4708 = vmatpush.msrb.mxu2 %v5469_v43 }
 0x318   : > { %4709 = vmatpush.msra.mxu3 %v5469_v43  ;;  %v5479_v44 = vpop.f32.mrf.mxu2 }
 0x319   : > { %1712 = vmatpush.msrb.mxu0 %v5474_v28  ;;  %4710 = vmatpush.msrb.mxu2 %v5474_v28 }
 0x31a   : > { %4711 = vmatpush.msra.mxu3 %v5474_v28 }
 0x31b   : > { %1713 = vmatpush.msrb.mxu0 %v5481_v45  ;;  %4712 = vmatpush.msrb.mxu2 %v5481_v45 }
 0x31c   : > { %4713 = vmatpush.msra.mxu3 %v5481_v45  ;;  %1714 = vmatmul.f32.vlgmr.msrb.gmra.mxu0 %v1442_v26  ;;  %v1260_v26 = vpop.permute.xlu2 %1259 }
 0x31d   : > { %1726 = vmatmul.f32.vlgmr.msrb.gmra.mxu2 %v1450_v46  ;;  %1738 = vmatmul.f32.vlgmr.msra.gmra.mxu3 %v1458_v47 }
 0x320   : > { %v5498_v48 = vpop.f32.mrf.mxu2 }
 0x324   : > { %1717 = vmatmul.f32.gmra.mxu0 %v1444_v49  ;;  %v1255_v49 = vpop.permute.xlu0 %1254 }
 0x325   : > { %1729 = vmatmul.f32.gmra.mxu2 %v1452_v50  ;;  %1741 = vmatmul.f32.gmra.mxu3 %v1460_v51 }
 0x328   : > { %v5509_v52 = vpop.f32.mrf.mxu2 }
 0x32c   : > { %1720 = vmatmul.f32.gmra.mxu0 %v1446_v53  ;;  %v1250_v53 = vpop.permute.xlu1 %1249 }
 0x32d   : > { %1732 = vmatmul.f32.gmra.mxu2 %v1454_v54  ;;  %1744 = vmatmul.f32.gmra.mxu3 %v1462_v55 }
 0x330   : > { %v5520_v56 = vpop.f32.mrf.mxu2 }
 0x334   : > { %1723 = vmatmul.f32.gmra.mxu0 %v1448_v57  ;;  %v1484_v57 = vld [vmem:[%s8433_s7 + $0x150] sm:$0xff] }
 0x335   : > { %1735 = vmatmul.f32.gmra.mxu2 %v1456_v58  ;;  %1747 = vmatmul.f32.gmra.mxu3 %v1464_v59 }
 0x338   : > { %v5531_v60 = vpop.f32.mrf.mxu2 }
 0x33d   : > { %1750 = vmatmul.f32.gmra.mxu3 %v1466_v61 }
 0x340   : > { %v1386_v62 = vpop.f32.mrf.mxu2 }
 0x341   : > { %v1387_v61 = vadd.f32 %v1386_v62, %v1260_v26  ;;  %v1486_v62 = vld [vmem:[%s8433_s7 + $0x160] sm:$0xff] }
 0x345   : > { %1753 = vmatmul.f32.gmra.mxu3 %v1468_v63 }
 0x348   : > { %v1389_v0 = vpop.f32.mrf.mxu2 }
 0x349   : > { %v1390_v58 = vadd.f32 %v1389_v0, %v1265_v35  ;;  %v1235_v0 = vpop.permute.xlu1 %1234 }
 0x34d   : > { %1756 = vmatmul.f32.gmra.mxu3 %v1470_v1  ;;  %v1245_v1 = vpop.permute.xlu2 %1244 }
 0x350   : > { %v1392_v2 = vpop.f32.mrf.mxu2 }
 0x351   : > { %v1393_v54 = vadd.f32 %v1392_v2, %v1270_v31  ;;  %v1435_v2 = vmax.f32 %v1390_v58, 0.0 }
 0x353   : > { %v1436_v63 = vmax.f32 %v1393_v54, 0.0 }
 0x355   : > { %1759 = vmatmul.f32.gmra.mxu3 %v1472_v4  ;;  %v1384_v4 = vadd.f32 %v5531_v60, %v1255_v49 }
 0x358   : > { %v1395_v5 = vpop.f32.mrf.mxu2 }
 0x359   : > { %v1396_v50 = vadd.f32 %v1395_v5, %v1275_v25  ;;  %v1240_v5 = vpop.permute.xlu0 %1239 }
 0x35a   : > { %v1375_v60 = vadd.f32 %v5498_v48, %v1240_v5  ;;  %v1488_v48 = vld [vmem:[%s8433_s7 + $0x170] sm:$0xff] }
 0x35b   : > { %v1437_v59 = vmax.f32 %v1396_v50, 0.0 }
 0x35d   : > { %1762 = vmatmul.f32.gmra.mxu3 %v1474_v7  ;;  %v1381_v7 = vadd.f32 %v5520_v56, %v1250_v53  ;;  %v1372_v56 = vadd.f32 %v5479_v44, %v1235_v0 }
 0x35f   : > { %v1429_v25 = vmax.f32 %v1372_v56, 0.0  ;;  %v1477_v56 = vld [vmem:[%s8433_s7 + $0x118] sm:$0xff] }
 0x360   : > { %v1398_v8 = vpop.f32.mrf.mxu2 }
 0x361   : > { %v1399_v46 = vadd.f32 %v1398_v8, %v1280_v21  ;;  %v1434_v8 = vmax.f32 %v1387_v61, 0.0  ;;  %v1430_v21 = vmax.f32 %v1375_v60, 0.0 }
 0x363   : > { %v1438_v55 = vmax.f32 %v1399_v46, 0.0  ;;  %v1467_v46 = vld [vmem:[%s8433_s7 + $0xc8] sm:$0xff] }
 0x365   : > { %1765 = vmatmul.f32.gmra.mxu3 %v1476_v12  ;;  %v1433_v12 = vmax.f32 %v1384_v4, 0.0 }
 0x368   : > { %v1401_v16 = vpop.f32.mrf.mxu2 }
 0x369   : > { %v1402_v42 = vadd.f32 %v1401_v16, %v1285_v18  ;;  %v1230_v18 = vpop.permute.xlu2 %1229 }
 0x36b   : > { %v1439_v51 = vmax.f32 %v1402_v42, 0.0 }
 0x36d   : > { %1768 = vmatmul.f32.gmra.mxu3 %v1478_v19  ;;  %v1369_v19 = vadd.f32 %v5454_v34, %v1230_v18 }
 0x36f   : > { %v1428_v31 = vmax.f32 %v1369_v19, 0.0 }
 0x370   : > { %v1404_v23 = vpop.f32.mrf.mxu2 }
 0x371   : > { %v1405_v38 = vadd.f32 %v1404_v23, %v1290_v14  ;;  %v1432_v14 = vmax.f32 %v1381_v7, 0.0 }
 0x373   : > { %v1440_v47 = vmax.f32 %v1405_v38, 0.0  ;;  %v1492_v38 = vld [vmem:[%s8433_s7 + $0x190] sm:$0xff] }
 0x375   : > { %1771 = vmatmul.f32.gmra.mxu3 %v1480_v27  ;;  %v1220_v27 = vpop.permute.xlu1 %1219 }
 0x376   : > { %v1363_v44 = vadd.f32 %v5405_v9, %v1220_v27  ;;  %v1445_v9 = vld [vmem:[%s8433_s7 + $0x18] sm:$0xff] }
 0x378   : > { %v1407_v37 = vpop.f32.mrf.mxu2  ;;  %v1426_v35 = vmax.f32 %v1363_v44, 0.0 }
 0x379   : > { %v1408_v32 = vadd.f32 %v1407_v37, %v1295_v10  ;;  %v1378_v10 = vadd.f32 %v5509_v52, %v1245_v1  ;;  %v1225_v52 = vpop.permute.xlu0 %1224  ;;  %v1443_v37 = vld [vmem:[%s8433_s7 + $0x8] sm:$0xff] }
 0x37a   : > { %v1366_v23 = vadd.f32 %v5428_v22, %v1225_v52  ;;  %v1490_v22 = vld [vmem:[%s8433_s7 + $0x180] sm:$0xff] }
 0x37b   : > { %v1441_v30 = vmax.f32 %v1408_v32, 0.0  ;;  %v1431_v16 = vmax.f32 %v1378_v10, 0.0 }
 0x37c   : > { %v1427_v34 = vmax.f32 %v1366_v23, 0.0  ;;  %v1479_v23 = vld [vmem:[%s8433_s7 + $0x128] sm:$0xff] }
 0x37d   : > { %1774 = vmatmul.f32.gmra.mxu3 %v1482_v40  ;;  %1811 = vmatpush.msra.mxu0 %v1441_v30  ;;  %v1465_v40 = vld [vmem:[%s8433_s7 + $0xb8] sm:$0xff] }
 0x37e   : > { %2519 = vmatpush.msra.mxu2 %v1441_v30  ;;  %v5657_v30 = vpop.permute.xlu1 %1605 }
 0x37f   : > { %1812 = vmatpush.msra.mxu0 %v1440_v47 }
 0x380   : > { %2520 = vmatpush.msra.mxu2 %v1440_v47 }
 0x381   : > { %1813 = vmatpush.msra.mxu0 %v1439_v51  ;;  %v5664_v49 = vpop.permute.xlu0 %1610 }
 0x382   : > { %2521 = vmatpush.msra.mxu2 %v1439_v51  ;;  %v1469_v51 = vld [vmem:[%s8433_s7 + $0xd8] sm:$0xff] }
 0x383   : > { %1814 = vmatpush.msra.mxu0 %v1438_v55 }
 0x384   : > { %2522 = vmatpush.msra.mxu2 %v1438_v55 }
 0x385   : > { %1777 = vmatmul.f32.gmra.mxu3 %v1484_v57  ;;  %1815 = vmatpush.msra.mxu0 %v1437_v59  ;;  %v1471_v57 = vld [vmem:[%s8433_s7 + $0xe8] sm:$0xff] }
 0x386   : > { %2523 = vmatpush.msra.mxu2 %v1437_v59  ;;  %v5666_v50 = vpop.permute.xlu1 %1590 }
 0x387   : > { %1816 = vmatpush.msra.mxu0 %v1436_v63 }
 0x388   : > { %2524 = vmatpush.msra.mxu2 %v1436_v63  ;;  %v1473_v63 = vld [vmem:[%s8433_s7 + $0xf8] sm:$0xff] }
 0x389   : > { %1817 = vmatpush.msra.mxu0 %v1435_v2  ;;  %v5673_v55 = vpop.permute.xlu0 %1595 }
 0x38a   : > { %2525 = vmatpush.msra.mxu2 %v1435_v2 }
 0x38b   : > { %1818 = vmatpush.msra.mxu0 %v1434_v8 }
 0x38c   : > { %2526 = vmatpush.msra.mxu2 %v1434_v8  ;;  %v1475_v8 = vld [vmem:[%s8433_s7 + $0x108] sm:$0xff] }
 0x38d   : > { %1780 = vmatmul.f32.gmra.mxu3 %v1486_v62  ;;  %1819 = vmatpush.msra.mxu0 %v1433_v12 }
 0x38e   : > { %2527 = vmatpush.msra.mxu2 %v1433_v12  ;;  %v5678_v58 = vpop.permute.xlu1 %1575 }
 0x38f   : > { %1820 = vmatpush.msra.mxu0 %v1432_v14 }
 0x390   : > { %2528 = vmatpush.msra.mxu2 %v1432_v14 }
 0x391   : > { %1821 = vmatpush.msra.mxu0 %v1431_v16  ;;  %v5683_v1 = vpop.permute.xlu0 %1580 }
 0x392   : > { %2529 = vmatpush.msra.mxu2 %v1431_v16 }
 0x393   : > { %1822 = vmatpush.msra.mxu0 %v1430_v21 }
 0x394   : > { %2530 = vmatpush.msra.mxu2 %v1430_v21 }
 0x395   : > { %1783 = vmatmul.f32.gmra.mxu3 %v1488_v48  ;;  %1823 = vmatpush.msra.mxu0 %v1429_v25 }
 0x396   : > { %2531 = vmatpush.msra.mxu2 %v1429_v25  ;;  %v1561_v4 = vpop.permute.xlu1 %1560 }
 0x397   : > { %1824 = vmatpush.msra.mxu0 %v1428_v31 }
 0x398   : > { %2532 = vmatpush.msra.mxu2 %v1428_v31 }
 0x399   : > { %1825 = vmatpush.msra.mxu0 %v1427_v34  ;;  %v1715_v42 = vpop.f32.mrf.mxu0  ;;  %v1566_v10 = vpop.permute.xlu0 %1565 }
 0x39a   : > { %2533 = vmatpush.msra.mxu2 %v1427_v34 }
 0x39b   : > { %1826 = vmatpush.msra.mxu0 %v1426_v35 }
 0x39c   : > { %2534 = vmatpush.msra.mxu2 %v1426_v35  ;;  %1827 = vmatmul.f32.vlgmr.msra.gmra.mxu0 %v1443_v37  ;;  %v1481_v37 = vld [vmem:[%s8433_s7 + $0x138] sm:$0xff] }
 0x39d   : > { %1786 = vmatmul.f32.gmra.mxu3 %v1490_v22  ;;  %2406 = vmatpush.msrb.mxu0 %v5393_v3  ;;  %v1447_v3 = vld [vmem:[%s8433_s7 + $0x28] sm:$0xff] }
 0x39e   : > { %v1546_v12 = vpop.permute.xlu1 %1545 }
 0x39f   : > { %2407 = vmatpush.msrb.mxu0 %v5395_v6  ;;  %v1494_v6 = vld [vmem:[%s8433_s7 + $0x1a0] sm:$0xff] }
 0x3a0   : > { %v1739_v21 = vpop.f32.mrf.mxu3  ;;  %v1727_v44 = vpop.f32.mrf.mxu2 }
 0x3a1   : > { %2408 = vmatpush.msrb.mxu0 %v5400_v11  ;;  %v1449_v11 = vld [vmem:[%s8433_s7 + $0x38] sm:$0xff]  ;;  %v1718_v47 = vpop.f32.mrf.mxu0  ;;  %v1551_v19 = vpop.permute.xlu0 %1550 }
 0x3a2   : > { %v1719_v60 = vadd.f32 %v1718_v47, %v1546_v12 }
 0x3a3   : > { %2409 = vmatpush.msrb.mxu0 %v5407_v13  ;;  %v1496_v13 = vld [vmem:[%s8433_s7 + $0x1b0] sm:$0xff] }
 0x3a4   : > { %1830 = vmatmul.f32.gmra.mxu0 %v1445_v9 }
 0x3a5   : > { %1789 = vmatmul.f32.gmra.mxu3 %v1492_v38  ;;  %2410 = vmatpush.msrb.mxu0 %v5412_v15  ;;  %v1451_v15 = vld [vmem:[%s8433_s7 + $0x48] sm:$0xff]  ;;  %v1728_v38 = vadd.f32 %v1727_v44, %v1561_v4 }
 0x3a6   : > { %v1499_v44 = vld [vmem:[%s8433_s7 + $0x1c8] sm:$0xff] }
 0x3a7   : > { %2411 = vmatpush.msrb.mxu0 %v5417_v17  ;;  %v1498_v17 = vld [vmem:[%s8433_s7 + $0x1c0] sm:$0xff] }
 0x3a8   : > { %v1742_v34 = vpop.f32.mrf.mxu3 }
 0x3a9   : > { %2412 = vmatpush.msrb.mxu0 %v5423_v20  ;;  %v1453_v20 = vld [vmem:[%s8433_s7 + $0x58] sm:$0xff]  ;;  %v1721_v54 = vpop.f32.mrf.mxu0 }
 0x3aa   : > { %v1722_v52 = vadd.f32 %v1721_v54, %v1551_v19 }
 0x3ab   : > { %2413 = vmatpush.msrb.mxu0 %v5431_v24  ;;  %v1500_v24 = vld [vmem:[%s8433_s7 + $0x1d0] sm:$0xff] }
 0x3ac   : > { %1833 = vmatmul.f32.gmra.mxu0 %v1447_v3  ;;  %v1730_v3 = vpop.f32.mrf.mxu2 }
 0x3ad   : > { %1792 = vmatmul.f32.gmra.mxu3 %v1494_v6  ;;  %2414 = vmatpush.msrb.mxu0 %v5437_v29  ;;  %v1455_v29 = vld [vmem:[%s8433_s7 + $0x68] sm:$0xff] }
 0x3af   : > { %2415 = vmatpush.msrb.mxu0 %v5443_v33  ;;  %v1502_v33 = vld [vmem:[%s8433_s7 + $0x1e0] sm:$0xff] }
 0x3b1   : > { %2416 = vmatpush.msrb.mxu0 %v5449_v36  ;;  %v1457_v36 = vld [vmem:[%s8433_s7 + $0x78] sm:$0xff]  ;;  %v1724_v61 = vpop.f32.mrf.mxu0 }
 0x3b3   : > { %2417 = vmatpush.msrb.mxu0 %v5457_v39  ;;  %v1504_v39 = vld [vmem:[%s8433_s7 + $0x1f0] sm:$0xff] }
 0x3b4   : > { %1836 = vmatmul.f32.gmra.mxu0 %v1449_v11  ;;  %v1483_v11 = vld [vmem:[%s8433_s7 + $0x148] sm:$0xff] }
 0x3b5   : > { %1795 = vmatmul.f32.gmra.mxu3 %v1496_v13  ;;  %2418 = vmatpush.msrb.mxu0 %v5463_v41  ;;  %v1459_v41 = vld [vmem:[%s8433_s7 + $0x88] sm:$0xff] }
 0x3b7   : > { %2419 = vmatpush.msrb.mxu0 %v5469_v43  ;;  %v1461_v43 = vld [vmem:[%s8433_s7 + $0x98] sm:$0xff] }
 0x3b9   : > { %2420 = vmatpush.msrb.mxu0 %v5474_v28  ;;  %v5647_v28 = vpop.permute.xlu2 %1615 }
 0x3bb   : > { %2421 = vmatpush.msrb.mxu0 %v5481_v45  ;;  %v1463_v45 = vld [vmem:[%s8433_s7 + $0xa8] sm:$0xff] }
 0x3bc   : > { %1839 = vmatmul.f32.gmra.mxu0 %v1451_v15  ;;  %v1745_v15 = vpop.f32.mrf.mxu3 }
 0x3bd   : > { %1798 = vmatmul.f32.gmra.mxu3 %v1498_v17 }
 0x3c1   : > { %v5652_v32 = vpop.permute.xlu2 %1600 }
 0x3c4   : > { %1842 = vmatmul.f32.gmra.mxu0 %v1453_v20  ;;  %v1731_v20 = vadd.f32 %v1730_v3, %v1566_v10  ;;  %v2241_v3 = vld [vmem:[%s8434_s8 + $0x1d8] sm:$0xff] }
 0x3c5   : > { %1801 = vmatmul.f32.gmra.mxu3 %v1500_v24 }
 0x3c9   : > { %v5659_v26 = vpop.permute.xlu2 %1585 }
 0x3cc   : > { %1845 = vmatmul.f32.gmra.mxu0 %v1455_v29  ;;  %v1485_v29 = vld [vmem:[%s8433_s7 + $0x158] sm:$0xff] }
 0x3cd   : > { %1804 = vmatmul.f32.gmra.mxu3 %v1502_v33 }
 0x3d1   : > { %v5671_v53 = vpop.permute.xlu2 %1570 }
 0x3d4   : > { %1848 = vmatmul.f32.gmra.mxu0 %v1457_v36  ;;  %v1733_v36 = vpop.f32.mrf.mxu2 }
 0x3d5   : > { %1807 = vmatmul.f32.gmra.mxu3 %v1504_v39 }
 0x3d9   : > { %v1556_v59 = vpop.permute.xlu2 %1555 }
 0x3da   : > { %v1725_v31 = vadd.f32 %v1724_v61, %v1556_v59 }
 0x3dc   : > { %1851 = vmatmul.f32.gmra.mxu0 %v1459_v41  ;;  %v1748_v41 = vpop.f32.mrf.mxu3  ;;  %v1736_v47 = vpop.f32.mrf.mxu2 }
 0x3dd   : > { %v1737_v54 = vadd.f32 %v1736_v47, %v5678_v58  ;;  %v1491_v58 = vld [vmem:[%s8433_s7 + $0x188] sm:$0xff]  ;;  %v1749_v19 = vadd.f32 %v1748_v41, %v5673_v55  ;;  %v2153_v47 = vld [vmem:[%s8433_s7 + $0x218] sm:$0xff] }
 0x3e1   : > { %v1541_v2 = vpop.permute.xlu2 %1540 }
 0x3e2   : > { %v1716_v5 = vadd.f32 %v1715_v42, %v1541_v2 }
 0x3e4   : > { %1854 = vmatmul.f32.gmra.mxu0 %v1461_v43  ;;  %v1734_v43 = vadd.f32 %v1733_v36, %v5671_v53  ;;  %v1489_v53 = vld [vmem:[%s8433_s7 + $0x178] sm:$0xff] }
 0x3ec   : > { %1857 = vmatmul.f32.gmra.mxu0 %v1463_v45 }
 0x3f4   : > { %1860 = vmatmul.f32.gmra.mxu0 %v1465_v40  ;;  %v1487_v40 = vld [vmem:[%s8433_s7 + $0x168] sm:$0xff] }
 0x3fc   : > { %1863 = vmatmul.f32.gmra.mxu0 %v1467_v46 }
 0x404   : > { %1866 = vmatmul.f32.gmra.mxu0 %v1469_v51  ;;  %v1751_v51 = vpop.f32.mrf.mxu3 }
 0x40c   : > { %1869 = vmatmul.f32.gmra.mxu0 %v1471_v57  ;;  %v5742_v4 = vpop.f32.mrf.mxu3 }
 0x414   : > { %1872 = vmatmul.f32.gmra.mxu0 %v1473_v63  ;;  %v1740_v63 = vadd.f32 %v1739_v21, %v5683_v1  ;;  %v1493_v1 = vld [vmem:[%s8433_s7 + $0x198] sm:$0xff]  ;;  %v5754_v10 = vpop.f32.mrf.mxu3 }
 0x419   : > { %v1828_v7 = vpop.f32.mrf.mxu0 }
 0x41a   : > { %v1829_v0 = vadd.f32 %v1828_v7, %v1716_v5 }
 0x41c   : > { %1925 = vst.msk [vmem:[%s5689_s29] sm:$0xff] %vm1924_vm3, %v1829_v0  ;;  %1875 = vmatmul.f32.gmra.mxu0 %v1475_v8  ;;  %v1989_v62 = vsel %vm1924_vm3, %v1829_v0, -inf  ;;  %v1743_v8 = vadd.f32 %v1742_v34, %v5659_v26  ;;  %v1495_v26 = vld [vmem:[%s8433_s7 + $0x1a8] sm:$0xff]  ;;  %v5818_v34 = vpop.permute.xlu2 %2398 }
 0x41d   : > { %1990 = vmax.xlane.f32.xlu2 %v1989_v62 }
 0x421   : > { %v1831_v14 = vpop.f32.mrf.mxu0 }
 0x422   : > { %v1832_v16 = vadd.f32 %v1831_v14, %v1719_v60  ;;  %v1746_v60 = vadd.f32 %v1745_v15, %v5666_v50  ;;  %v1503_v15 = vld [vmem:[%s8433_s7 + $0x1e8] sm:$0xff] }
 0x424   : > { %1926 = vst.msk [vmem:[%s5689_s29 + $0x8] sm:$0xff] %vm1924_vm3, %v1832_v16  ;;  %1878 = vmatmul.f32.gmra.mxu0 %v1477_v56  ;;  %v1992_v18 = vsel %vm1924_vm3, %v1832_v16, -inf  ;;  %v4816_v16 = vmov -inf  }
 0x425   : > { %1993 = vmax.xlane.f32.xlu1 %v1992_v18  ;;  %632 = vst.msk [vmem:[#allocation2] sm:$0xff] %vm631_vm4, %v4816_v16  ;;  %v5770_v18 = vpop.f32.mrf.mxu3 }
 0x426   : > { %633 = vst.msk [vmem:[#allocation2 + $0x8] sm:$0xff] %vm631_vm4, %v4816_v16 }
 0x427   : > { %634 = vst.msk [vmem:[#allocation2 + $0x10] sm:$0xff] %vm631_vm4, %v4816_v16 }
 0x428   : > { %635 = vst.msk [vmem:[#allocation2 + $0x18] sm:$0xff] %vm631_vm4, %v4816_v16 }
 0x429   : > { %v1834_v48 = vpop.f32.mrf.mxu0  ;;  %636 = vst.msk [vmem:[#allocation2 + $0x20] sm:$0xff] %vm631_vm4, %v4816_v16 }
 0x42a   : > { %v1835_v25 = vadd.f32 %v1834_v48, %v1722_v52  ;;  %637 = vst.msk [vmem:[#allocation2 + $0x28] sm:$0xff] %vm631_vm4, %v4816_v16  ;;  %v1497_v52 = vld [vmem:[%s8433_s7 + $0x1b8] sm:$0xff] }
 0x42b   : > { %638 = vst.msk [vmem:[#allocation2 + $0x30] sm:$0xff] %vm631_vm4, %v4816_v16 }
 0x42c   : > { %1927 = vst.msk [vmem:[%s5689_s29 + $0x10] sm:$0xff] %vm1924_vm3, %v1835_v25  ;;  %1881 = vmatmul.f32.gmra.mxu0 %v1479_v23  ;;  %v1995_v27 = vsel %vm1924_vm3, %v1835_v25, -inf  ;;  %v1752_v25 = vadd.f32 %v1751_v51, %v5652_v32 }
 0x42d   : > { %1996 = vmax.xlane.f32.xlu0 %v1995_v27  ;;  %639 = vst.msk [vmem:[#allocation2 + $0x38] sm:$0xff] %vm631_vm4, %v4816_v16  ;;  %v5797_v23 = vpop.f32.mrf.mxu3 }
 0x42e   : > { %640 = vst.msk [vmem:[#allocation2 + $0x40] sm:$0xff] %vm631_vm4, %v4816_v16 }
 0x42f   : > { %641 = vst.msk [vmem:[#allocation2 + $0x48] sm:$0xff] %vm631_vm4, %v4816_v16 }
 0x430   : > { %642 = vst.msk [vmem:[#allocation2 + $0x50] sm:$0xff] %vm631_vm4, %v4816_v16 }
 0x431   : > { %v1837_v35 = vpop.f32.mrf.mxu0  ;;  %643 = vst.msk [vmem:[#allocation2 + $0x58] sm:$0xff] %vm631_vm4, %v4816_v16 }
 0x432   : > { %v1838_v22 = vadd.f32 %v1837_v35, %v1725_v31  ;;  %644 = vst.msk [vmem:[#allocation2 + $0x60] sm:$0xff] %vm631_vm4, %v4816_v16  ;;  %v1755_v35 = vadd.f32 %v5742_v4, %v5657_v30 }
 0x433   : > { %645 = vst.msk [vmem:[#allocation2 + $0x68] sm:$0xff] %vm631_vm4, %v4816_v16 }
 0x434   : > { %1928 = vst.msk [vmem:[%s5689_s29 + $0x18] sm:$0xff] %vm1924_vm3, %v1838_v22  ;;  %1884 = vmatmul.f32.gmra.mxu0 %v1481_v37  ;;  %v1998_v9 = vsel %vm1924_vm3, %v1838_v22, -inf }
 0x435   : > { %1999 = vmax.xlane.f32.xlu2 %v1998_v9  ;;  %646 = vst.msk [vmem:[#allocation2 + $0x70] sm:$0xff] %vm631_vm4, %v4816_v16  ;;  %v5828_v37 = vpop.f32.mrf.mxu3  ;;  %v1501_v9 = vld [vmem:[%s8433_s7 + $0x1d8] sm:$0xff] }
 0x436   : > { %647 = vst.msk [vmem:[#allocation2 + $0x78] sm:$0xff] %vm631_vm4, %v4816_v16 }
 0x437   : > { %648 = vst.msk [vmem:[#allocation2 + $0x80] sm:$0xff] %vm631_vm4, %v4816_v16 }
 0x438   : > { %649 = vst.msk [vmem:[#allocation2 + $0x88] sm:$0xff] %vm631_vm4, %v4816_v16 }
 0x439   : > { %v1840_v6 = vpop.f32.mrf.mxu0  ;;  %650 = vst.msk [vmem:[#allocation2 + $0x90] sm:$0xff] %vm631_vm4, %v4816_v16 }
 0x43a   : > { %v1841_v13 = vadd.f32 %v1840_v6, %v1728_v38  ;;  %651 = vst.msk [vmem:[#allocation2 + $0x98] sm:$0xff] %vm631_vm4, %v4816_v16  ;;  %v5851_v6 = vpop.permute.xlu2 %2388 }
 0x43b   : > { %652 = vst.msk [vmem:[#allocation2 + $0xa0] sm:$0xff] %vm631_vm4, %v4816_v16 }
 0x43c   : > { %1929 = vst.msk [vmem:[%s5689_s29 + $0x20] sm:$0xff] %vm1924_vm3, %v1841_v13  ;;  %1887 = vmatmul.f32.gmra.mxu0 %v1483_v11  ;;  %v2001_v17 = vsel %vm1924_vm3, %v1841_v13, -inf  ;;  %v1758_v11 = vadd.f32 %v5754_v10, %v5664_v49  ;;  %v2154_v10 = vld [vmem:[%s8433_s7 + $0x220] sm:$0xff] }
 0x43d   : > { %2002 = vmax.xlane.f32.xlu1 %v2001_v17  ;;  %653 = vst.msk [vmem:[#allocation2 + $0xa8] sm:$0xff] %vm631_vm4, %v4816_v16 }
 0x43e   : > { %654 = vst.msk [vmem:[#allocation2 + $0xb0] sm:$0xff] %vm631_vm4, %v4816_v16 }
 0x43f   : > { %655 = vst.msk [vmem:[#allocation2 + $0xb8] sm:$0xff] %vm631_vm4, %v4816_v16 }
 0x440   : > { %656 = vst.msk [vmem:[#allocation2 + $0xc0] sm:$0xff] %vm631_vm4, %v4816_v16 }
 0x441   : > { %v1843_v24 = vpop.f32.mrf.mxu0  ;;  %657 = vst.msk [vmem:[#allocation2 + $0xc8] sm:$0xff] %vm631_vm4, %v4816_v16 }
 0x442   : > { %v1844_v33 = vadd.f32 %v1843_v24, %v1731_v20  ;;  %658 = vst.msk [vmem:[#allocation2 + $0xd0] sm:$0xff] %vm631_vm4, %v4816_v16  ;;  %v5864_v20 = vpop.f32.mrf.mxu3  ;;  %v1957_v24 = vld [vmem:[#allocation2] sm:$0xff] }
 0x443   : > { %659 = vst.msk [vmem:[#allocation2 + $0xd8] sm:$0xff] %vm631_vm4, %v4816_v16 }
 0x444   : > { %1930 = vst.msk [vmem:[%s5689_s29 + $0x28] sm:$0xff] %vm1924_vm3, %v1844_v33  ;;  %1890 = vmatmul.f32.gmra.mxu0 %v1485_v29  ;;  %v2004_v39 = vsel %vm1924_vm3, %v1844_v33, -inf  ;;  %v1532_v29 = vld [vmem:[%s8434_s8 + $0xd0] sm:$0xff]  ;;  %v5878_v33 = vpop.permute.xlu0 %2403 }
 0x445   : > { %2005 = vmax.xlane.f32.xlu0 %v2004_v39  ;;  %660 = vst.msk [vmem:[#allocation2 + $0xe0] sm:$0xff] %vm631_vm4, %v4816_v16  ;;  %v2151_v39 = vld [vmem:[%s8433_s7 + $0x208] sm:$0xff] }
 0x446   : > { %661 = vst.msk [vmem:[#allocation2 + $0xe8] sm:$0xff] %vm631_vm4, %v4816_v16  ;;  %2535 = vmatmul.f32.vlgmr.msra.gmra.mxu2 %v2151_v39 }
 0x447   : > { %662 = vst.msk [vmem:[#allocation2 + $0xf0] sm:$0xff] %vm631_vm4, %v4816_v16 }
 0x448   : > { %663 = vst.msk [vmem:[#allocation2 + $0xf8] sm:$0xff] %vm631_vm4, %v4816_v16 }
 0x449   : > { %v1846_v45 = vpop.f32.mrf.mxu0  ;;  %664 = vst.msk [vmem:[#allocation2 + $0x100] sm:$0xff] %vm631_vm4, %v4816_v16 }
 0x44a   : > { %v1847_v42 = vadd.f32 %v1846_v45, %v1734_v43  ;;  %665 = vst.msk [vmem:[#allocation2 + $0x108] sm:$0xff] %vm631_vm4, %v4816_v16  ;;  %v1505_v45 = vld [vmem:[%s8433_s7 + $0x1f8] sm:$0xff] }
 0x44b   : > { %666 = vst.msk [vmem:[#allocation2 + $0x110] sm:$0xff] %vm631_vm4, %v4816_v16 }
 0x44c   : > { %1931 = vst.msk [vmem:[%s5689_s29 + $0x30] sm:$0xff] %vm1924_vm3, %v1847_v42  ;;  %1893 = vmatmul.f32.gmra.mxu0 %v1487_v40  ;;  %v2007_v46 = vsel %vm1924_vm3, %v1847_v42, -inf  ;;  %v5899_v40 = vpop.f32.mrf.mxu3  ;;  %v5903_v42 = vpop.permute.xlu1 %1695 }
 0x44d   : > { %2008 = vmax.xlane.f32.xlu2 %v2007_v46  ;;  %667 = vst.msk [vmem:[#allocation2 + $0x118] sm:$0xff] %vm631_vm4, %v4816_v16  ;;  %v2238_v46 = vld [vmem:[%s8434_s8 + $0x1c0] sm:$0xff]  ;;  %v5917_v51 = vpop.permute.xlu0 %1690 }
 0x44e   : > { %668 = vst.msk [vmem:[#allocation2 + $0x120] sm:$0xff] %vm631_vm4, %v4816_v16  ;;  %2538 = vmatmul.f32.gmra.mxu2 %v2153_v47  ;;  %v1528_v47 = vld [vmem:[%s8434_s8 + $0xb0] sm:$0xff] }
 0x44f   : > { %669 = vst.msk [vmem:[#allocation2 + $0x128] sm:$0xff] %vm631_vm4, %v4816_v16 }
 0x450   : > { %670 = vst.msk [vmem:[#allocation2 + $0x130] sm:$0xff] %vm631_vm4, %v4816_v16 }
 0x451   : > { %v1849_v57 = vpop.f32.mrf.mxu0  ;;  %671 = vst.msk [vmem:[#allocation2 + $0x138] sm:$0xff] %vm631_vm4, %v4816_v16 }
 0x452   : > { %v1850_v59 = vadd.f32 %v1849_v57, %v1737_v54  ;;  %672 = vst.msk [vmem:[#allocation2 + $0x140] sm:$0xff] %vm631_vm4, %v4816_v16  ;;  %v2150_v57 = vld [vmem:[%s8433_s7 + $0x200] sm:$0xff] }
 0x453   : > { %673 = vst.msk [vmem:[#allocation2 + $0x148] sm:$0xff] %vm631_vm4, %v4816_v16 }
 0x454   : > { %1932 = vst.msk [vmem:[%s5689_s29 + $0x38] sm:$0xff] %vm1924_vm3, %v1850_v59  ;;  %1896 = vmatmul.f32.gmra.mxu0 %v1489_v53  ;;  %v2010_v61 = vsel %vm1924_vm3, %v1850_v59, -inf  ;;  %v1533_v53 = vld [vmem:[%s8434_s8 + $0xd8] sm:$0xff]  ;;  %v2155_v59 = vld [vmem:[%s8433_s7 + $0x228] sm:$0xff] }
 0x455   : > { %2011 = vmax.xlane.f32.xlu1 %v2010_v61  ;;  %674 = vst.msk [vmem:[#allocation2 + $0x150] sm:$0xff] %vm631_vm4, %v4816_v16  ;;  %v5942_v61 = vpop.f32.mrf.mxu3 }
 0x456   : > { %675 = vst.msk [vmem:[#allocation2 + $0x158] sm:$0xff] %vm631_vm4, %v4816_v16  ;;  %2541 = vmatmul.f32.gmra.mxu2 %v2155_v59 }
 0x457   : > { %676 = vst.msk [vmem:[#allocation2 + $0x160] sm:$0xff] %vm631_vm4, %v4816_v16 }
 0x458   : > { %677 = vst.msk [vmem:[#allocation2 + $0x168] sm:$0xff] %vm631_vm4, %v4816_v16 }
 0x459   : > { %v1852_v2 = vpop.f32.mrf.mxu0  ;;  %678 = vst.msk [vmem:[#allocation2 + $0x170] sm:$0xff] %vm631_vm4, %v4816_v16 }
 0x45a   : > { %v1853_v5 = vadd.f32 %v1852_v2, %v1740_v63  ;;  %679 = vst.msk [vmem:[#allocation2 + $0x178] sm:$0xff] %vm631_vm4, %v4816_v16  ;;  %v5946_v63 = vpop.permute.xlu1 %2393  ;;  %v2152_v2 = vld [vmem:[%s8433_s7 + $0x210] sm:$0xff] }
 0x45b   : > { %680 = vst.msk [vmem:[#allocation2 + $0x180] sm:$0xff] %vm631_vm4, %v4816_v16 }
 0x45c   : > { %1933 = vst.msk [vmem:[%s5689_s29 + $0x40] sm:$0xff] %vm1924_vm3, %v1853_v5  ;;  %1899 = vmatmul.f32.gmra.mxu0 %v1491_v58  ;;  %v2013_v7 = vsel %vm1924_vm3, %v1853_v5, -inf  ;;  %v2239_v58 = vld [vmem:[%s8434_s8 + $0x1c8] sm:$0xff]  ;;  %v5962_v5 = vpop.permute.xlu0 %1685 }
 0x45d   : > { %2014 = vmax.xlane.f32.xlu0 %v2013_v7  ;;  %681 = vst.msk [vmem:[#allocation2 + $0x188] sm:$0xff] %vm631_vm4, %v4816_v16  ;;  %v1534_v7 = vld [vmem:[%s8434_s8 + $0xe0] sm:$0xff] }
 0x45e   : > { %682 = vst.msk [vmem:[#allocation2 + $0x190] sm:$0xff] %vm631_vm4, %v4816_v16 }
 0x45f   : > { %683 = vst.msk [vmem:[#allocation2 + $0x198] sm:$0xff] %vm631_vm4, %v4816_v16 }
 0x460   : > { %684 = vst.msk [vmem:[#allocation2 + $0x1a0] sm:$0xff] %vm631_vm4, %v4816_v16 }
 0x461   : > { %v1855_v0 = vpop.f32.mrf.mxu0  ;;  %685 = vst.msk [vmem:[#allocation2 + $0x1a8] sm:$0xff] %vm631_vm4, %v4816_v16 }
 0x462   : > { %v1856_v62 = vadd.f32 %v1855_v0, %v1743_v8  ;;  %686 = vst.msk [vmem:[#allocation2 + $0x1b0] sm:$0xff] %vm631_vm4, %v4816_v16  ;;  %v2157_v8 = vld [vmem:[%s8433_s7 + $0x238] sm:$0xff] }
 0x463   : > { %687 = vst.msk [vmem:[#allocation2 + $0x1b8] sm:$0xff] %vm631_vm4, %v4816_v16  ;;  %2544 = vmatmul.f32.gmra.mxu2 %v2157_v8  ;;  %v2162_v8 = vld [vmem:[%s8433_s7 + $0x260] sm:$0xff] }
 0x464   : > { %1934 = vst.msk [vmem:[%s5689_s29 + $0x48] sm:$0xff] %vm1924_vm3, %v1856_v62  ;;  %1902 = vmatmul.f32.gmra.mxu0 %v1493_v1  ;;  %v2016_v12 = vsel %vm1924_vm3, %v1856_v62, -inf  ;;  %v5982_v1 = vpop.f32.mrf.mxu3 }
 0x465   : > { %2017 = vmax.xlane.f32.xlu2 %v2016_v12  ;;  %688 = vst.msk [vmem:[#allocation2 + $0x1c0] sm:$0xff] %vm631_vm4, %v4816_v16  ;;  %v1761_v12 = vadd.f32 %v5770_v18, %v5647_v28  ;;  %v1960_v18 = vld [vmem:[#allocation2 + $0x18] sm:$0xff] }
 0x466   : > { %689 = vst.msk [vmem:[#allocation2 + $0x1c8] sm:$0xff] %vm631_vm4, %v4816_v16 }
 0x467   : > { %690 = vst.msk [vmem:[#allocation2 + $0x1d0] sm:$0xff] %vm631_vm4, %v4816_v16 }
 0x468   : > { %691 = vst.msk [vmem:[#allocation2 + $0x1d8] sm:$0xff] %vm631_vm4, %v4816_v16 }
 0x469   : > { %v1858_v14 = vpop.f32.mrf.mxu0  ;;  %692 = vst.msk [vmem:[#allocation2 + $0x1e0] sm:$0xff] %vm631_vm4, %v4816_v16 }
 0x46a   : > { %v1859_v56 = vadd.f32 %v1858_v14, %v1746_v60  ;;  %v1958_v60 = vld [vmem:[#allocation2 + $0x8] sm:$0xff]  ;;  %v1530_v14 = vld [vmem:[%s8434_s8 + $0xc0] sm:$0xff]  ;;  %693 = vst.msk [vmem:[#allocation2 + $0x1e8] sm:$0xff] %vm631_vm4, %v4816_v16 }
 0x46b   : > { %694 = vst.msk [vmem:[#allocation2 + $0x1f0] sm:$0xff] %vm631_vm4, %v4816_v16 }
 0x46c   : > { %1935 = vst.msk [vmem:[%s5689_s29 + $0x50] sm:$0xff] %vm1924_vm3, %v1859_v56  ;;  %1905 = vmatmul.f32.gmra.mxu0 %v1495_v26  ;;  %v2019_v50 = vsel %vm1924_vm3, %v1859_v56, -inf  ;;  %v1959_v26 = vld [vmem:[#allocation2 + $0x10] sm:$0xff] }
 0x46d   : > { %2020 = vmax.xlane.f32.xlu1 %v2019_v50  ;;  %v2240_v50 = vld [vmem:[%s8434_s8 + $0x1d0] sm:$0xff]  ;;  %695 = vst.msk [vmem:[#allocation2 + $0x1f8] sm:$0xff] %vm631_vm4, %v4816_v16 }
 0x46e   : > { %v2236_v16 = vld [vmem:[%s8434_s8 + $0x1b0] sm:$0xff] }
 0x471   : > { %v1861_v21 = vpop.f32.mrf.mxu0 }
 0x472   : > { %v1862_v48 = vadd.f32 %v1861_v21, %v1749_v19 }
 0x474   : > { %1936 = vst.msk [vmem:[%s5689_s29 + $0x58] sm:$0xff] %vm1924_vm3, %v1862_v48  ;;  %1908 = vmatmul.f32.gmra.mxu0 %v1497_v52  ;;  %v2022_v55 = vsel %vm1924_vm3, %v1862_v48, -inf  ;;  %v1961_v48 = vld [vmem:[#allocation2 + $0x20] sm:$0xff] }
 0x475   : > { %2023 = vmax.xlane.f32.xlu0 %v2022_v55  ;;  %v2159_v55 = vld [vmem:[%s8433_s7 + $0x248] sm:$0xff] }
 0x476   : > { %2547 = vmatmul.f32.gmra.mxu2 %v2159_v55 }
 0x479   : > { %v1864_v27 = vpop.f32.mrf.mxu0 }
 0x47a   : > { %v1865_v31 = vadd.f32 %v1864_v27, %v1752_v25 }
 0x47c   : > { %1937 = vst.msk [vmem:[%s5689_s29 + $0x60] sm:$0xff] %vm1924_vm3, %v1865_v31  ;;  %1911 = vmatmul.f32.gmra.mxu0 %v1499_v44  ;;  %v2025_v32 = vsel %vm1924_vm3, %v1865_v31, -inf }
 0x47d   : > { %2026 = vmax.xlane.f32.xlu2 %v2025_v32  ;;  %v2156_v32 = vld [vmem:[%s8433_s7 + $0x230] sm:$0xff] }
 0x481   : > { %v1867_v22 = vpop.f32.mrf.mxu0 }
 0x482   : > { %v1868_v38 = vadd.f32 %v1867_v22, %v1755_v35  ;;  %v6027_v35 = vpop.f32.mrf.mxu3  ;;  %v1531_v22 = vld [vmem:[%s8434_s8 + $0xc8] sm:$0xff] }
 0x484   : > { %1938 = vst.msk [vmem:[%s5689_s29 + $0x68] sm:$0xff] %vm1924_vm3, %v1868_v38  ;;  %1914 = vmatmul.f32.gmra.mxu0 %v1501_v9  ;;  %v2028_v30 = vsel %vm1924_vm3, %v1868_v38, -inf  ;;  %v1962_v9 = vld [vmem:[#allocation2 + $0x28] sm:$0xff]  ;;  %v2161_v38 = vld [vmem:[%s8433_s7 + $0x258] sm:$0xff] }
 0x485   : > { %2029 = vmax.xlane.f32.xlu2 %v2028_v30  ;;  %2550 = vmatmul.f32.gmra.mxu2 %v2161_v38  ;;  %v1967_v38 = vld [vmem:[#allocation2 + $0x50] sm:$0xff] }
 0x489   : > { %v1870_v13 = vpop.f32.mrf.mxu0  ;;  %2383 = vperm.xlu0 %4788, %v2241_v3  }
 0x48a   : > { %v1871_v17 = vadd.f32 %v1870_v13, %v1758_v11  ;;  %v2158_v13 = vld [vmem:[%s8433_s7 + $0x240] sm:$0xff] }
 0x48c   : > { %1939 = vst.msk [vmem:[%s5689_s29 + $0x70] sm:$0xff] %vm1924_vm3, %v1871_v17  ;;  %1917 = vmatmul.f32.gmra.mxu0 %v1503_v15  ;;  %v2031_v49 = vsel %vm1924_vm3, %v1871_v17, -inf  ;;  %v1527_v15 = vld [vmem:[%s8434_s8 + $0xa8] sm:$0xff]  ;;  %v2237_v17 = vld [vmem:[%s8434_s8 + $0x1b8] sm:$0xff] }
 0x48d   : > { %2032 = vmax.xlane.f32.xlu1 %v2031_v49  ;;  %v6049_v49 = vpop.f32.mrf.mxu3 }
 0x490   : > { %v1991_v36 = vpop.xlane.xlu2 %1990 }
 0x491   : > { %v2085_v41 = vmax.f32 %v1957_v24, %v1991_v36  ;;  %v5889_v43 = vpop.f32.mrf.mxu0  ;;  %1670 = vperm.xlu0 %4788, %v1532_v29   ;;  %v1963_v24 = vld [vmem:[#allocation2 + $0x30] sm:$0xff]  ;;  %v2163_v29 = vld [vmem:[%s8433_s7 + $0x268] sm:$0xff] }
 0x492   : > { %v1874_v28 = vadd.f32 %v5889_v43, %v1761_v12  ;;  %v2160_v43 = vld [vmem:[%s8433_s7 + $0x250] sm:$0xff]  ;;  %2553 = vmatmul.f32.gmra.mxu2 %v2163_v29  ;;  %v1965_v12 = vld [vmem:[#allocation2 + $0x40] sm:$0xff] }
 0x493   : > { %2118 = vst.msk [vmem:[#allocation2] sm:$0xff] %vm631_vm4, %v2085_v41  ;;  %v2230_v29 = vld [vmem:[%s8434_s8 + $0x180] sm:$0xff] }
 0x494   : > { %1920 = vmatmul.f32.gmra.mxu0 %v1505_v45  ;;  %1940 = vst.msk [vmem:[%s5689_s29 + $0x78] sm:$0xff] %vm1924_vm3, %v1874_v28  ;;  %v2034_v45 = vsel %vm1924_vm3, %v1874_v28, -inf  ;;  %v2164_v28 = vld [vmem:[%s8433_s7 + $0x270] sm:$0xff] }
 0x495   : > { %v6070_v59 = vpop.f32.mrf.mxu3 }
 0x498   : > { %v1994_v0 = vpop.xlane.xlu1 %1993 }
 0x499   : > { %v5921_v54 = vpop.f32.mrf.mxu0  ;;  %2368 = vperm.xlu0 %4788, %v2238_v46   ;;  %v2086_v21 = vmax.f32 %v1958_v60, %v1994_v0  ;;  %v2233_v46 = vld [vmem:[%s8434_s8 + $0x198] sm:$0xff]  ;;  %v1524_v0 = vld [vmem:[%s8434_s8 + $0x90] sm:$0xff]  ;;  %v2167_v60 = vld [vmem:[%s8433_s7 + $0x288] sm:$0xff] }
 0x49b   : > { %2119 = vst.msk [vmem:[#allocation2 + $0x8] sm:$0xff] %vm631_vm4, %v2086_v21  ;;  %v1529_v21 = vld [vmem:[%s8434_s8 + $0xb8] sm:$0xff] }
 0x49c   : > { %2422 = vmatmul.f32.vlgmr.msrb.gmra.mxu0 %v2150_v57  ;;  %v1964_v57 = vld [vmem:[#allocation2 + $0x38] sm:$0xff] }
 0x49d   : > { %1675 = vperm.xlu2 %4790, %v1533_v53   ;;  %v2165_v53 = vld [vmem:[%s8433_s7 + $0x278] sm:$0xff] }
 0x49e   : > { %2556 = vmatmul.f32.gmra.mxu2 %v2165_v53  ;;  %v2170_v53 = vld [vmem:[%s8433_s7 + $0x2a0] sm:$0xff] }
 0x4a0   : > { %v1997_v56 = vpop.xlane.xlu0 %1996 }
 0x4a1   : > { %v5952_v4 = vpop.f32.mrf.mxu0  ;;  %v2087_v52 = vmax.f32 %v1959_v26, %v1997_v56  ;;  %v6087_v26 = vpop.f32.mrf.mxu3 }
 0x4a3   : > { %2120 = vst.msk [vmem:[#allocation2 + $0x10] sm:$0xff] %vm631_vm4, %v2087_v52  ;;  %v1966_v52 = vld [vmem:[#allocation2 + $0x48] sm:$0xff] }
 0x4a4   : > { %2425 = vmatmul.f32.gmra.mxu0 %v2152_v2 }
 0x4a5   : > { %2373 = vperm.xlu2 %4790, %v2239_v58  }
 0x4a6   : > { %1680 = vperm.xlu1 %4789, %v1534_v7   ;;  %2559 = vmatmul.f32.gmra.mxu2 %v2167_v60 }
 0x4a8   : > { %v2000_v19 = vpop.xlane.xlu2 %1999 }
 0x4a9   : > { %v5986_v62 = vpop.f32.mrf.mxu0  ;;  %v2088_v25 = vmax.f32 %v1960_v18, %v2000_v19  ;;  %v2229_v18 = vld [vmem:[%s8434_s8 + $0x178] sm:$0xff] }
 0x4aa   : > { %v1525_v19 = vld [vmem:[%s8434_s8 + $0x98] sm:$0xff] }
 0x4ab   : > { %2121 = vst.msk [vmem:[#allocation2 + $0x18] sm:$0xff] %vm631_vm4, %v2088_v25 }
 0x4ac   : > { %2428 = vmatmul.f32.gmra.mxu0 %v2154_v10  ;;  %v2234_v10 = vld [vmem:[%s8434_s8 + $0x1a0] sm:$0xff] }
 0x4ad   : > { %1660 = vperm.xlu2 %4790, %v1530_v14  }
 0x4ae   : > { %2378 = vperm.xlu1 %4789, %v2240_v50  }
 0x4b0   : > { %v2003_v27 = vpop.xlane.xlu1 %2002 }
 0x4b1   : > { %v2089_v44 = vmax.f32 %v1961_v48, %v2003_v27  ;;  %v6018_v31 = vpop.f32.mrf.mxu0  ;;  %v2169_v48 = vld [vmem:[%s8433_s7 + $0x298] sm:$0xff] }
 0x4b2   : > { %2562 = vmatmul.f32.gmra.mxu2 %v2169_v48  ;;  %v2177_v48 = vld [vmem:[%s8433_s7 + $0x2d8] sm:$0xff] }
 0x4b3   : > { %2122 = vst.msk [vmem:[#allocation2 + $0x20] sm:$0xff] %vm631_vm4, %v2089_v44  ;;  %v2166_v44 = vld [vmem:[%s8433_s7 + $0x280] sm:$0xff] }
 0x4b4   : > { %2431 = vmatmul.f32.gmra.mxu0 %v2156_v32  ;;  %v2228_v32 = vld [vmem:[%s8434_s8 + $0x170] sm:$0xff] }
 0x4b5   : > { %2358 = vperm.xlu2 %4790, %v2236_v16   ;;  %v6115_v16 = vpop.f32.mrf.mxu3 }
 0x4b6   : > { %1665 = vperm.xlu1 %4789, %v1531_v22   ;;  %v2231_v22 = vld [vmem:[%s8434_s8 + $0x188] sm:$0xff] }
 0x4b8   : > { %v2006_v30 = vpop.xlane.xlu0 %2005 }
 0x4b9   : > { %v2090_v3 = vmax.f32 %v1962_v9, %v2006_v30  ;;  %v6037_v11 = vpop.f32.mrf.mxu0  ;;  %v2235_v9 = vld [vmem:[%s8434_s8 + $0x1a8] sm:$0xff] }
 0x4ba   : > { %v2171_v30 = vld [vmem:[%s8433_s7 + $0x2a8] sm:$0xff] }
 0x4bb   : > { %2123 = vst.msk [vmem:[#allocation2 + $0x28] sm:$0xff] %vm631_vm4, %v2090_v3  ;;  %2565 = vmatmul.f32.gmra.mxu2 %v2171_v30  ;;  %v2219_v30 = vld [vmem:[%s8434_s8 + $0x128] sm:$0xff] }
 0x4bc   : > { %2434 = vmatmul.f32.gmra.mxu0 %v2158_v13 }
 0x4bd   : > { %1645 = vperm.xlu2 %4790, %v1527_v15  }
 0x4be   : > { %2363 = vperm.xlu1 %4789, %v2237_v17   ;;  %v2168_v17 = vld [vmem:[%s8433_s7 + $0x290] sm:$0xff] }
 0x4c0   : > { %v2009_v36 = vpop.xlane.xlu2 %2008 }
 0x4c1   : > { %v2091_v39 = vmax.f32 %v1963_v24, %v2009_v36  ;;  %v6054_v41 = vpop.f32.mrf.mxu0  ;;  %v2225_v24 = vld [vmem:[%s8434_s8 + $0x158] sm:$0xff]  ;;  %v1526_v36 = vld [vmem:[%s8434_s8 + $0xa0] sm:$0xff] }
 0x4c3   : > { %2124 = vst.msk [vmem:[#allocation2 + $0x30] sm:$0xff] %vm631_vm4, %v2091_v39  ;;  %2035 = vmax.xlane.f32.xlu0 %v2034_v45  ;;  %v1796_v39 = vpop.f32.mrf.mxu3  ;;  %v2173_v45 = vld [vmem:[%s8433_s7 + $0x2b8] sm:$0xff] }
 0x4c4   : > { %2437 = vmatmul.f32.gmra.mxu0 %v2160_v43  ;;  %v1968_v43 = vld [vmem:[#allocation2 + $0x58] sm:$0xff]  ;;  %2568 = vmatmul.f32.gmra.mxu2 %v2173_v45 }
 0x4c5   : > { %2343 = vperm.xlu2 %4790, %v2233_v46  }
 0x4c6   : > { %1650 = vperm.xlu1 %4789, %v1528_v47  }
 0x4c8   : > { %v2012_v2 = vpop.xlane.xlu1 %2011 }
 0x4c9   : > { %v2092_v58 = vmax.f32 %v1964_v57, %v2012_v2  ;;  %v6072_v7 = vpop.f32.mrf.mxu0  ;;  %v2222_v2 = vld [vmem:[%s8434_s8 + $0x140] sm:$0xff] }
 0x4cb   : > { %2125 = vst.msk [vmem:[#allocation2 + $0x38] sm:$0xff] %vm631_vm4, %v2092_v58  ;;  %v2227_v58 = vld [vmem:[%s8434_s8 + $0x168] sm:$0xff] }
 0x4cc   : > { %2440 = vmatmul.f32.gmra.mxu0 %v2162_v8  ;;  %v2232_v8 = vld [vmem:[%s8434_s8 + $0x190] sm:$0xff] }
 0x4cd   : > { %1630 = vperm.xlu2 %4790, %v1524_v0   ;;  %v1969_v0 = vld [vmem:[#allocation2 + $0x60] sm:$0xff] }
 0x4ce   : > { %2348 = vperm.xlu1 %4789, %v2234_v10   ;;  %v2175_v10 = vld [vmem:[%s8433_s7 + $0x2c8] sm:$0xff] }
 0x4cf   : > { %2571 = vmatmul.f32.gmra.mxu2 %v2175_v10  ;;  %v2226_v10 = vld [vmem:[%s8434_s8 + $0x160] sm:$0xff] }
 0x4d0   : > { %v2015_v14 = vpop.xlane.xlu0 %2014 }
 0x4d1   : > { %v2093_v56 = vmax.f32 %v1965_v12, %v2015_v14  ;;  %v6089_v50 = vpop.f32.mrf.mxu0  ;;  %v6163_v12 = vpop.f32.mrf.mxu3 }
 0x4d3   : > { %2126 = vst.msk [vmem:[#allocation2 + $0x40] sm:$0xff] %vm631_vm4, %v2093_v56 }
 0x4d4   : > { %2443 = vmatmul.f32.gmra.mxu0 %v2164_v28  ;;  %v2172_v28 = vld [vmem:[%s8433_s7 + $0x2b0] sm:$0xff] }
 0x4d5   : > { %2323 = vperm.xlu2 %4790, %v2229_v18   ;;  %v2221_v18 = vld [vmem:[%s8434_s8 + $0x138] sm:$0xff] }
 0x4d6   : > { %1635 = vperm.xlu1 %4789, %v1525_v19   ;;  %v2224_v19 = vld [vmem:[%s8434_s8 + $0x150] sm:$0xff] }
 0x4d7   : > { %1655 = vperm.xlu0 %4788, %v1529_v21   ;;  %v1523_v21 = vld [vmem:[%s8434_s8 + $0x88] sm:$0xff]  ;;  %2574 = vmatmul.f32.gmra.mxu2 %v2177_v48 }
 0x4d8   : > { %v2018_v55 = vpop.xlane.xlu2 %2017 }
 0x4d9   : > { %v2094_v25 = vmax.f32 %v1966_v52, %v2018_v55  ;;  %v6107_v27 = vpop.f32.mrf.mxu0  ;;  %v1970_v52 = vld [vmem:[#allocation2 + $0x68] sm:$0xff] }
 0x4db   : > { %2127 = vst.msk [vmem:[#allocation2 + $0x48] sm:$0xff] %vm631_vm4, %v2094_v25  ;;  %v1802_v25 = vpop.f32.mrf.mxu3 }
 0x4dc   : > { %2446 = vmatmul.f32.gmra.mxu0 %v2166_v44 }
 0x4dd   : > { %2318 = vperm.xlu2 %4790, %v2228_v32  }
 0x4de   : > { %2333 = vperm.xlu1 %4789, %v2231_v22   ;;  %v2174_v22 = vld [vmem:[%s8433_s7 + $0x2c0] sm:$0xff] }
 0x4df   : > { %2353 = vperm.xlu0 %4788, %v2235_v9   ;;  %v2218_v9 = vld [vmem:[%s8434_s8 + $0x120] sm:$0xff] }
 0x4e0   : > { %v2021_v3 = vpop.xlane.xlu1 %2020 }
 0x4e1   : > { %v2095_v13 = vmax.f32 %v1967_v38, %v2021_v3  ;;  %v6127_v15 = vpop.f32.mrf.mxu0  ;;  %v1522_v3 = vld [vmem:[%s8434_s8 + $0x80] sm:$0xff] }
 0x4e3   : > { %2128 = vst.msk [vmem:[#allocation2 + $0x50] sm:$0xff] %vm631_vm4, %v2095_v13  ;;  %v1971_v13 = vld [vmem:[#allocation2 + $0x70] sm:$0xff] }
 0x4e4   : > { %2449 = vmatmul.f32.gmra.mxu0 %v2168_v17  ;;  %v2179_v17 = vld [vmem:[%s8433_s7 + $0x2e8] sm:$0xff] }
 0x4e5   : > { %2303 = vperm.xlu2 %4790, %v2225_v24   ;;  %v1803_v24 = vadd.f32 %v1802_v25, %v5962_v5  ;;  %2577 = vmatmul.f32.gmra.mxu2 %v2179_v17 }
 0x4e6   : > { %2328 = vperm.xlu1 %4789, %v2230_v29  }
 0x4e7   : > { %1640 = vperm.xlu0 %4788, %v1526_v36  }
 0x4e8   : > { %v2024_v46 = vpop.xlane.xlu0 %2023 }
 0x4e9   : > { %v2096_v47 = vmax.f32 %v1968_v43, %v2024_v46  ;;  %v6145_v57 = vpop.f32.mrf.mxu0 }
 0x4eb   : > { %2129 = vst.msk [vmem:[#allocation2 + $0x58] sm:$0xff] %vm631_vm4, %v2096_v47  ;;  %v2176_v47 = vld [vmem:[%s8433_s7 + $0x2d0] sm:$0xff] }
 0x4ec   : > { %2452 = vmatmul.f32.gmra.mxu0 %v2170_v53 }
 0x4ed   : > { %2288 = vperm.xlu2 %4790, %v2222_v2   ;;  %v2215_v2 = vld [vmem:[%s8434_s8 + $0x108] sm:$0xff] }
 0x4ee   : > { %2313 = vperm.xlu1 %4789, %v2227_v58   ;;  %v1805_v58 = vpop.f32.mrf.mxu3 }
 0x4ef   : > { %2338 = vperm.xlu0 %4788, %v2232_v8  }
 0x4f0   : > { %v2027_v60 = vpop.xlane.xlu2 %2026 }
 0x4f1   : > { %v2097_v14 = vmax.f32 %v1969_v0, %v2027_v60  ;;  %v1909_v56 = vpop.f32.mrf.mxu0 }
 0x4f3   : > { %2130 = vst.msk [vmem:[#allocation2 + $0x60] sm:$0xff] %vm631_vm4, %v2097_v14  ;;  %v2181_v14 = vld [vmem:[%s8433_s7 + $0x2f8] sm:$0xff] }
 0x4f4   : > { %2455 = vmatmul.f32.gmra.mxu0 %v2172_v28  ;;  %2580 = vmatmul.f32.gmra.mxu2 %v2181_v14 }
 0x4f5   : > { %2283 = vperm.xlu2 %4790, %v2221_v18   ;;  %v2178_v18 = vld [vmem:[%s8433_s7 + $0x2e0] sm:$0xff] }
 0x4f6   : > { %2298 = vperm.xlu1 %4789, %v2224_v19   ;;  %v2214_v19 = vld [vmem:[%s8434_s8 + $0x100] sm:$0xff] }
 0x4f7   : > { %1625 = vperm.xlu0 %4788, %v1523_v21   ;;  %v1808_v21 = vpop.f32.mrf.mxu3 }
 0x4f8   : > { %v2030_v55 = vpop.xlane.xlu2 %2029  ;;  %v1809_v48 = vadd.f32 %v1808_v21, %v5903_v42  ;;  %v2220_v42 = vld [vmem:[%s8434_s8 + $0x130] sm:$0xff] }
 0x4f9   : > { %v2098_v44 = vmax.f32 %v1970_v52, %v2030_v55  ;;  %v6181_v32 = vpop.f32.mrf.mxu0  ;;  %v2183_v52 = vld [vmem:[%s8433_s7 + $0x308] sm:$0xff] }
 0x4fb   : > { %2131 = vst.msk [vmem:[#allocation2 + $0x68] sm:$0xff] %vm631_vm4, %v2098_v44  ;;  %v6190_v38 = vpop.permute.xlu0 %2383 }
 0x4fc   : > { %2458 = vmatmul.f32.gmra.mxu0 %v2174_v22  ;;  %v2180_v22 = vld [vmem:[%s8433_s7 + $0x2f0] sm:$0xff]  ;;  %2583 = vmatmul.f32.gmra.mxu2 %v2183_v52 }
 0x4fd   : > { %2268 = vperm.xlu2 %4790, %v2218_v9  }
 0x4fe   : > { %2273 = vperm.xlu1 %4789, %v2219_v30  }
 0x4ff   : > { %1620 = vperm.xlu0 %4788, %v1522_v3   ;;  %v2185_v3 = vld [vmem:[%s8433_s7 + $0x318] sm:$0xff] }
 0x500   : > { %v2033_v29 = vpop.xlane.xlu1 %2032  ;;  %v1676_v36 = vpop.permute.xlu2 %1675 }
 0x501   : > { %v2099_v43 = vmax.f32 %v1971_v13, %v2033_v29  ;;  %v1797_v45 = vadd.f32 %v1796_v39, %v1676_v36  ;;  %v1915_v46 = vpop.f32.mrf.mxu0  ;;  %v2216_v39 = vld [vmem:[%s8434_s8 + $0x110] sm:$0xff]  ;;  %v2182_v29 = vld [vmem:[%s8433_s7 + $0x300] sm:$0xff] }
 0x502   : > { %v6205_v53 = vadd.f32 %v1915_v46, %v1803_v24 }
 0x503   : > { %2132 = vst.msk [vmem:[#allocation2 + $0x70] sm:$0xff] %vm631_vm4, %v2099_v43  ;;  %v6211_v5 = vadd.f32 %v1909_v56, %v1797_v45  ;;  %v1671_v8 = vpop.permute.xlu0 %1670  ;;  %v2217_v43 = vld [vmem:[%s8434_s8 + $0x118] sm:$0xff] }
 0x504   : > { %1954 = vst.msk [vmem:[%s5689_s29 + $0xe8] sm:$0xff] %vm1924_vm3, %v6205_v53  ;;  %v1794_v0 = vadd.f32 %v6115_v16, %v1671_v8  ;;  %2461 = vmatmul.f32.gmra.mxu0 %v2176_v47  ;;  %v1806_v16 = vadd.f32 %v1805_v58, %v5917_v51  ;;  %v2223_v51 = vld [vmem:[%s8434_s8 + $0x148] sm:$0xff]  ;;  %2586 = vmatmul.f32.gmra.mxu2 %v2185_v3  ;;  %v2184_v58 = vld [vmem:[%s8433_s7 + $0x310] sm:$0xff] }
 0x505   : > { %1952 = vst.msk [vmem:[%s5689_s29 + $0xd8] sm:$0xff] %vm1924_vm3, %v6211_v5  ;;  %2253 = vperm.xlu2 %4790, %v2215_v2  }
 0x506   : > { %v6227_v60 = vadd.f32 %v6145_v57, %v1794_v0  ;;  %2258 = vperm.xlu1 %4789, %v2216_v39  }
 0x507   : > { %2308 = vperm.xlu0 %4788, %v2226_v10  }
 0x508   : > { %1951 = vst.msk [vmem:[%s5689_s29 + $0xd0] sm:$0xff] %vm1924_vm3, %v6227_v60  ;;  %v6236_v56 = vpop.permute.xlu2 %2373 }
 0x509   : > { %v1918_v28 = vpop.f32.mrf.mxu0 }
 0x50a   : > { %v1919_v57 = vadd.f32 %v1918_v28, %v1806_v16 }
 0x50c   : > { %1955 = vst.msk [vmem:[%s5689_s29 + $0xf0] sm:$0xff] %vm1924_vm3, %v1919_v57  ;;  %2464 = vmatmul.f32.gmra.mxu0 %v2178_v18 }
 0x50d   : > { %2248 = vperm.xlu2 %4790, %v2214_v19   ;;  %v6333_v19 = vpop.permute.xlu0 %2368 }
 0x50f   : > { %2293 = vperm.xlu0 %4788, %v2223_v51   ;;  %v2079_v51 = vsel %vm1924_vm3, %v1919_v57, -inf }
 0x510   : > { %v1661_v55 = vpop.permute.xlu2 %1660 }
 0x511   : > { %v1788_v25 = vadd.f32 %v6070_v59, %v1661_v55  ;;  %v1921_v44 = vpop.f32.mrf.mxu0  ;;  %v6268_v59 = vpop.f32.mrf.mxu2  ;;  %v2188_v55 = vld [vmem:[%s8433_s7 + $0x330] sm:$0xff] }
 0x512   : > { %v6257_v9 = vadd.f32 %v1921_v44, %v1809_v48  ;;  %v1972_v44 = vld [vmem:[#allocation2 + $0x78] sm:$0xff] }
 0x513   : > { %v6260_v30 = vadd.f32 %v6107_v27, %v1788_v25 }
 0x514   : > { %1956 = vst.msk [vmem:[%s5689_s29 + $0xf8] sm:$0xff] %vm1924_vm3, %v6257_v9  ;;  %2467 = vmatmul.f32.gmra.mxu0 %v2180_v22 }
 0x515   : > { %1949 = vst.msk [vmem:[%s5689_s29 + $0xc0] sm:$0xff] %vm1924_vm3, %v6260_v30 }
 0x517   : > { %2278 = vperm.xlu0 %4788, %v2220_v42  }
 0x518   : > { %v1681_v27 = vpop.permute.xlu1 %1680  ;;  %v6276_v13 = vpop.permute.xlu2 %2358 }
 0x519   : > { %v1800_v17 = vadd.f32 %v6163_v12, %v1681_v27  ;;  %v6279_v24 = vpop.f32.mrf.mxu0  ;;  %v6290_v45 = vpop.f32.mrf.mxu2  ;;  %v2187_v12 = vld [vmem:[%s8433_s7 + $0x328] sm:$0xff] }
 0x51a   : > { %2589 = vmatmul.f32.gmra.mxu2 %v2187_v12 }
 0x51b   : > { %v6285_v36 = vadd.f32 %v6181_v32, %v1800_v17 }
 0x51c   : > { %2470 = vmatmul.f32.gmra.mxu0 %v2182_v29  ;;  %v2190_v29 = vld [vmem:[%s8433_s7 + $0x340] sm:$0xff] }
 0x51d   : > { %1953 = vst.msk [vmem:[%s5689_s29 + $0xe0] sm:$0xff] %vm1924_vm3, %v6285_v36 }
 0x51f   : > { %2263 = vperm.xlu0 %4788, %v2217_v43  }
 0x520   : > { %v6298_v46 = vpop.permute.xlu1 %2378  ;;  %v1646_v32 = vpop.permute.xlu2 %1645 }
 0x521   : > { %v1779_v47 = vadd.f32 %v5982_v1, %v1646_v32  ;;  %v6301_v2 = vpop.f32.mrf.mxu0  ;;  %v6309_v39 = vpop.f32.mrf.mxu2  ;;  %v2189_v1 = vld [vmem:[%s8433_s7 + $0x338] sm:$0xff] }
 0x522   : > { %2592 = vmatmul.f32.gmra.mxu2 %v2189_v1 }
 0x523   : > { %v6307_v8 = vadd.f32 %v6054_v41, %v1779_v47  ;;  %v2186_v41 = vld [vmem:[%s8433_s7 + $0x320] sm:$0xff] }
 0x524   : > { %2473 = vmatmul.f32.gmra.mxu0 %v2184_v58 }
 0x525   : > { %1946 = vst.msk [vmem:[%s5689_s29 + $0xa8] sm:$0xff] %vm1924_vm3, %v6307_v8 }
 0x528   : > { %v1666_v0 = vpop.permute.xlu1 %1665  ;;  %v6317_v10 = vpop.permute.xlu2 %2343 }
 0x529   : > { %v1791_v14 = vadd.f32 %v6087_v26, %v1666_v0  ;;  %v6320_v16 = vpop.f32.mrf.mxu0  ;;  %v6328_v18 = vpop.f32.mrf.mxu2  ;;  %v2191_v26 = vld [vmem:[%s8433_s7 + $0x348] sm:$0xff]  ;;  %v2873_v0 = vld [vmem:[#allocation2 + $0x70] sm:$0xff] }
 0x52a   : > { %2595 = vmatmul.f32.gmra.mxu2 %v2191_v26  ;;  %v2871_v26 = vld [vmem:[#allocation2 + $0x60] sm:$0xff] }
 0x52b   : > { %v6326_v28 = vadd.f32 %v6127_v15, %v1791_v14  ;;  %v2872_v14 = vld [vmem:[#allocation2 + $0x68] sm:$0xff] }
 0x52c   : > { %2476 = vmatmul.f32.gmra.mxu0 %v2186_v41 }
 0x52d   : > { %1950 = vst.msk [vmem:[%s5689_s29 + $0xc8] sm:$0xff] %vm1924_vm3, %v6326_v28 }
 0x530   : > { %2080 = vmax.xlane.f32.xlu1 %v2079_v51  ;;  %v6339_v21 = vpop.permute.xlu1 %2363  ;;  %v1631_v15 = vpop.permute.xlu2 %1630  ;;  %v2197_v51 = vld [vmem:[%s8433_s7 + $0x378] sm:$0xff] }
 0x531   : > { %v1770_v52 = vadd.f32 %v5864_v20, %v1631_v15  ;;  %v6342_v48 = vpop.f32.mrf.mxu0  ;;  %v6350_v57 = vpop.f32.mrf.mxu2  ;;  %v2193_v20 = vld [vmem:[%s8433_s7 + $0x358] sm:$0xff] }
 0x532   : > { %2598 = vmatmul.f32.gmra.mxu2 %v2193_v20 }
 0x533   : > { %v6348_v25 = vadd.f32 %v5986_v62, %v1770_v52 }
 0x534   : > { %2479 = vmatmul.f32.gmra.mxu0 %v2188_v55  ;;  %v2870_v55 = vld [vmem:[#allocation2 + $0x58] sm:$0xff] }
 0x535   : > { %1943 = vst.msk [vmem:[%s5689_s29 + $0x90] sm:$0xff] %vm1924_vm3, %v6348_v25 }
 0x536   : > { %v2036_v22 = vpop.xlane.xlu0 %2035 }
 0x537   : > { %v2100_v42 = vmax.f32 %v1972_v44, %v2036_v22 }
 0x538   : > { %v1651_v3 = vpop.permute.xlu1 %1650  ;;  %v6358_v27 = vpop.permute.xlu2 %2323 }
 0x539   : > { %2133 = vst.msk [vmem:[#allocation2 + $0x78] sm:$0xff] %vm631_vm4, %v2100_v42  ;;  %v1782_v62 = vadd.f32 %v6027_v35, %v1651_v3  ;;  %v6362_v17 = vpop.f32.mrf.mxu0  ;;  %v6370_v12 = vpop.f32.mrf.mxu2  ;;  %v2195_v35 = vld [vmem:[%s8433_s7 + $0x368] sm:$0xff]  ;;  %v2194_v42 = vld [vmem:[%s8433_s7 + $0x360] sm:$0xff] }
 0x53a   : > { %2601 = vmatmul.f32.gmra.mxu2 %v2195_v35  ;;  %v2868_v35 = vld [vmem:[#allocation2 + $0x48] sm:$0xff] }
 0x53b   : > { %v6368_v43 = vadd.f32 %v6072_v7, %v1782_v62  ;;  %v2192_v7 = vld [vmem:[%s8433_s7 + $0x350] sm:$0xff] }
 0x53c   : > { %2482 = vmatmul.f32.gmra.mxu0 %v2190_v29  ;;  %v2869_v62 = vld [vmem:[#allocation2 + $0x50] sm:$0xff] }
 0x53d   : > { %1947 = vst.msk [vmem:[%s5689_s29 + $0xb0] sm:$0xff] %vm1924_vm3, %v6368_v43 }
 0x540   : > { %v6378_v32 = vpop.permute.xlu1 %2348  ;;  %v6380_v47 = vpop.permute.xlu2 %2318  ;;  %v2874_v58 = vld [vmem:[#allocation2 + $0x78] sm:$0xff] }
 0x541   : > { %v6382_v1 = vpop.f32.mrf.mxu0  ;;  %3083 = vmatpush.msrb.mxu3 %v2874_v58  ;;  %v6387_v41 = vpop.f32.mrf.mxu2 }
 0x542   : > { %2604 = vmatmul.f32.gmra.mxu2 %v2197_v51 }
 0x543   : > { %3084 = vmatpush.msrb.mxu3 %v2873_v0 }
 0x544   : > { %2485 = vmatmul.f32.gmra.mxu0 %v2192_v7 }
 0x545   : > { %3085 = vmatpush.msrb.mxu3 %v2872_v14 }
 0x547   : > { %3086 = vmatpush.msrb.mxu3 %v2871_v26  ;;  %v2866_v26 = vld [vmem:[#allocation2 + $0x38] sm:$0xff] }
 0x548   : > { %v1636_v15 = vpop.permute.xlu1 %1635  ;;  %v6392_v52 = vpop.permute.xlu2 %2303 }
 0x549   : > { %v1773_v44 = vadd.f32 %v5899_v40, %v1636_v15  ;;  %v6395_v22 = vpop.f32.mrf.mxu0  ;;  %v1656_v20 = vpop.permute.xlu0 %1655  ;;  %3087 = vmatpush.msrb.mxu3 %v2870_v55  ;;  %v2196_v55 = vld [vmem:[%s8433_s7 + $0x370] sm:$0xff] }
 0x54a   : > { %v1785_v3 = vadd.f32 %v6049_v49, %v1656_v20  ;;  %v2557_v58 = vpop.f32.mrf.mxu2  ;;  %v2867_v49 = vld [vmem:[#allocation2 + $0x40] sm:$0xff]  ;;  %v2864_v20 = vld [vmem:[#allocation2 + $0x28] sm:$0xff] }
 0x54b   : > { %3088 = vmatpush.msrb.mxu3 %v2869_v62  ;;  %v1886_v29 = vadd.f32 %v6018_v31, %v1773_v44  ;;  %v2199_v31 = vld [vmem:[%s8433_s7 + $0x388] sm:$0xff]  ;;  %v2865_v44 = vld [vmem:[#allocation2 + $0x30] sm:$0xff]  ;;  %v2863_v62 = vld [vmem:[#allocation2 + $0x20] sm:$0xff] }
 0x54c   : > { %2488 = vmatmul.f32.gmra.mxu0 %v2194_v42  ;;  %v1898_v40 = vadd.f32 %v6089_v50, %v1785_v3  ;;  %2607 = vmatmul.f32.gmra.mxu2 %v2199_v31  ;;  %v2064_v3 = vsel %vm1924_vm3, %v6326_v28, -inf  ;;  %v2198_v28 = vld [vmem:[%s8433_s7 + $0x380] sm:$0xff] }
 0x54d   : > { %3089 = vmatpush.msrb.mxu3 %v2868_v35  ;;  %v2046_v7 = vsel %vm1924_vm3, %v1886_v29, -inf  ;;  %1944 = vst.msk [vmem:[%s5689_s29 + $0x98] sm:$0xff] %vm1924_vm3, %v1886_v29  ;;  %v2201_v29 = vld [vmem:[%s8433_s7 + $0x398] sm:$0xff] }
 0x54e   : > { %2047 = vmax.xlane.f32.xlu0 %v2046_v7  ;;  %1948 = vst.msk [vmem:[%s5689_s29 + $0xb8] sm:$0xff] %vm1924_vm3, %v1898_v40  ;;  %v2058_v0 = vsel %vm1924_vm3, %v1898_v40, -inf  ;;  %v2862_v7 = vld [vmem:[#allocation2 + $0x18] sm:$0xff] }
 0x54f   : > { %2059 = vmax.xlane.f32.xlu2 %v2058_v0  ;;  %3090 = vmatpush.msrb.mxu3 %v2867_v49 }
 0x550   : > { %v6412_v14 = vpop.permute.xlu1 %2333  ;;  %v2289_v50 = vpop.permute.xlu2 %2288 }
 0x551   : > { %v2444_v51 = vpop.f32.mrf.mxu0  ;;  %v6414_v15 = vpop.permute.xlu0 %2353  ;;  %3091 = vmatpush.msrb.mxu3 %v2866_v26 }
 0x552   : > { %v2560_v42 = vpop.f32.mrf.mxu2 }
 0x553   : > { %3092 = vmatpush.msrb.mxu3 %v2865_v44  ;;  %v2861_v44 = vld [vmem:[#allocation2 + $0x10] sm:$0xff] }
 0x554   : > { %2491 = vmatmul.f32.gmra.mxu0 %v2196_v55  ;;  %2610 = vmatmul.f32.gmra.mxu2 %v2201_v29 }
 0x555   : > { %3093 = vmatpush.msrb.mxu3 %v2864_v20 }
 0x557   : > { %2065 = vmax.xlane.f32.xlu2 %v2064_v3  ;;  %3094 = vmatpush.msrb.mxu3 %v2863_v62 }
 0x558   : > { %v6424_v35 = vpop.permute.xlu1 %2328  ;;  %v2284_v40 = vpop.permute.xlu2 %2283 }
 0x559   : > { %v2445_v0 = vadd.f32 %v2444_v51, %v2284_v40  ;;  %v2447_v49 = vpop.f32.mrf.mxu0  ;;  %v1641_v31 = vpop.permute.xlu0 %1640  ;;  %3095 = vmatpush.msrb.mxu3 %v2862_v7  ;;  %v2860_v51 = vld [vmem:[#allocation2 + $0x8] sm:$0xff] }
 0x55a   : > { %v2448_v26 = vadd.f32 %v2447_v49, %v2289_v50  ;;  %v1776_v55 = vadd.f32 %v5942_v61, %v1641_v31  ;;  %v6435_v40 = vpop.f32.mrf.mxu2  ;;  %v2203_v50 = vld [vmem:[%s8433_s7 + $0x3a8] sm:$0xff]  ;;  %v2200_v31 = vld [vmem:[%s8433_s7 + $0x390] sm:$0xff] }
 0x55b   : > { %v6430_v20 = vadd.f32 %v2557_v58, %v2445_v0  ;;  %3096 = vmatpush.msrb.mxu3 %v2861_v44  ;;  %v2859_v58 = vld [vmem:[#allocation2] sm:$0xff] }
 0x55c   : > { %v6432_v3 = vadd.f32 %v2560_v42, %v2448_v26  ;;  %2494 = vmatmul.f32.gmra.mxu0 %v2198_v28  ;;  %v1889_v62 = vadd.f32 %v6037_v11, %v1776_v55  ;;  %v2070_v11 = vsel %vm1924_vm3, %v6211_v5, -inf  ;;  %2613 = vmatmul.f32.gmra.mxu2 %v2203_v50  ;;  %v2205_v26 = vld [vmem:[%s8433_s7 + $0x3b8] sm:$0xff]  ;;  %v2076_v55 = vsel %vm1924_vm3, %v6205_v53, -inf }
 0x55d   : > { %2639 = vst.msk [vmem:[%s5689_s29 + $0x138] sm:$0xff] %vm1924_vm3, %v6430_v20  ;;  %3097 = vmatpush.msrb.mxu3 %v2860_v51 }
 0x55e   : > { %2640 = vst.msk [vmem:[%s5689_s29 + $0x140] sm:$0xff] %vm1924_vm3, %v6432_v3  ;;  %v2049_v61 = vsel %vm1924_vm3, %v1889_v62, -inf }
 0x55f   : > { %1945 = vst.msk [vmem:[%s5689_s29 + $0xa0] sm:$0xff] %vm1924_vm3, %v1889_v62  ;;  %2050 = vmax.xlane.f32.xlu0 %v2049_v61  ;;  %3098 = vmatpush.msrb.mxu3 %v2859_v58 }
 0x560   : > { %2071 = vmax.xlane.f32.xlu2 %v2070_v11  ;;  %v6451_v42 = vpop.permute.xlu1 %2313  ;;  %v2269_v29 = vpop.permute.xlu2 %2268 }
 0x561   : > { %v2436_v7 = vadd.f32 %v6362_v17, %v2269_v29  ;;  %v6454_v0 = vpop.f32.mrf.mxu0  ;;  %v6456_v49 = vpop.permute.xlu0 %2338  ;;  %v2052_v17 = vsel %vm1924_vm3, %v6307_v8, -inf  ;;  %v2202_v8 = vld [vmem:[%s8433_s7 + $0x3a0] sm:$0xff] }
 0x562   : > { %v2566_v5 = vpop.f32.mrf.mxu2 }
 0x563   : > { %v6462_v28 = vadd.f32 %v6350_v57, %v2436_v7  ;;  %v2055_v7 = vsel %vm1924_vm3, %v6368_v43, -inf  ;;  %v2204_v43 = vld [vmem:[%s8433_s7 + $0x3b0] sm:$0xff] }
 0x564   : > { %2497 = vmatmul.f32.gmra.mxu0 %v2200_v31  ;;  %2616 = vmatmul.f32.gmra.mxu2 %v2205_v26 }
 0x565   : > { %2636 = vst.msk [vmem:[%s5689_s29 + $0x120] sm:$0xff] %vm1924_vm3, %v6462_v28 }
 0x567   : > { %2053 = vmax.xlane.f32.xlu0 %v2052_v17 }
 0x568   : > { %2077 = vmax.xlane.f32.xlu2 %v2076_v55  ;;  %v2299_v57 = vpop.permute.xlu1 %2298  ;;  %v2254_v44 = vpop.permute.xlu2 %2253 }
 0x569   : > { %v2427_v51 = vadd.f32 %v6301_v2, %v2254_v44  ;;  %v2453_v62 = vpop.f32.mrf.mxu0  ;;  %v1626_v61 = vpop.permute.xlu0 %1625 }
 0x56a   : > { %v2454_v58 = vadd.f32 %v2453_v62, %v2299_v57  ;;  %v1767_v50 = vadd.f32 %v5828_v37, %v1626_v61  ;;  %v2569_v2 = vpop.f32.mrf.mxu2  ;;  %v2207_v37 = vld [vmem:[%s8433_s7 + $0x3c8] sm:$0xff] }
 0x56b   : > { %v6480_v53 = vadd.f32 %v6290_v45, %v2427_v51 }
 0x56c   : > { %v6483_v11 = vadd.f32 %v5952_v4, %v1767_v50  ;;  %v6485_v29 = vadd.f32 %v2566_v5, %v2454_v58  ;;  %2500 = vmatmul.f32.gmra.mxu0 %v2202_v8  ;;  %2619 = vmatmul.f32.gmra.mxu2 %v2207_v37 }
 0x56d   : > { %2633 = vst.msk [vmem:[%s5689_s29 + $0x108] sm:$0xff] %vm1924_vm3, %v6480_v53 }
 0x56e   : > { %1942 = vst.msk [vmem:[%s5689_s29 + $0x88] sm:$0xff] %vm1924_vm3, %v6483_v11 }
 0x56f   : > { %2642 = vst.msk [vmem:[%s5689_s29 + $0x150] sm:$0xff] %vm1924_vm3, %v6485_v29  ;;  %2056 = vmax.xlane.f32.xlu0 %v2055_v7 }
 0x570   : > { %v2274_v4 = vpop.permute.xlu1 %2273  ;;  %v2249_v45 = vpop.permute.xlu2 %2248 }
 0x571   : > { %v2439_v31 = vadd.f32 %v6382_v1, %v2274_v4  ;;  %v2424_v5 = vadd.f32 %v6279_v24, %v2249_v45  ;;  %v2456_v17 = vpop.f32.mrf.mxu0  ;;  %v1621_v26 = vpop.permute.xlu0 %1620  ;;  %v2208_v4 = vld [vmem:[%s8433_s7 + $0x3d0] sm:$0xff] }
 0x572   : > { %v2457_v55 = vadd.f32 %v2456_v17, %v6392_v52  ;;  %v1764_v57 = vadd.f32 %v5797_v23, %v1621_v26  ;;  %v2572_v62 = vpop.f32.mrf.mxu2  ;;  %v2061_v23 = vsel %vm1924_vm3, %v6260_v30, -inf  ;;  %v2206_v30 = vld [vmem:[%s8433_s7 + $0x3c0] sm:$0xff]  ;;  %v2073_v26 = vsel %vm1924_vm3, %v6285_v36, -inf }
 0x573   : > { %v6509_v44 = vadd.f32 %v6370_v12, %v2439_v31  ;;  %v6512_v1 = vadd.f32 %v6268_v59, %v2424_v5  ;;  %v2209_v59 = vld [vmem:[%s8433_s7 + $0x3d8] sm:$0xff] }
 0x574   : > { %v6515_v24 = vadd.f32 %v5921_v54, %v1764_v57  ;;  %v6517_v51 = vadd.f32 %v2569_v2, %v2457_v55  ;;  %2503 = vmatmul.f32.gmra.mxu0 %v2204_v43  ;;  %2622 = vmatmul.f32.gmra.mxu2 %v2209_v59  ;;  %v2210_v43 = vld [vmem:[%s8433_s7 + $0x3e0] sm:$0xff]  ;;  %v2082_v59 = vsel %vm1924_vm3, %v6257_v9, -inf }
 0x575   : > { %2637 = vst.msk [vmem:[%s5689_s29 + $0x128] sm:$0xff] %vm1924_vm3, %v6509_v44 }
 0x576   : > { %2632 = vst.msk [vmem:[%s5689_s29 + $0x100] sm:$0xff] %vm1924_vm3, %v6512_v1 }
 0x577   : > { %1941 = vst.msk [vmem:[%s5689_s29 + $0x80] sm:$0xff] %vm1924_vm3, %v6515_v24  ;;  %2062 = vmax.xlane.f32.xlu0 %v2061_v23 }
 0x578   : > { %2643 = vst.msk [vmem:[%s5689_s29 + $0x158] sm:$0xff] %vm1924_vm3, %v6517_v51  ;;  %v2259_v54 = vpop.permute.xlu1 %2258 }
 0x579   : > { %v2430_v12 = vadd.f32 %v6320_v16, %v2259_v54  ;;  %v2459_v52 = vpop.f32.mrf.mxu0  ;;  %v2309_v61 = vpop.permute.xlu0 %2308  ;;  %v2067_v16 = vsel %vm1924_vm3, %v6227_v60, -inf }
 0x57a   : > { %v2460_v8 = vadd.f32 %v2459_v52, %v2309_v61  ;;  %v2575_v2 = vpop.f32.mrf.mxu2 }
 0x57b   : > { %v6541_v58 = vadd.f32 %v6309_v39, %v2430_v12  ;;  %v2211_v39 = vld [vmem:[%s8433_s7 + $0x3e8] sm:$0xff] }
 0x57c   : > { %v6543_v50 = vadd.f32 %v2572_v62, %v2460_v8  ;;  %2506 = vmatmul.f32.gmra.mxu0 %v2206_v30  ;;  %2625 = vmatmul.f32.gmra.mxu2 %v2211_v39 }
 0x57d   : > { %2634 = vst.msk [vmem:[%s5689_s29 + $0x110] sm:$0xff] %vm1924_vm3, %v6541_v58 }
 0x57e   : > { %2644 = vst.msk [vmem:[%s5689_s29 + $0x160] sm:$0xff] %vm1924_vm3, %v6543_v50 }
 0x57f   : > { %2068 = vmax.xlane.f32.xlu0 %v2067_v16 }
 0x581   : > { %v2462_v7 = vpop.f32.mrf.mxu0  ;;  %v2294_v37 = vpop.permute.xlu0 %2293 }
 0x582   : > { %v2463_v45 = vadd.f32 %v2462_v7, %v6451_v42  ;;  %v2451_v31 = vadd.f32 %v6454_v0, %v2294_v37  ;;  %v2578_v17 = vpop.f32.mrf.mxu2  ;;  %v2213_v42 = vld [vmem:[%s8433_s7 + $0x3f8] sm:$0xff] }
 0x584   : > { %v6562_v5 = vadd.f32 %v6435_v40, %v2451_v31  ;;  %v6564_v60 = vadd.f32 %v2575_v2, %v2463_v45  ;;  %2509 = vmatmul.f32.gmra.mxu0 %v2208_v4  ;;  %2628 = vmatmul.f32.gmra.mxu2 %v2213_v42  ;;  %v1987_v2 = vld [vmem:[#allocation2 + $0xf0] sm:$0xff] }
 0x586   : > { %2641 = vst.msk [vmem:[%s5689_s29 + $0x148] sm:$0xff] %vm1924_vm3, %v6562_v5 }
 0x587   : > { %2645 = vst.msk [vmem:[%s5689_s29 + $0x168] sm:$0xff] %vm1924_vm3, %v6564_v60  ;;  %2074 = vmax.xlane.f32.xlu0 %v2073_v26 }
 0x589   : > { %v2465_v40 = vpop.f32.mrf.mxu0  ;;  %v2279_v0 = vpop.permute.xlu0 %2278 }
 0x58a   : > { %v2466_v55 = vadd.f32 %v2465_v40, %v6380_v47  ;;  %v2442_v36 = vadd.f32 %v6395_v22, %v2279_v0  ;;  %v2581_v23 = vpop.f32.mrf.mxu2  ;;  %v2212_v22 = vld [vmem:[%s8433_s7 + $0x3f0] sm:$0xff] }
 0x58c   : > { %v6583_v57 = vadd.f32 %v6387_v41, %v2442_v36  ;;  %v6585_v62 = vadd.f32 %v2578_v17, %v2466_v55  ;;  %2512 = vmatmul.f32.gmra.mxu0 %v2210_v43 }
 0x58e   : > { %2638 = vst.msk [vmem:[%s5689_s29 + $0x130] sm:$0xff] %vm1924_vm3, %v6583_v57 }
 0x58f   : > { %2646 = vst.msk [vmem:[%s5689_s29 + $0x170] sm:$0xff] %vm1924_vm3, %v6585_v62  ;;  %2083 = vmax.xlane.f32.xlu0 %v2082_v59  ;;  %v1976_v59 = vld [vmem:[#allocation2 + $0x98] sm:$0xff] }
 0x591   : > { %v2468_v47 = vpop.f32.mrf.mxu0  ;;  %v2264_v41 = vpop.permute.xlu0 %2263 }
 0x592   : > { %v2469_v54 = vadd.f32 %v2468_v47, %v6358_v27  ;;  %v2433_v12 = vadd.f32 %v6342_v48, %v2264_v41  ;;  %v2584_v9 = vpop.f32.mrf.mxu2  ;;  %v2927_v47 = vld [vmem:[%s8435_s9 + $0x20] sm:$0xff]  ;;  %v1980_v41 = vld [vmem:[#allocation2 + $0xb8] sm:$0xff] }
 0x594   : > { %v6601_v52 = vadd.f32 %v6328_v18, %v2433_v12  ;;  %v6603_v61 = vadd.f32 %v2581_v23, %v2469_v54  ;;  %2515 = vmatmul.f32.gmra.mxu0 %v2212_v22 }
 0x596   : > { %2635 = vst.msk [vmem:[%s5689_s29 + $0x118] sm:$0xff] %vm1924_vm3, %v6601_v52 }
 0x597   : > { %2647 = vst.msk [vmem:[%s5689_s29 + $0x178] sm:$0xff] %vm1924_vm3, %v6603_v61 }
 0x599   : > { %v2471_v30 = vpop.f32.mrf.mxu0 }
 0x59a   : > { %v2472_v8 = vadd.f32 %v2471_v30, %v6424_v35  ;;  %v2587_v48 = vpop.f32.mrf.mxu2 }
 0x59c   : > { %v6612_v27 = vadd.f32 %v2584_v9, %v2472_v8 }
 0x59e   : > { %2648 = vst.msk [vmem:[%s5689_s29 + $0x180] sm:$0xff] %vm1924_vm3, %v6612_v27 }
 0x5a1   : > { %v2474_v18 = vpop.f32.mrf.mxu0 }
 0x5a2   : > { %v2475_v16 = vadd.f32 %v2474_v18, %v6412_v14  ;;  %v2590_v4 = vpop.f32.mrf.mxu2 }
 0x5a3   : > { %v2081_v39 = vpop.xlane.xlu1 %2080 }
 0x5a4   : > { %v6618_v7 = vadd.f32 %v2587_v48, %v2475_v16  ;;  %v2115_v37 = vmax.f32 %v1987_v2, %v2081_v39  ;;  %v2931_v2 = vld [vmem:[%s8435_s9 + $0x40] sm:$0xff] }
 0x5a6   : > { %2649 = vst.msk [vmem:[%s5689_s29 + $0x188] sm:$0xff] %vm1924_vm3, %v6618_v7 }
 0x5a7   : > { %2148 = vst.msk [vmem:[#allocation2 + $0xf0] sm:$0xff] %vm631_vm4, %v2115_v37 }
 0x5a9   : > { %v2477_v35 = vpop.f32.mrf.mxu0 }
 0x5aa   : > { %v2478_v45 = vadd.f32 %v2477_v35, %v6456_v49  ;;  %v2593_v17 = vpop.f32.mrf.mxu2  ;;  %v2923_v49 = vld [vmem:[%s8435_s9] sm:$0xff] }
 0x5ab   : > { %3099 = vmatmul.f32.vlgmr.msrb.gmra.mxu3 %v2923_v49 }
 0x5ac   : > { %v6625_v31 = vadd.f32 %v2590_v4, %v2478_v45 }
 0x5ae   : > { %2650 = vst.msk [vmem:[%s5689_s29 + $0x190] sm:$0xff] %vm1924_vm3, %v6625_v31 }
 0x5b1   : > { %v2480_v14 = vpop.f32.mrf.mxu0 }
 0x5b2   : > { %v2481_v26 = vadd.f32 %v2480_v14, %v6317_v10  ;;  %v2596_v40 = vpop.f32.mrf.mxu2  ;;  %v2935_v14 = vld [vmem:[%s8435_s9 + $0x60] sm:$0xff] }
 0x5b3   : > { %3102 = vmatmul.f32.gmra.mxu3 %v2927_v47 }
 0x5b4   : > { %v2594_v42 = vadd.f32 %v2593_v17, %v2481_v26  ;;  %v1977_v26 = vld [vmem:[#allocation2 + $0xa0] sm:$0xff] }
 0x5b6   : > { %2651 = vst.msk [vmem:[%s5689_s29 + $0x198] sm:$0xff] %vm1924_vm3, %v2594_v42  ;;  %v2753_v0 = vsel %vm1924_vm3, %v2594_v42, -inf }
 0x5b7   : > { %2754 = vmax.xlane.f32.xlu1 %v2753_v0 }
 0x5b9   : > { %v2483_v43 = vpop.f32.mrf.mxu0 }
 0x5ba   : > { %v2484_v55 = vadd.f32 %v2483_v43, %v6378_v32  ;;  %v2599_v23 = vpop.f32.mrf.mxu2 }
 0x5bb   : > { %3105 = vmatmul.f32.gmra.mxu3 %v2931_v2  ;;  %v1979_v2 = vld [vmem:[#allocation2 + $0xb0] sm:$0xff] }
 0x5bc   : > { %v2597_v36 = vadd.f32 %v2596_v40, %v2484_v55 }
 0x5be   : > { %2652 = vst.msk [vmem:[%s5689_s29 + $0x1a0] sm:$0xff] %vm1924_vm3, %v2597_v36  ;;  %v2756_v10 = vsel %vm1924_vm3, %v2597_v36, -inf }
 0x5bf   : > { %2757 = vmax.xlane.f32.xlu1 %v2756_v10 }
 0x5c1   : > { %v2486_v22 = vpop.f32.mrf.mxu0  ;;  %v2048_v54 = vpop.xlane.xlu0 %2047 }
 0x5c2   : > { %v2487_v12 = vadd.f32 %v2486_v22, %v6414_v15  ;;  %v2104_v32 = vmax.f32 %v1976_v59, %v2048_v54  ;;  %v2060_v9 = vpop.xlane.xlu2 %2059  ;;  %v2602_v48 = vpop.f32.mrf.mxu2  ;;  %v1982_v15 = vld [vmem:[#allocation2 + $0xc8] sm:$0xff]  ;;  %v2939_v59 = vld [vmem:[%s8435_s9 + $0x80] sm:$0xff] }
 0x5c3   : > { %v2108_v30 = vmax.f32 %v1980_v41, %v2060_v9  ;;  %3108 = vmatmul.f32.gmra.mxu3 %v2935_v14  ;;  %v1986_v41 = vld [vmem:[#allocation2 + $0xe8] sm:$0xff] }
 0x5c4   : > { %2137 = vst.msk [vmem:[#allocation2 + $0x98] sm:$0xff] %vm631_vm4, %v2104_v32  ;;  %v2600_v8 = vadd.f32 %v2599_v23, %v2487_v12 }
 0x5c5   : > { %2141 = vst.msk [vmem:[#allocation2 + $0xb8] sm:$0xff] %vm631_vm4, %v2108_v30 }
 0x5c6   : > { %2653 = vst.msk [vmem:[%s5689_s29 + $0x1a8] sm:$0xff] %vm1924_vm3, %v2600_v8  ;;  %v2759_v18 = vsel %vm1924_vm3, %v2600_v8, -inf }
 0x5c7   : > { %2760 = vmax.xlane.f32.xlu1 %v2759_v18  ;;  %v2043_v18 = vsel %vm1924_vm3, %v6348_v25, -inf }
 0x5c9   : > { %v2489_v16 = vpop.f32.mrf.mxu0 }
 0x5ca   : > { %v2490_v39 = vadd.f32 %v2489_v16, %v6276_v13  ;;  %v2066_v37 = vpop.xlane.xlu2 %2065  ;;  %v2605_v45 = vpop.f32.mrf.mxu2  ;;  %v1984_v13 = vld [vmem:[#allocation2 + $0xd8] sm:$0xff] }
 0x5cb   : > { %v2110_v4 = vmax.f32 %v1982_v15, %v2066_v37  ;;  %3111 = vmatmul.f32.gmra.mxu3 %v2939_v59 }
 0x5cc   : > { %v2603_v35 = vadd.f32 %v2602_v48, %v2490_v39 }
 0x5cd   : > { %2143 = vst.msk [vmem:[#allocation2 + $0xc8] sm:$0xff] %vm631_vm4, %v2110_v4 }
 0x5ce   : > { %2654 = vst.msk [vmem:[%s5689_s29 + $0x1b0] sm:$0xff] %vm1924_vm3, %v2603_v35  ;;  %v2762_v17 = vsel %vm1924_vm3, %v2603_v35, -inf }
 0x5cf   : > { %2763 = vmax.xlane.f32.xlu0 %v2762_v17  ;;  %v2947_v17 = vld [vmem:[%s8435_s9 + $0xc0] sm:$0xff] }
 0x5d1   : > { %v2492_v42 = vpop.f32.mrf.mxu0 }
 0x5d2   : > { %v2493_v40 = vadd.f32 %v2492_v42, %v6339_v21  ;;  %v2051_v0 = vpop.xlane.xlu0 %2050  ;;  %v2608_v23 = vpop.f32.mrf.mxu2  ;;  %v1978_v21 = vld [vmem:[#allocation2 + $0xa8] sm:$0xff] }
 0x5d3   : > { %v2105_v49 = vmax.f32 %v1977_v26, %v2051_v0  ;;  %v2072_v43 = vpop.xlane.xlu2 %2071 }
 0x5d4   : > { %v2112_v55 = vmax.f32 %v1984_v13, %v2072_v43  ;;  %v2606_v36 = vadd.f32 %v2605_v45, %v2493_v40  ;;  %v2741_v45 = vsel %vm1924_vm3, %v6603_v61, -inf  ;;  %v2951_v43 = vld [vmem:[%s8435_s9 + $0xe0] sm:$0xff] }
 0x5d5   : > { %2138 = vst.msk [vmem:[#allocation2 + $0xa0] sm:$0xff] %vm631_vm4, %v2105_v49  ;;  %v2738_v49 = vsel %vm1924_vm3, %v6585_v62, -inf }
 0x5d6   : > { %2145 = vst.msk [vmem:[#allocation2 + $0xd8] sm:$0xff] %vm631_vm4, %v2112_v55  ;;  %v2765_v10 = vsel %vm1924_vm3, %v2606_v36, -inf }
 0x5d7   : > { %2655 = vst.msk [vmem:[%s5689_s29 + $0x1b8] sm:$0xff] %vm1924_vm3, %v2606_v36  ;;  %2766 = vmax.xlane.f32.xlu0 %v2765_v10 }
 0x5d9   : > { %v2495_v47 = vpop.f32.mrf.mxu0 }
 0x5da   : > { %v2496_v22 = vadd.f32 %v2495_v47, %v6333_v19  ;;  %v2054_v54 = vpop.xlane.xlu0 %2053  ;;  %v2611_v8 = vpop.f32.mrf.mxu2  ;;  %v2943_v19 = vld [vmem:[%s8435_s9 + $0xa0] sm:$0xff]  ;;  %v2729_v47 = vsel %vm1924_vm3, %v6517_v51, -inf }
 0x5db   : > { %v2106_v12 = vmax.f32 %v1978_v21, %v2054_v54  ;;  %v2078_v32 = vpop.xlane.xlu2 %2077  ;;  %3114 = vmatmul.f32.gmra.mxu3 %v2943_v19 }
 0x5dc   : > { %v2114_v9 = vmax.f32 %v1986_v41, %v2078_v32  ;;  %v2609_v30 = vadd.f32 %v2608_v23, %v2496_v22  ;;  %v2955_v41 = vld [vmem:[%s8435_s9 + $0x100] sm:$0xff] }
 0x5dd   : > { %2139 = vst.msk [vmem:[#allocation2 + $0xa8] sm:$0xff] %vm631_vm4, %v2106_v12 }
 0x5de   : > { %2147 = vst.msk [vmem:[#allocation2 + $0xe8] sm:$0xff] %vm631_vm4, %v2114_v9  ;;  %v2768_v48 = vsel %vm1924_vm3, %v2609_v30, -inf }
 0x5df   : > { %2656 = vst.msk [vmem:[%s5689_s29 + $0x1c0] sm:$0xff] %vm1924_vm3, %v2609_v30  ;;  %2769 = vmax.xlane.f32.xlu1 %v2768_v48  ;;  %2044 = vmax.xlane.f32.xlu0 %v2043_v18  ;;  %v2959_v48 = vld [vmem:[%s8435_s9 + $0x120] sm:$0xff] }
 0x5e1   : > { %v2498_v15 = vpop.f32.mrf.mxu0 }
 0x5e2   : > { %v2499_v16 = vadd.f32 %v2498_v15, %v6236_v56  ;;  %v2057_v39 = vpop.xlane.xlu0 %2056  ;;  %v2614_v35 = vpop.f32.mrf.mxu2  ;;  %v1981_v56 = vld [vmem:[#allocation2 + $0xc0] sm:$0xff] }
 0x5e3   : > { %v2107_v37 = vmax.f32 %v1979_v2, %v2057_v39  ;;  %3117 = vmatmul.f32.gmra.mxu3 %v2947_v17  ;;  %v2711_v39 = vsel %vm1924_vm3, %v6509_v44, -inf  ;;  %v2967_v17 = vld [vmem:[%s8435_s9 + $0x160] sm:$0xff] }
 0x5e4   : > { %v2612_v4 = vadd.f32 %v2611_v8, %v2499_v16  ;;  %v2720_v8 = vsel %vm1924_vm3, %v6432_v3, -inf }
 0x5e5   : > { %2140 = vst.msk [vmem:[#allocation2 + $0xb0] sm:$0xff] %vm631_vm4, %v2107_v37  ;;  %v2963_v37 = vld [vmem:[%s8435_s9 + $0x140] sm:$0xff] }
 0x5e6   : > { %2657 = vst.msk [vmem:[%s5689_s29 + $0x1c8] sm:$0xff] %vm1924_vm3, %v2612_v4  ;;  %v2771_v25 = vsel %vm1924_vm3, %v2612_v4, -inf }
 0x5e7   : > { %2772 = vmax.xlane.f32.xlu2 %v2771_v25  ;;  %2742 = vmax.xlane.f32.xlu0 %v2741_v45 }
 0x5e9   : > { %v2501_v14 = vpop.f32.mrf.mxu0 }
 0x5ea   : > { %v2502_v26 = vadd.f32 %v2501_v14, %v6298_v46  ;;  %v2063_v42 = vpop.xlane.xlu0 %2062  ;;  %v2617_v0 = vpop.f32.mrf.mxu2  ;;  %v1983_v46 = vld [vmem:[#allocation2 + $0xd0] sm:$0xff]  ;;  %v2702_v14 = vsel %vm1924_vm3, %v6541_v58, -inf  ;;  %v2747_v58 = vsel %vm1924_vm3, %v6618_v7, -inf  ;;  %v2744_v7 = vsel %vm1924_vm3, %v6612_v27, -inf }
 0x5eb   : > { %v2109_v13 = vmax.f32 %v1981_v56, %v2063_v42  ;;  %3120 = vmatmul.f32.gmra.mxu3 %v2951_v43  ;;  %v2889_v56 = vld [vmem:[#allocation2 + $0xf0] sm:$0xff]  ;;  %v2735_v27 = vsel %vm1924_vm3, %v6564_v60, -inf  ;;  %v2037_v60 = vsel %vm1924_vm3, %v6515_v24, -inf  ;;  %v2685_v24 = vld [vmem:[#allocation2 + $0x1a8] sm:$0xff] }
 0x5ec   : > { %v2615_v40 = vadd.f32 %v2614_v35, %v2502_v26 }
 0x5ed   : > { %2142 = vst.msk [vmem:[#allocation2 + $0xc0] sm:$0xff] %vm631_vm4, %v2109_v13 }
 0x5ee   : > { %2658 = vst.msk [vmem:[%s5689_s29 + $0x1d0] sm:$0xff] %vm1924_vm3, %v2615_v40  ;;  %v2774_v61 = vsel %vm1924_vm3, %v2615_v40, -inf }
 0x5ef   : > { %2775 = vmax.xlane.f32.xlu1 %v2774_v61  ;;  %2739 = vmax.xlane.f32.xlu0 %v2738_v49  ;;  %v2886_v61 = vld [vmem:[#allocation2 + $0xd8] sm:$0xff]  ;;  %v2971_v49 = vld [vmem:[%s8435_s9 + $0x180] sm:$0xff] }
 0x5f1   : > { %v2504_v55 = vpop.f32.mrf.mxu0 }
 0x5f2   : > { %v2505_v36 = vadd.f32 %v2504_v55, %v6190_v38  ;;  %v2069_v23 = vpop.xlane.xlu0 %2068  ;;  %v2620_v21 = vpop.f32.mrf.mxu2  ;;  %v1985_v38 = vld [vmem:[#allocation2 + $0xe0] sm:$0xff] }
 0x5f3   : > { %v2111_v10 = vmax.f32 %v1983_v46, %v2069_v23  ;;  %3123 = vmatmul.f32.gmra.mxu3 %v2955_v41  ;;  %v2975_v23 = vld [vmem:[%s8435_s9 + $0x1a0] sm:$0xff] }
 0x5f4   : > { %v2618_v59 = vadd.f32 %v2617_v0, %v2505_v36  ;;  %v2883_v55 = vld [vmem:[#allocation2 + $0xc0] sm:$0xff]  ;;  %v2882_v36 = vld [vmem:[#allocation2 + $0xb8] sm:$0xff] }
 0x5f5   : > { %2144 = vst.msk [vmem:[#allocation2 + $0xd0] sm:$0xff] %vm631_vm4, %v2111_v10  ;;  %v2750_v10 = vsel %vm1924_vm3, %v6625_v31, -inf  ;;  %v2979_v41 = vld [vmem:[%s8435_s9 + $0x1c0] sm:$0xff]  ;;  %v2040_v31 = vsel %vm1924_vm3, %v6483_v11, -inf }
 0x5f6   : > { %2659 = vst.msk [vmem:[%s5689_s29 + $0x1d8] sm:$0xff] %vm1924_vm3, %v2618_v59  ;;  %v2777_v62 = vsel %vm1924_vm3, %v2618_v59, -inf  ;;  %v2881_v59 = vld [vmem:[#allocation2 + $0xb0] sm:$0xff]  ;;  %v2684_v11 = vld [vmem:[#allocation2 + $0x1a0] sm:$0xff] }
 0x5f7   : > { %2778 = vmax.xlane.f32.xlu1 %v2777_v62  ;;  %2730 = vmax.xlane.f32.xlu0 %v2729_v47  ;;  %v2879_v62 = vld [vmem:[#allocation2 + $0xa0] sm:$0xff]  ;;  %v2878_v47 = vld [vmem:[#allocation2 + $0x98] sm:$0xff] }
 0x5f9   : > { %v2507_v22 = vpop.f32.mrf.mxu0 }
 0x5fa   : > { %v2508_v54 = vadd.f32 %v2507_v22, %v5851_v6  ;;  %v2075_v12 = vpop.xlane.xlu0 %2074  ;;  %v2623_v30 = vpop.f32.mrf.mxu2  ;;  %v1988_v6 = vld [vmem:[#allocation2 + $0xf8] sm:$0xff] }
 0x5fb   : > { %v2113_v32 = vmax.f32 %v1985_v38, %v2075_v12  ;;  %3126 = vmatmul.f32.gmra.mxu3 %v2959_v48  ;;  %v2683_v38 = vld [vmem:[#allocation2 + $0x198] sm:$0xff]  ;;  %v2983_v12 = vld [vmem:[%s8435_s9 + $0x1e0] sm:$0xff] }
 0x5fc   : > { %v2621_v9 = vadd.f32 %v2620_v21, %v2508_v54  ;;  %v2885_v46 = vld [vmem:[#allocation2 + $0xd0] sm:$0xff]  ;;  %v2880_v21 = vld [vmem:[#allocation2 + $0xa8] sm:$0xff] }
 0x5fd   : > { %2146 = vst.msk [vmem:[#allocation2 + $0xe0] sm:$0xff] %vm631_vm4, %v2113_v32  ;;  %v2726_v32 = vsel %vm1924_vm3, %v6485_v29, -inf  ;;  %v2987_v29 = vld [vmem:[%s8435_s9 + $0x200] sm:$0xff] }
 0x5fe   : > { %2660 = vst.msk [vmem:[%s5689_s29 + $0x1e0] sm:$0xff] %vm1924_vm3, %v2621_v9  ;;  %v2780_v51 = vsel %vm1924_vm3, %v2621_v9, -inf }
 0x5ff   : > { %2781 = vmax.xlane.f32.xlu2 %v2780_v51  ;;  %2721 = vmax.xlane.f32.xlu0 %v2720_v8  ;;  %v2732_v51 = vsel %vm1924_vm3, %v6543_v50, -inf  ;;  %v2717_v8 = vsel %vm1924_vm3, %v6430_v20, -inf  ;;  %v2723_v50 = vsel %vm1924_vm3, %v6562_v5, -inf  ;;  %v2708_v20 = vsel %vm1924_vm3, %v6462_v28, -inf }
 0x600   : > { %v2714_v5 = vsel %vm1924_vm3, %v6583_v57, -inf  ;;  %v2699_v28 = vsel %vm1924_vm3, %v6480_v53, -inf  ;;  %v2705_v57 = vsel %vm1924_vm3, %v6601_v52, -inf  ;;  %v2999_v53 = vld [vmem:[%s8435_s9 + $0x260] sm:$0xff]  ;;  %v2696_v52 = vsel %vm1924_vm3, %v6512_v1, -inf }
 0x601   : > { %v2510_v18 = vpop.f32.mrf.mxu0  ;;  %v3007_v1 = vld [vmem:[%s8435_s9 + $0x2a0] sm:$0xff] }
 0x602   : > { %v2511_v19 = vadd.f32 %v2510_v18, %v5946_v63  ;;  %v2084_v2 = vpop.xlane.xlu0 %2083  ;;  %v2626_v63 = vpop.f32.mrf.mxu2 }
 0x603   : > { %v2116_v15 = vmax.f32 %v1988_v6, %v2084_v2  ;;  %3129 = vmatmul.f32.gmra.mxu3 %v2963_v37  ;;  %v2686_v2 = vld [vmem:[#allocation2 + $0x1b0] sm:$0xff]  ;;  %v2687_v37 = vld [vmem:[#allocation2 + $0x1b8] sm:$0xff] }
 0x604   : > { %v2624_v16 = vadd.f32 %v2623_v30, %v2511_v19  ;;  %v2887_v40 = vld [vmem:[#allocation2 + $0xe0] sm:$0xff] }
 0x605   : > { %2149 = vst.msk [vmem:[#allocation2 + $0xf8] sm:$0xff] %vm631_vm4, %v2116_v15  ;;  %v2991_v19 = vld [vmem:[%s8435_s9 + $0x220] sm:$0xff] }
 0x606   : > { %2661 = vst.msk [vmem:[%s5689_s29 + $0x1e8] sm:$0xff] %vm1924_vm3, %v2624_v16  ;;  %v2783_v3 = vsel %vm1924_vm3, %v2624_v16, -inf }
 0x607   : > { %2784 = vmax.xlane.f32.xlu1 %v2783_v3  ;;  %2712 = vmax.xlane.f32.xlu0 %v2711_v39  ;;  %v2995_v39 = vld [vmem:[%s8435_s9 + $0x240] sm:$0xff] }
 0x609   : > { %v2513_v4 = vpop.f32.mrf.mxu0 }
 0x60a   : > { %v2514_v35 = vadd.f32 %v2513_v4, %v5818_v34  ;;  %v2888_v34 = vld [vmem:[#allocation2 + $0xe8] sm:$0xff]  ;;  %v2629_v42 = vpop.f32.mrf.mxu2 }
 0x60b   : > { %3132 = vmatmul.f32.gmra.mxu3 %v2967_v17 }
 0x60c   : > { %v2627_v25 = vadd.f32 %v2626_v63, %v2514_v35  ;;  %v2890_v45 = vld [vmem:[#allocation2 + $0xf8] sm:$0xff] }
 0x60d   : > { %3196 = vmatpush.msra.mxu0 %v2890_v45  ;;  %v1975_v45 = vld [vmem:[#allocation2 + $0x90] sm:$0xff] }
 0x60e   : > { %2662 = vst.msk [vmem:[%s5689_s29 + $0x1f0] sm:$0xff] %vm1924_vm3, %v2627_v25  ;;  %v2786_v44 = vsel %vm1924_vm3, %v2627_v25, -inf  ;;  %v2688_v25 = vld [vmem:[#allocation2 + $0x1c0] sm:$0xff] }
 0x60f   : > { %2787 = vmax.xlane.f32.xlu2 %v2786_v44  ;;  %3197 = vmatpush.msra.mxu0 %v2889_v56 }
 0x610   : > { %2703 = vmax.xlane.f32.xlu0 %v2702_v14 }
 0x611   : > { %v2516_v26 = vpop.f32.mrf.mxu0  ;;  %3198 = vmatpush.msra.mxu0 %v2888_v34 }
 0x612   : > { %v2517_v13 = vadd.f32 %v2516_v26, %v5878_v33  ;;  %v2884_v33 = vld [vmem:[#allocation2 + $0xc8] sm:$0xff]  ;;  %v3003_v26 = vld [vmem:[%s8435_s9 + $0x280] sm:$0xff] }
 0x613   : > { %3199 = vmatpush.msra.mxu0 %v2887_v40  ;;  %3135 = vmatmul.f32.gmra.mxu3 %v2971_v49 }
 0x614   : > { %v2630_v0 = vadd.f32 %v2629_v42, %v2517_v13  ;;  %v2679_v42 = vld [vmem:[#allocation2 + $0x178] sm:$0xff]  ;;  %v2689_v13 = vld [vmem:[#allocation2 + $0x1c8] sm:$0xff] }
 0x615   : > { %3200 = vmatpush.msra.mxu0 %v2886_v61 }
 0x616   : > { %2663 = vst.msk [vmem:[%s5689_s29 + $0x1f8] sm:$0xff] %vm1924_vm3, %v2630_v0  ;;  %v2789_v43 = vsel %vm1924_vm3, %v2630_v0, -inf }
 0x617   : > { %2748 = vmax.xlane.f32.xlu2 %v2747_v58  ;;  %2790 = vmax.xlane.f32.xlu1 %v2789_v43 }
 0x618   : > { %3201 = vmatpush.msra.mxu0 %v2885_v46  ;;  %v2690_v46 = vld [vmem:[#allocation2 + $0x1d0] sm:$0xff] }
 0x61a   : > { %3202 = vmatpush.msra.mxu0 %v2884_v33  ;;  %v2678_v33 = vld [vmem:[#allocation2 + $0x170] sm:$0xff] }
 0x61b   : > { %3138 = vmatmul.f32.gmra.mxu3 %v2975_v23 }
 0x61c   : > { %3203 = vmatpush.msra.mxu0 %v2883_v55 }
 0x61e   : > { %3204 = vmatpush.msra.mxu0 %v2882_v36 }
 0x61f   : > { %2745 = vmax.xlane.f32.xlu2 %v2744_v7  ;;  %2751 = vmax.xlane.f32.xlu1 %v2750_v10 }
 0x620   : > { %3205 = vmatpush.msra.mxu0 %v2881_v59 }
 0x622   : > { %3206 = vmatpush.msra.mxu0 %v2880_v21  ;;  %v3011_v21 = vld [vmem:[%s8435_s9 + $0x2c0] sm:$0xff] }
 0x623   : > { %3141 = vmatmul.f32.gmra.mxu3 %v2979_v41 }
 0x624   : > { %3207 = vmatpush.msra.mxu0 %v2879_v62  ;;  %v2691_v62 = vld [vmem:[#allocation2 + $0x1d8] sm:$0xff] }
 0x626   : > { %3208 = vmatpush.msra.mxu0 %v2878_v47  ;;  %v2675_v47 = vld [vmem:[#allocation2 + $0x158] sm:$0xff] }
 0x627   : > { %2736 = vmax.xlane.f32.xlu2 %v2735_v27  ;;  %2041 = vmax.xlane.f32.xlu1 %v2040_v31 }
 0x62a   : > { %v2755_v22 = vpop.xlane.xlu1 %2754 }
 0x62b   : > { %v2811_v54 = vmax.f32 %v2683_v38, %v2755_v22  ;;  %3144 = vmatmul.f32.gmra.mxu3 %v2983_v12  ;;  %v3015_v12 = vld [vmem:[%s8435_s9 + $0x2e0] sm:$0xff] }
 0x62d   : > { %2843 = vst.msk [vmem:[#allocation2 + $0x198] sm:$0xff] %vm631_vm4, %v2811_v54 }
 0x62e   : > { %v6779_v18 = vpop.f32.mrf.mxu3 }
 0x62f   : > { %2727 = vmax.xlane.f32.xlu2 %v2726_v32  ;;  %2038 = vmax.xlane.f32.xlu1 %v2037_v60  ;;  %v2672_v32 = vld [vmem:[#allocation2 + $0x140] sm:$0xff] }
 0x630   : > { %v2692_v60 = vld [vmem:[#allocation2 + $0x1e0] sm:$0xff] }
 0x632   : > { %v2758_v9 = vpop.xlane.xlu1 %2757 }
 0x633   : > { %v2812_v30 = vmax.f32 %v2684_v11, %v2758_v9  ;;  %3147 = vmatmul.f32.gmra.mxu3 %v2987_v29  ;;  %v3019_v29 = vld [vmem:[%s8435_s9 + $0x300] sm:$0xff] }
 0x635   : > { %2844 = vst.msk [vmem:[#allocation2 + $0x1a0] sm:$0xff] %vm631_vm4, %v2812_v30 }
 0x636   : > { %v6789_v3 = vpop.f32.mrf.mxu3 }
 0x637   : > { %2733 = vmax.xlane.f32.xlu1 %v2732_v51  ;;  %2718 = vmax.xlane.f32.xlu2 %v2717_v8 }
 0x63a   : > { %v2761_v48 = vpop.xlane.xlu1 %2760 }
 0x63b   : > { %v2813_v6 = vmax.f32 %v2685_v24, %v2761_v48  ;;  %3150 = vmatmul.f32.gmra.mxu3 %v2991_v19  ;;  %v2693_v24 = vld [vmem:[#allocation2 + $0x1e8] sm:$0xff] }
 0x63c   : > { %v2669_v48 = vld [vmem:[#allocation2 + $0x128] sm:$0xff] }
 0x63d   : > { %2845 = vst.msk [vmem:[#allocation2 + $0x1a8] sm:$0xff] %vm631_vm4, %v2813_v6 }
 0x63e   : > { %v6799_v35 = vpop.f32.mrf.mxu3 }
 0x63f   : > { %2724 = vmax.xlane.f32.xlu1 %v2723_v50  ;;  %2709 = vmax.xlane.f32.xlu2 %v2708_v20 }
 0x642   : > { %v2764_v15 = vpop.xlane.xlu0 %2763 }
 0x643   : > { %v2814_v16 = vmax.f32 %v2686_v2, %v2764_v15  ;;  %3153 = vmatmul.f32.gmra.mxu3 %v2995_v39  ;;  %v3023_v15 = vld [vmem:[%s8435_s9 + $0x320] sm:$0xff] }
 0x645   : > { %2846 = vst.msk [vmem:[#allocation2 + $0x1b0] sm:$0xff] %vm631_vm4, %v2814_v16  ;;  %v2694_v16 = vld [vmem:[#allocation2 + $0x1f0] sm:$0xff] }
 0x646   : > { %v6807_v34 = vpop.f32.mrf.mxu3 }
 0x647   : > { %2715 = vmax.xlane.f32.xlu1 %v2714_v5  ;;  %2700 = vmax.xlane.f32.xlu2 %v2699_v28  ;;  %v2666_v5 = vld [vmem:[#allocation2 + $0x110] sm:$0xff] }
 0x64a   : > { %v2767_v63 = vpop.xlane.xlu0 %2766 }
 0x64b   : > { %v2815_v4 = vmax.f32 %v2687_v37, %v2767_v63  ;;  %3156 = vmatmul.f32.gmra.mxu3 %v2999_v53  ;;  %v2695_v53 = vld [vmem:[#allocation2 + $0x1f8] sm:$0xff] }
 0x64d   : > { %2847 = vst.msk [vmem:[#allocation2 + $0x1b8] sm:$0xff] %vm631_vm4, %v2815_v4 }
 0x64e   : > { %v6816_v58 = vpop.f32.mrf.mxu3 }
 0x64f   : > { %2706 = vmax.xlane.f32.xlu1 %v2705_v57  ;;  %v3027_v57 = vld [vmem:[%s8435_s9 + $0x340] sm:$0xff] }
 0x652   : > { %v2770_v17 = vpop.xlane.xlu1 %2769  ;;  %v2045_v44 = vpop.xlane.xlu0 %2044 }
 0x653   : > { %v2816_v56 = vmax.f32 %v2688_v25, %v2770_v17  ;;  %v2103_v14 = vmax.f32 %v1975_v45, %v2045_v44  ;;  %3159 = vmatmul.f32.gmra.mxu3 %v3003_v26  ;;  %v2681_v25 = vld [vmem:[#allocation2 + $0x188] sm:$0xff]  ;;  %v2682_v26 = vld [vmem:[#allocation2 + $0x190] sm:$0xff] }
 0x655   : > { %2848 = vst.msk [vmem:[#allocation2 + $0x1c0] sm:$0xff] %vm631_vm4, %v2816_v56 }
 0x656   : > { %2136 = vst.msk [vmem:[#allocation2 + $0x90] sm:$0xff] %vm631_vm4, %v2103_v14 }
 0x657   : > { %2697 = vmax.xlane.f32.xlu1 %v2696_v52  ;;  %v3031_v52 = vld [vmem:[%s8435_s9 + $0x360] sm:$0xff] }
 0x65a   : > { %v2743_v40 = vpop.xlane.xlu0 %2742  ;;  %v2773_v0 = vpop.xlane.xlu2 %2772 }
 0x65b   : > { %v2807_v61 = vmax.f32 %v2679_v42, %v2743_v40  ;;  %v2817_v49 = vmax.f32 %v2689_v13, %v2773_v0  ;;  %3162 = vmatmul.f32.gmra.mxu3 %v3007_v1  ;;  %v2680_v42 = vld [vmem:[#allocation2 + $0x180] sm:$0xff] }
 0x65d   : > { %2839 = vst.msk [vmem:[#allocation2 + $0x178] sm:$0xff] %vm631_vm4, %v2807_v61  ;;  %v2877_v43 = vld [vmem:[#allocation2 + $0x90] sm:$0xff] }
 0x65e   : > { %2849 = vst.msk [vmem:[#allocation2 + $0x1c8] sm:$0xff] %vm631_vm4, %v2817_v49  ;;  %3209 = vmatpush.msra.mxu0 %v2877_v43  ;;  %v6823_v10 = vpop.f32.mrf.mxu3 }
 0x662   : > { %v2776_v55 = vpop.xlane.xlu1 %2775  ;;  %v2740_v36 = vpop.xlane.xlu0 %2739 }
 0x663   : > { %v2818_v23 = vmax.f32 %v2690_v46, %v2776_v55  ;;  %v2806_v7 = vmax.f32 %v2678_v33, %v2740_v36  ;;  %3165 = vmatmul.f32.gmra.mxu3 %v3011_v21  ;;  %v3035_v46 = vld [vmem:[%s8435_s9 + $0x380] sm:$0xff]  ;;  %v1974_v55 = vld [vmem:[#allocation2 + $0x88] sm:$0xff] }
 0x664   : > { %v2906_v59 = vld [vmem:[#allocation2 + $0x178] sm:$0xff]  ;;  %v2677_v36 = vld [vmem:[#allocation2 + $0x168] sm:$0xff] }
 0x665   : > { %2850 = vst.msk [vmem:[#allocation2 + $0x1d0] sm:$0xff] %vm631_vm4, %v2818_v23  ;;  %3309 = vmatpush.msrb.mxu1 %v2906_v59  ;;  %4714 = vmatpush.msra.mxu3 %v2906_v59 }
 0x666   : > { %2838 = vst.msk [vmem:[#allocation2 + $0x170] sm:$0xff] %vm631_vm4, %v2806_v7  ;;  %v6830_v22 = vpop.f32.mrf.mxu3 }
 0x66a   : > { %v2779_v41 = vpop.xlane.xlu1 %2778  ;;  %v2731_v27 = vpop.xlane.xlu0 %2730 }
 0x66b   : > { %v2819_v31 = vmax.f32 %v2691_v62, %v2779_v41  ;;  %v2803_v38 = vmax.f32 %v2675_v47, %v2731_v27  ;;  %3168 = vmatmul.f32.gmra.mxu3 %v3015_v12  ;;  %v2674_v12 = vld [vmem:[#allocation2 + $0x150] sm:$0xff] }
 0x66c   : > { %v2917_v27 = vld [vmem:[#allocation2 + $0x1d0] sm:$0xff] }
 0x66d   : > { %2851 = vst.msk [vmem:[#allocation2 + $0x1d8] sm:$0xff] %vm631_vm4, %v2819_v31  ;;  %v2905_v54 = vld [vmem:[#allocation2 + $0x170] sm:$0xff]  ;;  %v3039_v31 = vld [vmem:[%s8435_s9 + $0x3a0] sm:$0xff] }
 0x66e   : > { %2835 = vst.msk [vmem:[#allocation2 + $0x158] sm:$0xff] %vm631_vm4, %v2803_v38  ;;  %3310 = vmatpush.msrb.mxu1 %v2905_v54  ;;  %4715 = vmatpush.msra.mxu3 %v2905_v54  ;;  %v6837_v8 = vpop.f32.mrf.mxu3  ;;  %v2916_v38 = vld [vmem:[#allocation2 + $0x1c8] sm:$0xff]  ;;  %v1973_v54 = vld [vmem:[#allocation2 + $0x80] sm:$0xff] }
 0x672   : > { %v2722_v11 = vpop.xlane.xlu0 %2721  ;;  %v2782_v9 = vpop.xlane.xlu2 %2781 }
 0x673   : > { %v2800_v30 = vmax.f32 %v2672_v32, %v2722_v11  ;;  %v2820_v51 = vmax.f32 %v2692_v60, %v2782_v9  ;;  %3171 = vmatmul.f32.gmra.mxu3 %v3019_v29  ;;  %v2915_v11 = vld [vmem:[#allocation2 + $0x1c0] sm:$0xff] }
 0x674   : > { %v2918_v41 = vld [vmem:[#allocation2 + $0x1d8] sm:$0xff] }
 0x675   : > { %2832 = vst.msk [vmem:[#allocation2 + $0x140] sm:$0xff] %vm631_vm4, %v2800_v30 }
 0x676   : > { %2852 = vst.msk [vmem:[#allocation2 + $0x1e0] sm:$0xff] %vm631_vm4, %v2820_v51  ;;  %v6844_v2 = vpop.f32.mrf.mxu3 }
 0x67a   : > { %v2785_v6 = vpop.xlane.xlu1 %2784  ;;  %v2713_v50 = vpop.xlane.xlu0 %2712 }
 0x67b   : > { %v2821_v20 = vmax.f32 %v2693_v24, %v2785_v6  ;;  %v2797_v19 = vmax.f32 %v2669_v48, %v2713_v50  ;;  %3174 = vmatmul.f32.gmra.mxu3 %v3023_v15  ;;  %v2914_v24 = vld [vmem:[#allocation2 + $0x1b8] sm:$0xff]  ;;  %v3043_v6 = vld [vmem:[%s8435_s9 + $0x3c0] sm:$0xff]  ;;  %v2913_v50 = vld [vmem:[#allocation2 + $0x1b0] sm:$0xff] }
 0x67c   : > { %v2671_v15 = vld [vmem:[#allocation2 + $0x138] sm:$0xff] }
 0x67d   : > { %2853 = vst.msk [vmem:[#allocation2 + $0x1e8] sm:$0xff] %vm631_vm4, %v2821_v20  ;;  %v2919_v59 = vld [vmem:[#allocation2 + $0x1e0] sm:$0xff]  ;;  %v2912_v20 = vld [vmem:[#allocation2 + $0x1a8] sm:$0xff] }
 0x67e   : > { %2829 = vst.msk [vmem:[#allocation2 + $0x128] sm:$0xff] %vm631_vm4, %v2797_v19  ;;  %v6851_v63 = vpop.f32.mrf.mxu3  ;;  %v2676_v19 = vld [vmem:[#allocation2 + $0x160] sm:$0xff] }
 0x682   : > { %v2788_v28 = vpop.xlane.xlu2 %2787 }
 0x683   : > { %v2704_v39 = vpop.xlane.xlu0 %2703  ;;  %v2822_v37 = vmax.f32 %v2694_v16, %v2788_v28  ;;  %3177 = vmatmul.f32.gmra.mxu3 %v3027_v57  ;;  %v2911_v28 = vld [vmem:[#allocation2 + $0x1a0] sm:$0xff] }
 0x684   : > { %v2794_v4 = vmax.f32 %v2666_v5, %v2704_v39  ;;  %v2920_v33 = vld [vmem:[#allocation2 + $0x1e8] sm:$0xff] }
 0x685   : > { %2854 = vst.msk [vmem:[#allocation2 + $0x1f0] sm:$0xff] %vm631_vm4, %v2822_v37 }
 0x686   : > { %2826 = vst.msk [vmem:[#allocation2 + $0x110] sm:$0xff] %vm631_vm4, %v2794_v4  ;;  %v6858_v14 = vpop.f32.mrf.mxu3  ;;  %v2924_v4 = vld [vmem:[%s8435_s9 + $0x8] sm:$0xff] }
 0x68a   : > { %v2791_v45 = vpop.xlane.xlu1 %2790  ;;  %v2749_v17 = vpop.xlane.xlu2 %2748 }
 0x68b   : > { %v2823_v44 = vmax.f32 %v2695_v53, %v2791_v45  ;;  %v2809_v56 = vmax.f32 %v2681_v25, %v2749_v17  ;;  %3180 = vmatmul.f32.gmra.mxu3 %v3031_v52  ;;  %v2910_v25 = vld [vmem:[#allocation2 + $0x198] sm:$0xff]  ;;  %v3047_v45 = vld [vmem:[%s8435_s9 + $0x3e0] sm:$0xff] }
 0x68c   : > { %v2921_v1 = vld [vmem:[#allocation2 + $0x1f0] sm:$0xff]  ;;  %v2668_v52 = vld [vmem:[#allocation2 + $0x120] sm:$0xff] }
 0x68d   : > { %2855 = vst.msk [vmem:[#allocation2 + $0x1f8] sm:$0xff] %vm631_vm4, %v2823_v44 }
 0x68e   : > { %2841 = vst.msk [vmem:[#allocation2 + $0x188] sm:$0xff] %vm631_vm4, %v2809_v56  ;;  %v6865_v49 = vpop.f32.mrf.mxu3  ;;  %v2673_v56 = vld [vmem:[#allocation2 + $0x148] sm:$0xff] }
 0x692   : > { %v2752_v13 = vpop.xlane.xlu1 %2751  ;;  %v2746_v40 = vpop.xlane.xlu2 %2745 }
 0x693   : > { %v2810_v0 = vmax.f32 %v2682_v26, %v2752_v13  ;;  %v2808_v61 = vmax.f32 %v2680_v42, %v2746_v40  ;;  %3183 = vmatmul.f32.gmra.mxu3 %v3035_v46  ;;  %v2926_v26 = vld [vmem:[%s8435_s9 + $0x18] sm:$0xff] }
 0x694   : > { %v2922_v43 = vld [vmem:[#allocation2 + $0x1f8] sm:$0xff] }
 0x695   : > { %2842 = vst.msk [vmem:[#allocation2 + $0x190] sm:$0xff] %vm631_vm4, %v2810_v0  ;;  %3422 = vmatpush.msrb.mxu2 %v2922_v43  ;;  %v2908_v44 = vld [vmem:[#allocation2 + $0x188] sm:$0xff] }
 0x696   : > { %2840 = vst.msk [vmem:[#allocation2 + $0x180] sm:$0xff] %vm631_vm4, %v2808_v61  ;;  %v6872_v47 = vpop.f32.mrf.mxu3  ;;  %v2928_v43 = vld [vmem:[%s8435_s9 + $0x28] sm:$0xff] }
 0x697   : > { %3423 = vmatpush.msrb.mxu2 %v2921_v1 }
 0x699   : > { %3424 = vmatpush.msrb.mxu2 %v2920_v33  ;;  %v2902_v33 = vld [vmem:[#allocation2 + $0x158] sm:$0xff] }
 0x69a   : > { %v2042_v23 = vpop.xlane.xlu1 %2041  ;;  %v2737_v7 = vpop.xlane.xlu2 %2736 }
 0x69b   : > { %v2102_v21 = vmax.f32 %v1974_v55, %v2042_v23  ;;  %v2805_v62 = vmax.f32 %v2677_v36, %v2737_v7  ;;  %3425 = vmatpush.msrb.mxu2 %v2919_v59  ;;  %3186 = vmatmul.f32.gmra.mxu3 %v3039_v31  ;;  %v2670_v36 = vld [vmem:[#allocation2 + $0x130] sm:$0xff]  ;;  %v2665_v23 = vld [vmem:[#allocation2 + $0x108] sm:$0xff]  ;;  %v2930_v7 = vld [vmem:[%s8435_s9 + $0x38] sm:$0xff] }
 0x69c   : > { %v2909_v17 = vld [vmem:[#allocation2 + $0x190] sm:$0xff] }
 0x69d   : > { %2135 = vst.msk [vmem:[#allocation2 + $0x88] sm:$0xff] %vm631_vm4, %v2102_v21  ;;  %3426 = vmatpush.msrb.mxu2 %v2918_v41  ;;  %v2907_v40 = vld [vmem:[#allocation2 + $0x180] sm:$0xff] }
 0x69e   : > { %2837 = vst.msk [vmem:[#allocation2 + $0x168] sm:$0xff] %vm631_vm4, %v2805_v62  ;;  %v6879_v51 = vpop.f32.mrf.mxu3 }
 0x69f   : > { %3427 = vmatpush.msrb.mxu2 %v2917_v27  ;;  %v2932_v27 = vld [vmem:[%s8435_s9 + $0x48] sm:$0xff] }
 0x6a1   : > { %3428 = vmatpush.msrb.mxu2 %v2916_v38 }
 0x6a2   : > { %v2039_v32 = vpop.xlane.xlu1 %2038  ;;  %v2728_v60 = vpop.xlane.xlu2 %2727 }
 0x6a3   : > { %v2101_v9 = vmax.f32 %v1973_v54, %v2039_v32  ;;  %v2802_v30 = vmax.f32 %v2674_v12, %v2728_v60  ;;  %3429 = vmatpush.msrb.mxu2 %v2915_v11  ;;  %3189 = vmatmul.f32.gmra.mxu3 %v3043_v6  ;;  %v2899_v54 = vld [vmem:[#allocation2 + $0x140] sm:$0xff]  ;;  %v2667_v32 = vld [vmem:[#allocation2 + $0x118] sm:$0xff] }
 0x6a4   : > { %v2876_v29 = vld [vmem:[#allocation2 + $0x88] sm:$0xff]  ;;  %v2934_v60 = vld [vmem:[%s8435_s9 + $0x58] sm:$0xff] }
 0x6a5   : > { %2134 = vst.msk [vmem:[#allocation2 + $0x80] sm:$0xff] %vm631_vm4, %v2101_v9  ;;  %3210 = vmatpush.msra.mxu0 %v2876_v29  ;;  %v2904_v48 = vld [vmem:[#allocation2 + $0x168] sm:$0xff]  ;;  %3430 = vmatpush.msrb.mxu2 %v2914_v24 }
 0x6a6   : > { %2834 = vst.msk [vmem:[#allocation2 + $0x150] sm:$0xff] %vm631_vm4, %v2802_v30  ;;  %3311 = vmatpush.msrb.mxu1 %v2904_v48  ;;  %4716 = vmatpush.msra.mxu3 %v2904_v48  ;;  %v6889_v57 = vpop.f32.mrf.mxu3  ;;  %v2936_v30 = vld [vmem:[%s8435_s9 + $0x68] sm:$0xff] }
 0x6a7   : > { %3431 = vmatpush.msrb.mxu2 %v2913_v50  ;;  %v2896_v48 = vld [vmem:[#allocation2 + $0x128] sm:$0xff]  ;;  %v2664_v50 = vld [vmem:[#allocation2 + $0x100] sm:$0xff] }
 0x6a9   : > { %3432 = vmatpush.msrb.mxu2 %v2912_v20  ;;  %v2938_v20 = vld [vmem:[%s8435_s9 + $0x78] sm:$0xff] }
 0x6aa   : > { %v2734_v16 = vpop.xlane.xlu1 %2733  ;;  %v2719_v5 = vpop.xlane.xlu2 %2718 }
 0x6ab   : > { %v2804_v39 = vmax.f32 %v2676_v19, %v2734_v16  ;;  %v2799_v37 = vmax.f32 %v2671_v15, %v2719_v5  ;;  %3433 = vmatpush.msrb.mxu2 %v2911_v28  ;;  %3192 = vmatmul.f32.gmra.mxu3 %v3047_v45  ;;  %v2940_v16 = vld [vmem:[%s8435_s9 + $0x88] sm:$0xff]  ;;  %v2893_v28 = vld [vmem:[#allocation2 + $0x110] sm:$0xff] }
 0x6ac   : > { %v2875_v53 = vld [vmem:[#allocation2 + $0x80] sm:$0xff] }
 0x6ad   : > { %2836 = vst.msk [vmem:[#allocation2 + $0x160] sm:$0xff] %vm631_vm4, %v2804_v39  ;;  %3211 = vmatpush.msra.mxu0 %v2875_v53  ;;  %3434 = vmatpush.msrb.mxu2 %v2910_v25  ;;  %v2901_v55 = vld [vmem:[#allocation2 + $0x150] sm:$0xff]  ;;  %v2944_v53 = vld [vmem:[%s8435_s9 + $0xa8] sm:$0xff] }
 0x6ae   : > { %2831 = vst.msk [vmem:[#allocation2 + $0x138] sm:$0xff] %vm631_vm4, %v2799_v37  ;;  %3212 = vmatmul.f32.vlgmr.msra.gmra.mxu0 %v2924_v4  ;;  %v6902_v1 = vpop.f32.mrf.mxu3  ;;  %v2942_v4 = vld [vmem:[%s8435_s9 + $0x98] sm:$0xff]  ;;  %v2925_v25 = vld [vmem:[%s8435_s9 + $0x10] sm:$0xff] }
 0x6af   : > { %3435 = vmatpush.msrb.mxu2 %v2909_v17  ;;  %v2941_v17 = vld [vmem:[%s8435_s9 + $0x90] sm:$0xff] }
 0x6b1   : > { %3436 = vmatpush.msrb.mxu2 %v2908_v44 }
 0x6b2   : > { %v2725_v42 = vpop.xlane.xlu1 %2724  ;;  %v2710_v13 = vpop.xlane.xlu2 %2709 }
 0x6b3   : > { %v2801_v0 = vmax.f32 %v2673_v56, %v2725_v42  ;;  %v2796_v61 = vmax.f32 %v2668_v52, %v2710_v13  ;;  %3437 = vmatpush.msrb.mxu2 %v2907_v40  ;;  %v2946_v56 = vld [vmem:[%s8435_s9 + $0xb8] sm:$0xff]  ;;  %v2948_v52 = vld [vmem:[%s8435_s9 + $0xc8] sm:$0xff]  ;;  %v2945_v42 = vld [vmem:[%s8435_s9 + $0xb0] sm:$0xff] }
 0x6b4   : > { %v2903_v46 = vld [vmem:[#allocation2 + $0x160] sm:$0xff]  ;;  %3438 = vmatmul.f32.vlgmr.msrb.gmra.mxu2 %v2926_v26  ;;  %v2929_v26 = vld [vmem:[%s8435_s9 + $0x30] sm:$0xff]  ;;  %v2950_v13 = vld [vmem:[%s8435_s9 + $0xd8] sm:$0xff] }
 0x6b5   : > { %2833 = vst.msk [vmem:[#allocation2 + $0x148] sm:$0xff] %vm631_vm4, %v2801_v0  ;;  %3312 = vmatpush.msrb.mxu1 %v2903_v46  ;;  %4717 = vmatpush.msra.mxu3 %v2903_v46  ;;  %v2898_v12 = vld [vmem:[#allocation2 + $0x138] sm:$0xff]  ;;  %v2952_v0 = vld [vmem:[%s8435_s9 + $0xe8] sm:$0xff] }
 0x6b6   : > { %2828 = vst.msk [vmem:[#allocation2 + $0x120] sm:$0xff] %vm631_vm4, %v2796_v61  ;;  %3215 = vmatmul.f32.gmra.mxu0 %v2928_v43  ;;  %v6912_v31 = vpop.f32.mrf.mxu3  ;;  %v2933_v61 = vld [vmem:[%s8435_s9 + $0x50] sm:$0xff]  ;;  %v2954_v46 = vld [vmem:[%s8435_s9 + $0xf8] sm:$0xff] }
 0x6b7   : > { %3313 = vmatpush.msrb.mxu1 %v2902_v33  ;;  %4718 = vmatpush.msra.mxu3 %v2902_v33  ;;  %8458 = vst [vmem:[#allocation6_spill] sm:$0xff] %v6912_v31  ;;  %v2949_v43 = vld [vmem:[%s8435_s9 + $0xd0] sm:$0xff]  ;;  %v2956_v33 = vld [vmem:[%s8435_s9 + $0x108] sm:$0xff] }
 0x6b9   : > { %3314 = vmatpush.msrb.mxu1 %v2901_v55  ;;  %4719 = vmatpush.msra.mxu3 %v2901_v55  ;;  %v2937_v55 = vld [vmem:[%s8435_s9 + $0x70] sm:$0xff] }
 0x6ba   : > { %v2716_v59 = vpop.xlane.xlu1 %2715  ;;  %v2701_v21 = vpop.xlane.xlu2 %2700 }
 0x6bb   : > { %v2798_v62 = vmax.f32 %v2670_v36, %v2716_v59  ;;  %v2793_v41 = vmax.f32 %v2665_v23, %v2701_v21  ;;  %v2953_v36 = vld [vmem:[%s8435_s9 + $0xf0] sm:$0xff]  ;;  %v2960_v59 = vld [vmem:[%s8435_s9 + $0x128] sm:$0xff] }
 0x6bc   : > { %v2900_v38 = vld [vmem:[#allocation2 + $0x148] sm:$0xff]  ;;  %3441 = vmatmul.f32.gmra.mxu2 %v2930_v7  ;;  %v2958_v7 = vld [vmem:[%s8435_s9 + $0x118] sm:$0xff]  ;;  %v2957_v21 = vld [vmem:[%s8435_s9 + $0x110] sm:$0xff] }
 0x6bd   : > { %2830 = vst.msk [vmem:[#allocation2 + $0x130] sm:$0xff] %vm631_vm4, %v2798_v62  ;;  %3315 = vmatpush.msrb.mxu1 %v2900_v38  ;;  %4720 = vmatpush.msra.mxu3 %v2900_v38  ;;  %v2895_v6 = vld [vmem:[#allocation2 + $0x120] sm:$0xff]  ;;  %v2961_v38 = vld [vmem:[%s8435_s9 + $0x130] sm:$0xff] }
 0x6be   : > { %2825 = vst.msk [vmem:[#allocation2 + $0x108] sm:$0xff] %vm631_vm4, %v2793_v41  ;;  %3218 = vmatmul.f32.gmra.mxu0 %v2932_v27  ;;  %v6922_v24 = vpop.f32.mrf.mxu3  ;;  %v2962_v41 = vld [vmem:[%s8435_s9 + $0x138] sm:$0xff]  ;;  %v2964_v27 = vld [vmem:[%s8435_s9 + $0x148] sm:$0xff] }
 0x6bf   : > { %3316 = vmatpush.msrb.mxu1 %v2899_v54  ;;  %4721 = vmatpush.msra.mxu3 %v2899_v54  ;;  %8459 = vst [vmem:[#allocation7_spill] sm:$0xff] %v6922_v24  ;;  %v3062_v24 = vld [vmem:[%s8436_s10 + $0x58] sm:$0xff] }
 0x6c1   : > { %3317 = vmatpush.msrb.mxu1 %v2898_v12  ;;  %4722 = vmatpush.msra.mxu3 %v2898_v12  ;;  %v2966_v12 = vld [vmem:[%s8435_s9 + $0x158] sm:$0xff] }
 0x6c2   : > { %v2707_v11 = vpop.xlane.xlu1 %2706 }
 0x6c3   : > { %v2795_v9 = vmax.f32 %v2667_v32, %v2707_v11  ;;  %v2968_v32 = vld [vmem:[%s8435_s9 + $0x168] sm:$0xff]  ;;  %v2970_v11 = vld [vmem:[%s8435_s9 + $0x178] sm:$0xff] }
 0x6c4   : > { %v2897_v29 = vld [vmem:[#allocation2 + $0x130] sm:$0xff]  ;;  %3444 = vmatmul.f32.gmra.mxu2 %v2934_v60 }
 0x6c5   : > { %2827 = vst.msk [vmem:[#allocation2 + $0x118] sm:$0xff] %vm631_vm4, %v2795_v9  ;;  %3318 = vmatpush.msrb.mxu1 %v2897_v29  ;;  %4723 = vmatpush.msra.mxu3 %v2897_v29  ;;  %v2892_v37 = vld [vmem:[#allocation2 + $0x108] sm:$0xff]  ;;  %v2965_v60 = vld [vmem:[%s8435_s9 + $0x150] sm:$0xff] }
 0x6c6   : > { %3221 = vmatmul.f32.gmra.mxu0 %v2936_v30  ;;  %v6932_v39 = vpop.f32.mrf.mxu3  ;;  %v2972_v30 = vld [vmem:[%s8435_s9 + $0x188] sm:$0xff]  ;;  %v2969_v29 = vld [vmem:[%s8435_s9 + $0x170] sm:$0xff] }
 0x6c7   : > { %3319 = vmatpush.msrb.mxu1 %v2896_v48  ;;  %4724 = vmatpush.msra.mxu3 %v2896_v48  ;;  %8460 = vst [vmem:[#allocation8_spill] sm:$0xff] %v6932_v39  ;;  %v2974_v48 = vld [vmem:[%s8435_s9 + $0x198] sm:$0xff] }
 0x6c9   : > { %3320 = vmatpush.msrb.mxu1 %v2895_v6  ;;  %4725 = vmatpush.msra.mxu3 %v2895_v6  ;;  %v2976_v6 = vld [vmem:[%s8435_s9 + $0x1a8] sm:$0xff] }
 0x6ca   : > { %v2698_v19 = vpop.xlane.xlu1 %2697 }
 0x6cb   : > { %v2792_v15 = vmax.f32 %v2664_v50, %v2698_v19  ;;  %v2973_v50 = vld [vmem:[%s8435_s9 + $0x190] sm:$0xff]  ;;  %v2978_v19 = vld [vmem:[%s8435_s9 + $0x1b8] sm:$0xff] }
 0x6cc   : > { %v2894_v5 = vld [vmem:[#allocation2 + $0x118] sm:$0xff]  ;;  %3447 = vmatmul.f32.gmra.mxu2 %v2938_v20 }
 0x6cd   : > { %2824 = vst.msk [vmem:[#allocation2 + $0x100] sm:$0xff] %vm631_vm4, %v2792_v15  ;;  %3321 = vmatpush.msrb.mxu1 %v2894_v5  ;;  %4726 = vmatpush.msra.mxu3 %v2894_v5  ;;  %v2980_v15 = vld [vmem:[%s8435_s9 + $0x1c8] sm:$0xff] }
 0x6ce   : > { %3224 = vmatmul.f32.gmra.mxu0 %v2940_v16  ;;  %v6946_v44 = vpop.f32.mrf.mxu3  ;;  %v2977_v16 = vld [vmem:[%s8435_s9 + $0x1b0] sm:$0xff] }
 0x6cf   : > { %3322 = vmatpush.msrb.mxu1 %v2893_v28  ;;  %4727 = vmatpush.msra.mxu3 %v2893_v28  ;;  %8461 = vst [vmem:[#allocation9_spill] sm:$0xff] %v6946_v44  ;;  %v2982_v28 = vld [vmem:[%s8435_s9 + $0x1d8] sm:$0xff] }
 0x6d1   : > { %3323 = vmatpush.msrb.mxu1 %v2892_v37  ;;  %4728 = vmatpush.msra.mxu3 %v2892_v37  ;;  %v2984_v37 = vld [vmem:[%s8435_s9 + $0x1e8] sm:$0xff] }
 0x6d4   : > { %v2891_v45 = vld [vmem:[#allocation2 + $0x100] sm:$0xff]  ;;  %3450 = vmatmul.f32.gmra.mxu2 %v2942_v4  ;;  %v2981_v4 = vld [vmem:[%s8435_s9 + $0x1d0] sm:$0xff] }
 0x6d5   : > { %3324 = vmatpush.msrb.mxu1 %v2891_v45  ;;  %4729 = vmatpush.msra.mxu3 %v2891_v45 }
 0x6d6   : > { %3227 = vmatmul.f32.gmra.mxu0 %v2944_v53  ;;  %3325 = vmatmul.f32.vlgmr.msrb.gmra.mxu1 %v2925_v25  ;;  %v6963_v40 = vpop.f32.mrf.mxu3  ;;  %v2986_v25 = vld [vmem:[%s8435_s9 + $0x1f8] sm:$0xff] }
 0x6d7   : > { %3337 = vmatmul.f32.vlgmr.msra.gmra.mxu3 %v2941_v17  ;;  %8462 = vst [vmem:[#allocation10_spill] sm:$0xff] %v6963_v40  ;;  %v2988_v17 = vld [vmem:[%s8435_s9 + $0x208] sm:$0xff] }
 0x6dc   : > { %3453 = vmatmul.f32.gmra.mxu2 %v2946_v56  ;;  %v2985_v56 = vld [vmem:[%s8435_s9 + $0x1f0] sm:$0xff] }
 0x6de   : > { %3230 = vmatmul.f32.gmra.mxu0 %v2948_v52  ;;  %3328 = vmatmul.f32.gmra.mxu1 %v2929_v26  ;;  %v6986_v23 = vpop.f32.mrf.mxu3  ;;  %v2990_v52 = vld [vmem:[%s8435_s9 + $0x218] sm:$0xff] }
 0x6df   : > { %3340 = vmatmul.f32.gmra.mxu3 %v2945_v42 }
 0x6e4   : > { %3456 = vmatmul.f32.gmra.mxu2 %v2950_v13  ;;  %v2992_v13 = vld [vmem:[%s8435_s9 + $0x228] sm:$0xff] }
 0x6e6   : > { %3233 = vmatmul.f32.gmra.mxu0 %v2952_v0  ;;  %3331 = vmatmul.f32.gmra.mxu1 %v2933_v61  ;;  %v6997_v62 = vpop.f32.mrf.mxu3  ;;  %v2989_v0 = vld [vmem:[%s8435_s9 + $0x210] sm:$0xff] }
 0x6e7   : > { %3343 = vmatmul.f32.gmra.mxu3 %v2949_v43  ;;  %v2994_v43 = vld [vmem:[%s8435_s9 + $0x238] sm:$0xff] }
 0x6ec   : > { %3459 = vmatmul.f32.gmra.mxu2 %v2954_v46 }
 0x6ee   : > { %3236 = vmatmul.f32.gmra.mxu0 %v2956_v33  ;;  %3334 = vmatmul.f32.gmra.mxu1 %v2937_v55  ;;  %v7008_v54 = vpop.f32.mrf.mxu3  ;;  %v2996_v33 = vld [vmem:[%s8435_s9 + $0x248] sm:$0xff]  ;;  %v2993_v55 = vld [vmem:[%s8435_s9 + $0x230] sm:$0xff] }
 0x6ef   : > { %3346 = vmatmul.f32.gmra.mxu3 %v2953_v36 }
 0x6f4   : > { %3462 = vmatmul.f32.gmra.mxu2 %v2958_v7 }
 0x6f6   : > { %3239 = vmatmul.f32.gmra.mxu0 %v2960_v59  ;;  %v7022_v9 = vpop.f32.mrf.mxu3  ;;  %v2998_v59 = vld [vmem:[%s8435_s9 + $0x258] sm:$0xff] }
 0x6f7   : > { %3349 = vmatmul.f32.gmra.mxu3 %v2957_v21 }
 0x6fc   : > { %3465 = vmatmul.f32.gmra.mxu2 %v2962_v41  ;;  %v3000_v41 = vld [vmem:[%s8435_s9 + $0x268] sm:$0xff] }
 0x6fe   : > { %3242 = vmatmul.f32.gmra.mxu0 %v2964_v27  ;;  %v7039_v20 = vpop.f32.mrf.mxu3  ;;  %v2997_v27 = vld [vmem:[%s8435_s9 + $0x250] sm:$0xff] }
 0x6ff   : > { %3352 = vmatmul.f32.gmra.mxu3 %v2961_v38 }
 0x704   : > { %3468 = vmatmul.f32.gmra.mxu2 %v2966_v12 }
 0x706   : > { %3245 = vmatmul.f32.gmra.mxu0 %v2968_v32  ;;  %v7050_v5 = vpop.f32.mrf.mxu3  ;;  %v3002_v32 = vld [vmem:[%s8435_s9 + $0x278] sm:$0xff] }
 0x707   : > { %3355 = vmatmul.f32.gmra.mxu3 %v2965_v60 }
 0x70c   : > { %3471 = vmatmul.f32.gmra.mxu2 %v2970_v11  ;;  %v3004_v11 = vld [vmem:[%s8435_s9 + $0x288] sm:$0xff] }
 0x70e   : > { %3248 = vmatmul.f32.gmra.mxu0 %v2972_v30  ;;  %v7061_v53 = vpop.f32.mrf.mxu3  ;;  %v3001_v30 = vld [vmem:[%s8435_s9 + $0x270] sm:$0xff] }
 0x70f   : > { %3358 = vmatmul.f32.gmra.mxu3 %v2969_v29  ;;  %v3051_v29 = vld [vmem:[%s8436_s10] sm:$0xff] }
 0x714   : > { %3474 = vmatmul.f32.gmra.mxu2 %v2974_v48 }
 0x716   : > { %3251 = vmatmul.f32.gmra.mxu0 %v2976_v6  ;;  %v7075_v26 = vpop.f32.mrf.mxu3  ;;  %v3101_v6 = vadd.f32 %v6779_v18, %v3051_v29  ;;  %v3005_v18 = vld [vmem:[%s8435_s9 + $0x290] sm:$0xff] }
 0x717   : > { %3361 = vmatmul.f32.gmra.mxu3 %v2973_v50 }
 0x71c   : > { %3477 = vmatmul.f32.gmra.mxu2 %v2978_v19  ;;  %v3006_v19 = vld [vmem:[%s8435_s9 + $0x298] sm:$0xff] }
 0x71e   : > { %3254 = vmatmul.f32.gmra.mxu0 %v2980_v15  ;;  %v7094_v36 = vpop.f32.mrf.mxu3 }
 0x71f   : > { %3364 = vmatmul.f32.gmra.mxu3 %v2977_v16 }
 0x724   : > { %3480 = vmatmul.f32.gmra.mxu2 %v2982_v28 }
 0x726   : > { %3257 = vmatmul.f32.gmra.mxu0 %v2984_v37  ;;  %v7107_v38 = vpop.f32.mrf.mxu3  ;;  %v3008_v37 = vld [vmem:[%s8435_s9 + $0x2a8] sm:$0xff] }
 0x727   : > { %3367 = vmatmul.f32.gmra.mxu3 %v2981_v4  ;;  %v3055_v4 = vld [vmem:[%s8436_s10 + $0x20] sm:$0xff] }
 0x72b   : > { %v3213_v45 = vpop.f32.mrf.mxu0 }
 0x72c   : > { %3483 = vmatmul.f32.gmra.mxu2 %v2986_v25  ;;  %v3214_v15 = vadd.f32 %v3213_v45, %v3101_v6  ;;  %v3052_v45 = vld [vmem:[%s8436_s10 + $0x8] sm:$0xff] }
 0x72e   : > { %3260 = vmatmul.f32.gmra.mxu0 %v2988_v17  ;;  %v7124_v50 = vpop.f32.mrf.mxu3 }
 0x72f   : > { %3370 = vmatmul.f32.gmra.mxu3 %v2985_v56  ;;  %v3113_v56 = vadd.f32 %v6816_v58, %v3055_v4  ;;  %v3056_v58 = vld [vmem:[%s8436_s10 + $0x28] sm:$0xff] }
 0x733   : > { %v3216_v42 = vpop.f32.mrf.mxu0 }
 0x734   : > { %3486 = vmatmul.f32.gmra.mxu2 %v2990_v52 }
 0x736   : > { %3263 = vmatmul.f32.gmra.mxu0 %v2992_v13  ;;  %v3104_v13 = vadd.f32 %v6789_v3, %v3052_v45  ;;  %v3009_v3 = vld [vmem:[%s8435_s9 + $0x2b0] sm:$0xff] }
 0x737   : > { %3373 = vmatmul.f32.gmra.mxu3 %v2989_v0  ;;  %v3439_v61 = vpop.f32.mrf.mxu2 }
 0x73b   : > { %v7086_v46 = vpop.f32.mrf.mxu0 }
 0x73c   : > { %3489 = vmatmul.f32.gmra.mxu2 %v2994_v43  ;;  %v3010_v43 = vld [vmem:[%s8435_s9 + $0x2b8] sm:$0xff] }
 0x73e   : > { %3266 = vmatmul.f32.gmra.mxu0 %v2996_v33  ;;  %v3217_v33 = vadd.f32 %v3216_v42, %v3104_v13  ;;  %v3053_v42 = vld [vmem:[%s8436_s10 + $0x10] sm:$0xff] }
 0x73f   : > { %3376 = vmatmul.f32.gmra.mxu3 %v2993_v55  ;;  %v3442_v7 = vpop.f32.mrf.mxu2  ;;  %v3107_v6 = vadd.f32 %v6799_v35, %v3053_v42 }
 0x743   : > { %v7099_v21 = vpop.f32.mrf.mxu0 }
 0x744   : > { %3492 = vmatmul.f32.gmra.mxu2 %v2998_v59 }
 0x746   : > { %3269 = vmatmul.f32.gmra.mxu0 %v3000_v41 }
 0x747   : > { %3379 = vmatmul.f32.gmra.mxu3 %v2997_v27  ;;  %v3445_v12 = vpop.f32.mrf.mxu2 }
 0x74b   : > { %v3225_v60 = vpop.f32.mrf.mxu0 }
 0x74c   : > { %3495 = vmatmul.f32.gmra.mxu2 %v3002_v32  ;;  %v3226_v0 = vadd.f32 %v3225_v60, %v3113_v56 }
 0x74e   : > { %3272 = vmatmul.f32.gmra.mxu0 %v3004_v11 }
 0x74f   : > { %3382 = vmatmul.f32.gmra.mxu3 %v3001_v30  ;;  %v7121_v48 = vpop.f32.mrf.mxu2  ;;  %v3116_v30 = vadd.f32 %v6823_v10, %v3056_v58  ;;  %v3057_v10 = vld [vmem:[%s8436_s10 + $0x30] sm:$0xff] }
 0x750   : > { %v3017_v58 = vld [vmem:[%s8435_s9 + $0x2f0] sm:$0xff] }
 0x753   : > { %v3228_v16 = vpop.f32.mrf.mxu0  ;;  %v3326_v28 = vpop.f32.mrf.mxu1 }
 0x754   : > { %v3327_v25 = vadd.f32 %v3326_v28, %v3214_v15  ;;  %3498 = vmatmul.f32.gmra.mxu2 %v3006_v19  ;;  %v3229_v19 = vadd.f32 %v3228_v16, %v3116_v30  ;;  %v3014_v15 = vld [vmem:[%s8435_s9 + $0x2d8] sm:$0xff]  ;;  %v3220_v28 = vadd.f32 %v7086_v46, %v3107_v6  ;;  %v3013_v16 = vld [vmem:[%s8435_s9 + $0x2d0] sm:$0xff] }
 0x755   : > { %v3054_v46 = vld [vmem:[%s8436_s10 + $0x18] sm:$0xff] }
 0x756   : > { %v7141_v17 = vadd.f32 %v3439_v61, %v3327_v25  ;;  %3275 = vmatmul.f32.gmra.mxu0 %v3008_v37  ;;  %v3012_v61 = vld [vmem:[%s8435_s9 + $0x2c8] sm:$0xff] }
 0x757   : > { %3385 = vmatmul.f32.gmra.mxu3 %v3005_v18  ;;  %v3451_v52 = vpop.f32.mrf.mxu2 }
 0x75a   : > { %v3338_v55 = vpop.f32.mrf.mxu3 }
 0x75b   : > { %v3339_v59 = vadd.f32 %v3338_v55, %v3226_v0  ;;  %v3231_v41 = vpop.f32.mrf.mxu0  ;;  %v3329_v27 = vpop.f32.mrf.mxu1  ;;  %v3110_v0 = vadd.f32 %v6807_v34, %v3054_v46  ;;  %v3058_v34 = vld [vmem:[%s8436_s10 + $0x38] sm:$0xff] }
 0x75c   : > { %v3330_v32 = vadd.f32 %v3329_v27, %v3217_v33  ;;  %3501 = vmatmul.f32.gmra.mxu2 %v3010_v43  ;;  %v3018_v33 = vld [vmem:[%s8435_s9 + $0x2f8] sm:$0xff] }
 0x75d   : > { %v7160_v60 = vadd.f32 %v3451_v52, %v3339_v59  ;;  %v3119_v52 = vadd.f32 %v6830_v22, %v3057_v10  ;;  %v3223_v55 = vadd.f32 %v7099_v21, %v3110_v0  ;;  %v3020_v22 = vld [vmem:[%s8435_s9 + $0x308] sm:$0xff]  ;;  %v3025_v10 = vld [vmem:[%s8435_s9 + $0x330] sm:$0xff] }
 0x75e   : > { %v7162_v11 = vadd.f32 %v3442_v7, %v3330_v32  ;;  %3278 = vmatmul.f32.gmra.mxu0 %v3012_v61  ;;  %v3016_v7 = vld [vmem:[%s8435_s9 + $0x2e8] sm:$0xff]  ;;  %v3029_v0 = vld [vmem:[%s8435_s9 + $0x350] sm:$0xff] }
 0x75f   : > { %3388 = vmatmul.f32.gmra.mxu3 %v3009_v3  ;;  %v3454_v29 = vpop.f32.mrf.mxu2  ;;  %v3232_v43 = vadd.f32 %v3231_v41, %v3119_v52  ;;  %v3122_v3 = vadd.f32 %v6837_v8, %v3058_v34  ;;  %v3038_v34 = vld [vmem:[%s8435_s9 + $0x398] sm:$0xff] }
 0x762   : > { %v3341_v37 = vpop.f32.mrf.mxu3 }
 0x763   : > { %v3342_v4 = vadd.f32 %v3341_v37, %v3229_v19  ;;  %v3234_v25 = vpop.f32.mrf.mxu0  ;;  %v3332_v18 = vpop.f32.mrf.mxu1 }
 0x764   : > { %v3333_v35 = vadd.f32 %v3332_v18, %v3220_v28  ;;  %3504 = vmatmul.f32.gmra.mxu2 %v3014_v15  ;;  %v3235_v30 = vadd.f32 %v3234_v25, %v3122_v3  ;;  %v3024_v28 = vld [vmem:[%s8435_s9 + $0x328] sm:$0xff] }
 0x765   : > { %v7182_v45 = vadd.f32 %v3454_v29, %v3342_v4  ;;  %v3022_v29 = vld [vmem:[%s8435_s9 + $0x318] sm:$0xff]  ;;  %v3040_v3 = vld [vmem:[%s8435_s9 + $0x3a8] sm:$0xff] }
 0x766   : > { %v7184_v56 = vadd.f32 %v3445_v12, %v3333_v35  ;;  %3281 = vmatmul.f32.gmra.mxu0 %v3016_v7  ;;  %v3026_v4 = vld [vmem:[%s8435_s9 + $0x338] sm:$0xff]  ;;  %v3028_v7 = vld [vmem:[%s8435_s9 + $0x348] sm:$0xff] }
 0x767   : > { %3391 = vmatmul.f32.gmra.mxu3 %v3013_v16  ;;  %v3457_v13 = vpop.f32.mrf.mxu2  ;;  %v3030_v16 = vld [vmem:[%s8435_s9 + $0x358] sm:$0xff] }
 0x76a   : > { %v3344_v59 = vpop.f32.mrf.mxu3 }
 0x76b   : > { %v3345_v27 = vadd.f32 %v3344_v59, %v3232_v43  ;;  %v7192_v61 = vpop.f32.mrf.mxu0  ;;  %v3335_v12 = vpop.f32.mrf.mxu1 }
 0x76c   : > { %v3336_v41 = vadd.f32 %v3335_v12, %v3223_v55  ;;  %3507 = vmatmul.f32.gmra.mxu2 %v3018_v33  ;;  %v3034_v33 = vld [vmem:[%s8435_s9 + $0x378] sm:$0xff]  ;;  %v3033_v12 = vld [vmem:[%s8435_s9 + $0x370] sm:$0xff] }
 0x76d   : > { %v7203_v21 = vadd.f32 %v3457_v13, %v3345_v27  ;;  %v3032_v13 = vld [vmem:[%s8435_s9 + $0x368] sm:$0xff] }
 0x76e   : > { %v7206_v32 = vadd.f32 %v7121_v48, %v3336_v41  ;;  %3284 = vmatmul.f32.gmra.mxu0 %v3020_v22  ;;  %v3021_v48 = vld [vmem:[%s8435_s9 + $0x310] sm:$0xff]  ;;  %v3036_v27 = vld [vmem:[%s8435_s9 + $0x388] sm:$0xff] }
 0x76f   : > { %3394 = vmatmul.f32.gmra.mxu3 %v3017_v58  ;;  %v3460_v42 = vpop.f32.mrf.mxu2 }
 0x772   : > { %v3347_v6 = vpop.f32.mrf.mxu3 }
 0x773   : > { %v3348_v19 = vadd.f32 %v3347_v6, %v3235_v30  ;;  %v7212_v15 = vpop.f32.mrf.mxu0 }
 0x774   : > { %3510 = vmatmul.f32.gmra.mxu2 %v3022_v29  ;;  %v3042_v29 = vld [vmem:[%s8435_s9 + $0x3b8] sm:$0xff] }
 0x775   : > { %v7220_v8 = vadd.f32 %v3460_v42, %v3348_v19  ;;  %v3037_v42 = vld [vmem:[%s8435_s9 + $0x390] sm:$0xff] }
 0x776   : > { %3287 = vmatmul.f32.gmra.mxu0 %v3024_v28  ;;  %v3044_v28 = vld [vmem:[%s8435_s9 + $0x3c8] sm:$0xff] }
 0x777   : > { %3397 = vmatmul.f32.gmra.mxu3 %v3021_v48  ;;  %v7222_v37 = vpop.f32.mrf.mxu2  ;;  %v3041_v48 = vld [vmem:[%s8435_s9 + $0x3b0] sm:$0xff] }
 0x77a   : > { %v7227_v25 = vpop.f32.mrf.mxu3 }
 0x77b   : > { %v7229_v18 = vpop.f32.mrf.mxu0 }
 0x77c   : > { %3513 = vmatmul.f32.gmra.mxu2 %v3026_v4 }
 0x77e   : > { %3290 = vmatmul.f32.gmra.mxu0 %v3028_v7  ;;  %v3046_v7 = vld [vmem:[%s8435_s9 + $0x3d8] sm:$0xff] }
 0x77f   : > { %3400 = vmatmul.f32.gmra.mxu3 %v3025_v10  ;;  %v7237_v35 = vpop.f32.mrf.mxu2 }
 0x782   : > { %v7242_v46 = vpop.f32.mrf.mxu3 }
 0x783   : > { %v7244_v52 = vpop.f32.mrf.mxu0 }
 0x784   : > { %3516 = vmatmul.f32.gmra.mxu2 %v3030_v16 }
 0x786   : > { %3293 = vmatmul.f32.gmra.mxu0 %v3032_v13  ;;  %v3048_v13 = vld [vmem:[%s8435_s9 + $0x3e8] sm:$0xff] }
 0x787   : > { %3403 = vmatmul.f32.gmra.mxu3 %v3029_v0  ;;  %v7252_v43 = vpop.f32.mrf.mxu2  ;;  %v3045_v0 = vld [vmem:[%s8435_s9 + $0x3d0] sm:$0xff] }
 0x78a   : > { %v7257_v55 = vpop.f32.mrf.mxu3 }
 0x78b   : > { %v3249_v59 = vpop.f32.mrf.mxu0 }
 0x78c   : > { %3519 = vmatmul.f32.gmra.mxu2 %v3034_v33 }
 0x78e   : > { %3296 = vmatmul.f32.gmra.mxu0 %v3036_v27  ;;  %v3050_v27 = vld [vmem:[%s8435_s9 + $0x3f8] sm:$0xff] }
 0x78f   : > { %3406 = vmatmul.f32.gmra.mxu3 %v3033_v12  ;;  %v7265_v22 = vpop.f32.mrf.mxu2  ;;  %v3065_v12 = vld [vmem:[%s8436_s10 + $0x70] sm:$0xff] }
 0x792   : > { %v3359_v41 = vpop.f32.mrf.mxu3 }
 0x793   : > { %v3252_v58 = vpop.f32.mrf.mxu0 }
 0x794   : > { %3522 = vmatmul.f32.gmra.mxu2 %v3038_v34 }
 0x796   : > { %3299 = vmatmul.f32.gmra.mxu0 %v3040_v3 }
 0x797   : > { %3409 = vmatmul.f32.gmra.mxu3 %v3037_v42  ;;  %v3475_v30 = vpop.f32.mrf.mxu2  ;;  %v3064_v42 = vld [vmem:[%s8436_s10 + $0x68] sm:$0xff] }
 0x79a   : > { %v3362_v6 = vpop.f32.mrf.mxu3 }
 0x79b   : > { %v3255_v19 = vpop.f32.mrf.mxu0 }
 0x79c   : > { %3525 = vmatmul.f32.gmra.mxu2 %v3042_v29  ;;  %v3066_v29 = vld [vmem:[%s8436_s10 + $0x78] sm:$0xff] }
 0x79e   : > { %3302 = vmatmul.f32.gmra.mxu0 %v3044_v28  ;;  %v3049_v28 = vld [vmem:[%s8435_s9 + $0x3f0] sm:$0xff] }
 0x79f   : > { %3412 = vmatmul.f32.gmra.mxu3 %v3041_v48  ;;  %v3478_v4 = vpop.f32.mrf.mxu2  ;;  %v3143_v48 = vadd.f32 %v6889_v57, %v3065_v12 }
 0x7a2   : > { %v3365_v10 = vpop.f32.mrf.mxu3 }
 0x7a3   : > { %v3258_v16 = vpop.f32.mrf.mxu0 }
 0x7a4   : > { %3528 = vmatmul.f32.gmra.mxu2 %v3046_v7  ;;  %v3063_v7 = vld [vmem:[%s8436_s10 + $0x60] sm:$0xff] }
 0x7a5   : > { %v3137_v57 = vadd.f32 %v6872_v47, %v3063_v7  ;;  %v3059_v47 = vld [vmem:[%s8436_s10 + $0x40] sm:$0xff] }
 0x7a6   : > { %3305 = vmatmul.f32.gmra.mxu0 %v3048_v13  ;;  %v3140_v13 = vadd.f32 %v6879_v51, %v3064_v42  ;;  %v3060_v51 = vld [vmem:[%s8436_s10 + $0x48] sm:$0xff] }
 0x7a7   : > { %3415 = vmatmul.f32.gmra.mxu3 %v3045_v0  ;;  %v3481_v33 = vpop.f32.mrf.mxu2  ;;  %v3146_v0 = vadd.f32 %v6902_v1, %v3066_v29  ;;  %v3134_v1 = vadd.f32 %v6865_v49, %v3062_v24  ;;  %v3128_v7 = vadd.f32 %v6851_v63, %v3060_v51 }
 0x7a8   : > { %v3253_v12 = vadd.f32 %v3252_v58, %v3140_v13 }
 0x7a9   : > { %v3259_v39 = vadd.f32 %v3258_v16, %v3146_v0  ;;  %v3247_v58 = vadd.f32 %v7244_v52, %v3134_v1 }
 0x7aa   : > { %v3368_v34 = vpop.f32.mrf.mxu3  ;;  %v3366_v42 = vadd.f32 %v3365_v10, %v3253_v12  ;;  %v3241_v10 = vadd.f32 %v7212_v15, %v3128_v7  ;;  %v3541_v12 = vmax.f32 %v7203_v21, 0.0 }
 0x7ab   : > { %v7300_v3 = vpop.f32.mrf.mxu0  ;;  %v3360_v24 = vadd.f32 %v3359_v41, %v3247_v58 }
 0x7ac   : > { %8463 = vst [vmem:[#allocation11_spill] sm:$0xff] %v7300_v3  ;;  %3531 = vmatmul.f32.gmra.mxu2 %v3050_v27  ;;  %v3256_v3 = vadd.f32 %v3255_v19, %v3143_v48  ;;  %v3061_v27 = vld [vmem:[%s8436_s10 + $0x50] sm:$0xff]  ;;  %v3250_v19 = vadd.f32 %v3249_v59, %v3137_v57  ;;  %v3479_v59 = vadd.f32 %v3478_v4, %v3366_v42  ;;  %v3538_v42 = vmax.f32 %v7206_v32, 0.0 }
 0x7ad   : > { %v3131_v48 = vadd.f32 %v6858_v14, %v3061_v27  ;;  %v3125_v14 = vadd.f32 %v6844_v2, %v3059_v47  ;;  %v3535_v47 = vmax.f32 %v7141_v17, 0.0  ;;  %v3073_v17 = vld [vmem:[%s8436_s10 + $0xb0] sm:$0xff] }
 0x7ae   : > { %v3369_v44 = vadd.f32 %v3368_v34, %v3256_v3  ;;  %v3363_v16 = vadd.f32 %v3362_v6, %v3250_v19  ;;  %v3548_v41 = vmax.f32 %v3479_v59, 0.0  ;;  %v3539_v19 = vmax.f32 %v7160_v60, 0.0 }
 0x7af   : > { %3418 = vmatmul.f32.gmra.mxu3 %v3049_v28  ;;  %v3484_v31 = vpop.f32.mrf.mxu2  ;;  %v3244_v49 = vadd.f32 %v7229_v18, %v3131_v48  ;;  %v3238_v63 = vadd.f32 %v7192_v61, %v3125_v14  ;;  %v3473_v18 = vadd.f32 %v7265_v22, %v3360_v24  ;;  %v3167_v59 = vadd.f32 %v6997_v62, %v3073_v17  ;;  %v3075_v62 = vld [vmem:[%s8436_s10 + $0xc0] sm:$0xff]  ;;  %v3082_v17 = vld [vmem:[%s8436_s10 + $0xf8] sm:$0xff] }
 0x7b0   : > { %v3482_v34 = vadd.f32 %v3481_v33, %v3369_v44  ;;  %v3476_v0 = vadd.f32 %v3475_v30, %v3363_v16  ;;  %v3072_v16 = vld [vmem:[%s8436_s10 + $0xa8] sm:$0xff] }
 0x7b1   : > { %v3357_v13 = vadd.f32 %v7257_v55, %v3244_v49  ;;  %v3351_v2 = vadd.f32 %v7227_v25, %v3238_v63  ;;  %v3546_v4 = vmax.f32 %v3473_v18, 0.0 }
 0x7b2   : > { %v3371_v40 = vpop.f32.mrf.mxu3  ;;  %v3549_v52 = vmax.f32 %v3482_v34, 0.0  ;;  %v3547_v55 = vmax.f32 %v3476_v0, 0.0 }
 0x7b3   : > { %v3372_v29 = vadd.f32 %v3371_v40, %v3259_v39  ;;  %v7328_v28 = vpop.f32.mrf.mxu0  ;;  %v3470_v15 = vadd.f32 %v7252_v43, %v3357_v13  ;;  %v3464_v61 = vadd.f32 %v7222_v37, %v3351_v2  ;;  %v3542_v43 = vmax.f32 %v7220_v8, 0.0 }
 0x7b4   : > { %v3540_v37 = vmax.f32 %v7182_v45, 0.0  ;;  %v3536_v45 = vmax.f32 %v7162_v11, 0.0 }
 0x7b5   : > { %v3485_v3 = vadd.f32 %v3484_v31, %v3372_v29  ;;  %v3354_v31 = vadd.f32 %v7242_v46, %v3241_v10  ;;  %v3545_v46 = vmax.f32 %v3470_v15, 0.0  ;;  %v3543_v25 = vmax.f32 %v3464_v61, 0.0 }
 0x7b6   : > { %v3537_v29 = vmax.f32 %v7184_v56, 0.0  ;;  %v3164_v56 = vadd.f32 %v6986_v23, %v3072_v16  ;;  %v3074_v23 = vld [vmem:[%s8436_s10 + $0xb8] sm:$0xff] }
 0x7b7   : > { %v3550_v39 = vmax.f32 %v3485_v3, 0.0  ;;  %v7337_v40 = vpop.f32.mrf.mxu2  ;;  %v3467_v30 = vadd.f32 %v7237_v35, %v3354_v31  ;;  %v3170_v63 = vadd.f32 %v7008_v54, %v3074_v23  ;;  %v3078_v23 = vld [vmem:[%s8436_s10 + $0xd8] sm:$0xff] }
 0x7b9   : > { %3615 = vmatpush.msrb.mxu3 %v3550_v39  ;;  %v3544_v27 = vmax.f32 %v3467_v30, 0.0  ;;  %v3173_v30 = vadd.f32 %v7022_v9, %v3075_v62  ;;  %v3076_v62 = vld [vmem:[%s8436_s10 + $0xc8] sm:$0xff] }
 0x7ba   : > { %v7342_v44 = vpop.f32.mrf.mxu3 }
 0x7bb   : > { %3616 = vmatpush.msrb.mxu3 %v3549_v52  ;;  %v7347_v6 = vpop.f32.mrf.mxu0 }
 0x7bd   : > { %3617 = vmatpush.msrb.mxu3 %v3548_v41 }
 0x7bf   : > { %3618 = vmatpush.msrb.mxu3 %v3547_v55  ;;  %v7352_v33 = vpop.f32.mrf.mxu2 }
 0x7c1   : > { %3619 = vmatpush.msrb.mxu3 %v3546_v4 }
 0x7c2   : > { %v7355_v22 = vpop.f32.mrf.mxu3 }
 0x7c3   : > { %3620 = vmatpush.msrb.mxu3 %v3545_v46  ;;  %v7357_v57 = vpop.f32.mrf.mxu0 }
 0x7c5   : > { %3621 = vmatpush.msrb.mxu3 %v3544_v27 }
 0x7c7   : > { %3622 = vmatpush.msrb.mxu3 %v3543_v25  ;;  %v7360_v35 = vpop.f32.mrf.mxu2 }
 0x7c9   : > { %3623 = vmatpush.msrb.mxu3 %v3542_v43 }
 0x7ca   : > { %v7363_v51 = vpop.f32.mrf.mxu3 }
 0x7cb   : > { %3624 = vmatpush.msrb.mxu3 %v3541_v12  ;;  %v7366_v1 = vpop.f32.mrf.mxu0 }
 0x7cd   : > { %3625 = vmatpush.msrb.mxu3 %v3540_v37 }
 0x7cf   : > { %3626 = vmatpush.msrb.mxu3 %v3539_v19  ;;  %v7370_v8 = vpop.f32.mrf.mxu2 }
 0x7d1   : > { %3627 = vmatpush.msrb.mxu3 %v3538_v42 }
 0x7d2   : > { %v7373_v21 = vpop.f32.mrf.mxu3 }
 0x7d3   : > { %3628 = vmatpush.msrb.mxu3 %v3537_v29  ;;  %v3276_v48 = vpop.f32.mrf.mxu0 }
 0x7d4   : > { %v3277_v3 = vadd.f32 %v3276_v48, %v3164_v56 }
 0x7d5   : > { %3629 = vmatpush.msrb.mxu3 %v3536_v45 }
 0x7d7   : > { %3630 = vmatpush.msrb.mxu3 %v3535_v47  ;;  %v7377_v60 = vpop.f32.mrf.mxu2 }
 0x7da   : > { %v7379_v58 = vpop.f32.mrf.mxu3 }
 0x7db   : > { %v3279_v32 = vpop.f32.mrf.mxu0 }
 0x7dc   : > { %v3280_v14 = vadd.f32 %v3279_v32, %v3167_v59 }
 0x7df   : > { %v3502_v34 = vpop.f32.mrf.mxu2 }
 0x7e2   : > { %v3389_v7 = vpop.f32.mrf.mxu3 }
 0x7e3   : > { %v3390_v49 = vadd.f32 %v3389_v7, %v3277_v3  ;;  %v3282_v11 = vpop.f32.mrf.mxu0  ;;  %v3081_v7 = vld [vmem:[%s8436_s10 + $0xf0] sm:$0xff] }
 0x7e4   : > { %v3283_v18 = vadd.f32 %v3282_v11, %v3170_v63  ;;  %v3080_v11 = vld [vmem:[%s8436_s10 + $0xe8] sm:$0xff]  ;;  %v3191_v59 = vadd.f32 %v7107_v38, %v3081_v7  ;;  %v3567_v63 = vld [vmem:[%s8437_s11] sm:$0xff]  ;;  %v3077_v38 = vld [vmem:[%s8436_s10 + $0xd0] sm:$0xff] }
 0x7e5   : > { %v7388_v24 = vadd.f32 %v3502_v34, %v3390_v49  ;;  %3631 = vmatmul.f32.vlgmr.msrb.gmra.mxu3 %v3567_v63  ;;  %v3068_v63 = vld [vmem:[%s8436_s10 + $0x88] sm:$0xff] }
 0x7e7   : > { %v3505_v39 = vpop.f32.mrf.mxu2 }
 0x7ea   : > { %v3392_v10 = vpop.f32.mrf.mxu3 }
 0x7eb   : > { %v3393_v13 = vadd.f32 %v3392_v10, %v3280_v14  ;;  %v3285_v0 = vpop.f32.mrf.mxu0  ;;  %v3188_v10 = vadd.f32 %v7094_v36, %v3080_v11 }
 0x7ec   : > { %v3286_v61 = vadd.f32 %v3285_v0, %v3173_v30  ;;  %v3182_v30 = vadd.f32 %v7061_v53, %v3078_v23 }
 0x7ed   : > { %v7394_v52 = vadd.f32 %v3505_v39, %v3393_v13  ;;  %v3079_v39 = vld [vmem:[%s8436_s10 + $0xe0] sm:$0xff]  ;;  %v3194_v13 = vadd.f32 %v7124_v50, %v3082_v17 }
 0x7ef   : > { %v3508_v31 = vpop.f32.mrf.mxu2 }
 0x7f2   : > { %v3395_v41 = vpop.f32.mrf.mxu3 }
 0x7f3   : > { %v3396_v2 = vadd.f32 %v3395_v41, %v3283_v18  ;;  %v3288_v15 = vpop.f32.mrf.mxu0 }
 0x7f5   : > { %v7400_v55 = vadd.f32 %v3508_v31, %v3396_v2  ;;  %v3185_v31 = vadd.f32 %v7075_v26, %v3079_v39 }
 0x7f7   : > { %v3511_v4 = vpop.f32.mrf.mxu2 }
 0x7fa   : > { %v3398_v46 = vpop.f32.mrf.mxu3 }
 0x7fb   : > { %v3399_v27 = vadd.f32 %v3398_v46, %v3286_v61  ;;  %v3291_v25 = vpop.f32.mrf.mxu0 }
 0x7fd   : > { %v7403_v43 = vadd.f32 %v3511_v4, %v3399_v27  ;;  %v3179_v27 = vadd.f32 %v7050_v5, %v3077_v38  ;;  %v3067_v38 = vld [vmem:[%s8436_s10 + $0x80] sm:$0xff] }
 0x7ff   : > { %v7405_v54 = vpop.f32.mrf.mxu2  ;;  %v3292_v11 = vadd.f32 %v3291_v25, %v3179_v27 }
 0x802   : > { %v3401_v12 = vpop.f32.mrf.mxu3 }
 0x803   : > { %v3294_v37 = vpop.f32.mrf.mxu0 }
 0x807   : > { %v3517_v19 = vpop.f32.mrf.mxu2 }
 0x80a   : > { %v3404_v42 = vpop.f32.mrf.mxu3 }
 0x80b   : > { %v3297_v48 = vpop.f32.mrf.mxu0 }
 0x80c   : > { %v3298_v4 = vadd.f32 %v3297_v48, %v3185_v31  ;;  %v3405_v48 = vadd.f32 %v3404_v42, %v3292_v11  ;;  %v8466_v31 = vld [vmem:[#allocation8_spill] sm:$0xff]  ;;  %v3578_v11 = vld [vmem:[%s8437_s11 + $0x58] sm:$0xff] }
 0x80f   : > { %v3520_v29 = vpop.f32.mrf.mxu2 }
 0x812   : > { %v3407_v45 = vpop.f32.mrf.mxu3 }
 0x813   : > { %v3300_v32 = vpop.f32.mrf.mxu0 }
 0x814   : > { %v3301_v18 = vadd.f32 %v3300_v32, %v3188_v10 }
 0x817   : > { %v3523_v47 = vpop.f32.mrf.mxu2 }
 0x81a   : > { %v3410_v16 = vpop.f32.mrf.mxu3 }
 0x81b   : > { %v3303_v34 = vpop.f32.mrf.mxu0  ;;  %v3411_v7 = vadd.f32 %v3410_v16, %v3298_v4  ;;  %v3558_v4 = vmax.f32 %v7400_v55, 0.0 }
 0x81c   : > { %v3304_v0 = vadd.f32 %v3303_v34, %v3191_v59  ;;  %v3295_v34 = vadd.f32 %v3294_v37, %v3182_v30 }
 0x81e   : > { %v3408_v17 = vadd.f32 %v3407_v45, %v3295_v34  ;;  %v3071_v45 = vld [vmem:[%s8436_s10 + $0xa0] sm:$0xff] }
 0x81f   : > { %v3526_v9 = vpop.f32.mrf.mxu2 }
 0x820   : > { %v3521_v37 = vadd.f32 %v3520_v29, %v3408_v17  ;;  %v8464_v29 = vld [vmem:[#allocation10_spill] sm:$0xff]  ;;  %v3570_v17 = vld [vmem:[%s8437_s11 + $0x18] sm:$0xff] }
 0x822   : > { %v3413_v56 = vpop.f32.mrf.mxu3  ;;  %v3562_v42 = vmax.f32 %v3521_v37, 0.0  ;;  %v3585_v37 = vld [vmem:[%s8437_s11 + $0x90] sm:$0xff] }
 0x823   : > { %v3306_v14 = vpop.f32.mrf.mxu0  ;;  %v3414_v61 = vadd.f32 %v3413_v56, %v3301_v18  ;;  %v3524_v56 = vadd.f32 %v3523_v47, %v3411_v7  ;;  %v3161_v47 = vadd.f32 %v8464_v29, %v3071_v45  ;;  %v3589_v45 = vld [vmem:[%s8437_s11 + $0xb0] sm:$0xff]  ;;  %v3594_v29 = vld [vmem:[%s8437_s11 + $0xd8] sm:$0xff] }
 0x824   : > { %v3307_v41 = vadd.f32 %v3306_v14, %v3194_v13  ;;  %v3569_v14 = vld [vmem:[%s8437_s11 + $0x10] sm:$0xff] }
 0x825   : > { %v3527_v59 = vadd.f32 %v3526_v9, %v3414_v61  ;;  %3634 = vmatmul.f32.gmra.mxu3 %v3569_v14  ;;  %v3563_v25 = vmax.f32 %v3524_v56, 0.0  ;;  %v8468_v61 = vld [vmem:[#allocation6_spill] sm:$0xff]  ;;  %v3572_v14 = vld [vmem:[%s8437_s11 + $0x28] sm:$0xff]  ;;  %v3574_v56 = vld [vmem:[%s8437_s11 + $0x38] sm:$0xff] }
 0x827   : > { %v3529_v3 = vpop.f32.mrf.mxu2  ;;  %v3564_v16 = vmax.f32 %v3527_v59, 0.0  ;;  %v3579_v59 = vld [vmem:[%s8437_s11 + $0x60] sm:$0xff] }
 0x82a   : > { %v3416_v49 = vpop.f32.mrf.mxu3 }
 0x82b   : > { %v3417_v36 = vadd.f32 %v3416_v49, %v3304_v0  ;;  %v3176_v49 = vadd.f32 %v7039_v20, %v3076_v62  ;;  %v3518_v20 = vadd.f32 %v3517_v19, %v3405_v48  ;;  %v3070_v19 = vld [vmem:[%s8436_s10 + $0x98] sm:$0xff]  ;;  %v3274_v0 = vadd.f32 %v7366_v1, %v3161_v47  ;;  %v8467_v1 = vld [vmem:[#allocation7_spill] sm:$0xff]  ;;  %v3595_v47 = vld [vmem:[%s8437_s11 + $0xe0] sm:$0xff] }
 0x82c   : > { %v3582_v48 = vld [vmem:[%s8437_s11 + $0x78] sm:$0xff] }
 0x82d   : > { %v3530_v26 = vadd.f32 %v3529_v3, %v3417_v36  ;;  %v3289_v53 = vadd.f32 %v3288_v15, %v3176_v49  ;;  %v3561_v9 = vmax.f32 %v3518_v20, 0.0  ;;  %v8465_v3 = vld [vmem:[#allocation9_spill] sm:$0xff]  ;;  %v3387_v36 = vadd.f32 %v7379_v58, %v3274_v0  ;;  %v3568_v49 = vld [vmem:[%s8437_s11 + $0x8] sm:$0xff]  ;;  %v3587_v20 = vld [vmem:[%s8437_s11 + $0xa0] sm:$0xff] }
 0x82e   : > { %v3158_v13 = vadd.f32 %v8465_v3, %v3070_v19  ;;  %v3149_v58 = vadd.f32 %v8468_v61, %v3067_v38  ;;  %v3593_v19 = vld [vmem:[%s8437_s11 + $0xd0] sm:$0xff]  ;;  %v3598_v3 = vld [vmem:[%s8437_s11 + $0xf8] sm:$0xff]  ;;  %v3599_v38 = vld [vmem:[%s8438_s12] sm:$0xff] }
 0x82f   : > { %v3532_v2 = vpop.f32.mrf.mxu2  ;;  %v3565_v10 = vmax.f32 %v3530_v26, 0.0  ;;  %v3402_v5 = vadd.f32 %v3401_v12, %v3289_v53  ;;  %v3571_v12 = vld [vmem:[%s8437_s11 + $0x20] sm:$0xff]  ;;  %v3500_v27 = vadd.f32 %v7377_v60, %v3387_v36  ;;  %v3556_v26 = vmax.f32 %v7388_v24, 0.0  ;;  %v3581_v53 = vld [vmem:[%s8437_s11 + $0x70] sm:$0xff]  ;;  %v3604_v61 = vld [vmem:[%s8438_s12 + $0x28] sm:$0xff] }
 0x830   : > { %3637 = vmatmul.f32.gmra.mxu3 %v3571_v12  ;;  %v3592_v12 = vld [vmem:[%s8437_s11 + $0xc8] sm:$0xff] }
 0x831   : > { %v3515_v15 = vadd.f32 %v7405_v54, %v3402_v5  ;;  %v3069_v54 = vld [vmem:[%s8436_s10 + $0x90] sm:$0xff]  ;;  %v3555_v60 = vmax.f32 %v3500_v27, 0.0  ;;  %v3584_v5 = vld [vmem:[%s8437_s11 + $0x88] sm:$0xff] }
 0x832   : > { %v3419_v50 = vpop.f32.mrf.mxu3  ;;  %v3155_v18 = vadd.f32 %v8466_v31, %v3069_v54  ;;  %v3597_v54 = vld [vmem:[%s8437_s11 + $0xf0] sm:$0xff] }
 0x833   : > { %v3420_v46 = vadd.f32 %v3419_v50, %v3307_v41  ;;  %v3560_v23 = vmax.f32 %v3515_v15, 0.0  ;;  %v3271_v41 = vadd.f32 %v7357_v57, %v3158_v13  ;;  %v3559_v50 = vmax.f32 %v7403_v43, 0.0  ;;  %v3573_v57 = vld [vmem:[%s8437_s11 + $0x30] sm:$0xff]  ;;  %v3590_v15 = vld [vmem:[%s8437_s11 + $0xb8] sm:$0xff] }
 0x834   : > { %v3268_v62 = vadd.f32 %v7347_v6, %v3155_v18  ;;  %v3557_v6 = vmax.f32 %v7394_v52, 0.0  ;;  %v3603_v18 = vld [vmem:[%s8438_s12 + $0x20] sm:$0xff] }
 0x835   : > { %v3533_v32 = vadd.f32 %v3532_v2, %v3420_v46  ;;  %v3152_v2 = vadd.f32 %v8467_v1, %v3068_v63  ;;  %v3384_v30 = vadd.f32 %v7373_v21, %v3271_v41  ;;  %v8469_v21 = vld [vmem:[#allocation11_spill] sm:$0xff] }
 0x836   : > { %v3381_v46 = vadd.f32 %v7363_v51, %v3268_v62  ;;  %v3262_v55 = vadd.f32 %v8469_v21, %v3149_v58  ;;  %v3600_v62 = vld [vmem:[%s8438_s12 + $0x8] sm:$0xff] }
 0x837   : > { %v3566_v39 = vmax.f32 %v3533_v32, 0.0  ;;  %v3265_v43 = vadd.f32 %v7328_v28, %v3152_v2  ;;  %v3497_v7 = vadd.f32 %v7370_v8, %v3384_v30 }
 0x838   : > { %3640 = vmatmul.f32.gmra.mxu3 %v3573_v57  ;;  %v3375_v28 = vadd.f32 %v7342_v44, %v3262_v55  ;;  %v3494_v51 = vadd.f32 %v7360_v35, %v3381_v46  ;;  %v3601_v55 = vld [vmem:[%s8438_s12 + $0x10] sm:$0xff] }
 0x839   : > { %3680 = vmatpush.msrb.mxu0 %v3566_v39  ;;  %4730 = vmatpush.msra.mxu2 %v3566_v39  ;;  %v3378_v34 = vadd.f32 %v7355_v22, %v3265_v43  ;;  %v3554_v32 = vmax.f32 %v3497_v7, 0.0  ;;  %v3575_v22 = vld [vmem:[%s8437_s11 + $0x40] sm:$0xff]  ;;  %v3580_v39 = vld [vmem:[%s8437_s11 + $0x68] sm:$0xff] }
 0x83a   : > { %v3488_v8 = vadd.f32 %v7337_v40, %v3375_v28  ;;  %v3553_v24 = vmax.f32 %v3494_v51, 0.0  ;;  %v3577_v40 = vld [vmem:[%s8437_s11 + $0x50] sm:$0xff] }
 0x83b   : > { %3681 = vmatpush.msrb.mxu0 %v3565_v10  ;;  %4731 = vmatpush.msra.mxu2 %v3565_v10  ;;  %v3491_v52 = vadd.f32 %v7352_v33, %v3378_v34  ;;  %v3576_v33 = vld [vmem:[%s8437_s11 + $0x48] sm:$0xff]  ;;  %v3583_v10 = vld [vmem:[%s8437_s11 + $0x80] sm:$0xff]  ;;  %v3605_v28 = vld [vmem:[%s8438_s12 + $0x30] sm:$0xff] }
 0x83c   : > { %v3551_v35 = vmax.f32 %v3488_v8, 0.0 }
 0x83d   : > { %3682 = vmatpush.msrb.mxu0 %v3564_v16  ;;  %4732 = vmatpush.msra.mxu2 %v3564_v16  ;;  %v3552_v44 = vmax.f32 %v3491_v52, 0.0  ;;  %v3586_v16 = vld [vmem:[%s8437_s11 + $0x98] sm:$0xff] }
 0x83f   : > { %3683 = vmatpush.msrb.mxu0 %v3563_v25  ;;  %4733 = vmatpush.msra.mxu2 %v3563_v25  ;;  %v3588_v25 = vld [vmem:[%s8437_s11 + $0xa8] sm:$0xff] }
 0x840   : > { %3643 = vmatmul.f32.gmra.mxu3 %v3575_v22 }
 0x841   : > { %3684 = vmatpush.msrb.mxu0 %v3562_v42  ;;  %4734 = vmatpush.msra.mxu2 %v3562_v42  ;;  %v3591_v42 = vld [vmem:[%s8437_s11 + $0xc0] sm:$0xff] }
 0x843   : > { %3685 = vmatpush.msrb.mxu0 %v3561_v9  ;;  %4735 = vmatpush.msra.mxu2 %v3561_v9  ;;  %v3596_v9 = vld [vmem:[%s8437_s11 + $0xe8] sm:$0xff] }
 0x845   : > { %3686 = vmatpush.msrb.mxu0 %v3560_v23  ;;  %4736 = vmatpush.msra.mxu2 %v3560_v23 }
 0x847   : > { %3687 = vmatpush.msrb.mxu0 %v3559_v50  ;;  %4737 = vmatpush.msra.mxu2 %v3559_v50 }
 0x848   : > { %3646 = vmatmul.f32.gmra.mxu3 %v3577_v40 }
 0x849   : > { %3688 = vmatpush.msrb.mxu0 %v3558_v4  ;;  %4738 = vmatpush.msra.mxu2 %v3558_v4 }
 0x84b   : > { %3689 = vmatpush.msrb.mxu0 %v3557_v6  ;;  %4739 = vmatpush.msra.mxu2 %v3557_v6 }
 0x84d   : > { %3690 = vmatpush.msrb.mxu0 %v3556_v26  ;;  %4740 = vmatpush.msra.mxu2 %v3556_v26 }
 0x84f   : > { %3691 = vmatpush.msrb.mxu0 %v3555_v60  ;;  %4741 = vmatpush.msra.mxu2 %v3555_v60 }
 0x850   : > { %3649 = vmatmul.f32.gmra.mxu3 %v3579_v59 }
 0x851   : > { %3692 = vmatpush.msrb.mxu0 %v3554_v32  ;;  %4742 = vmatpush.msra.mxu2 %v3554_v32 }
 0x853   : > { %3693 = vmatpush.msrb.mxu0 %v3553_v24  ;;  %4743 = vmatpush.msra.mxu2 %v3553_v24  ;;  %v3602_v24 = vld [vmem:[%s8438_s12 + $0x18] sm:$0xff] }
 0x855   : > { %3694 = vmatpush.msrb.mxu0 %v3552_v44  ;;  %4744 = vmatpush.msra.mxu2 %v3552_v44 }
 0x857   : > { %3695 = vmatpush.msrb.mxu0 %v3551_v35  ;;  %4745 = vmatpush.msra.mxu2 %v3551_v35 }
 0x858   : > { %3708 = vmatmul.f32.vlgmr.msra.gmra.mxu2 %v3576_v33  ;;  %3696 = vmatmul.f32.vlgmr.msrb.gmra.mxu0 %v3568_v49  ;;  %v3606_v49 = vld [vmem:[%s8438_s12 + $0x38] sm:$0xff] }
 0x859   : > { %3652 = vmatmul.f32.gmra.mxu3 %v3581_v53 }
 0x860   : > { %3711 = vmatmul.f32.gmra.mxu2 %v3578_v11  ;;  %3699 = vmatmul.f32.gmra.mxu0 %v3570_v17 }
 0x861   : > { %3655 = vmatmul.f32.gmra.mxu3 %v3583_v10 }
 0x868   : > { %3714 = vmatmul.f32.gmra.mxu2 %v3580_v39  ;;  %3702 = vmatmul.f32.gmra.mxu0 %v3572_v14  ;;  %v3632_v13 = vpop.f32.mrf.mxu3 }
 0x869   : > { %3658 = vmatmul.f32.gmra.mxu3 %v3585_v37  ;;  %v3633_v31 = vadd.f32 %v3632_v13, %v3599_v38 }
 0x870   : > { %3717 = vmatmul.f32.gmra.mxu2 %v3582_v48  ;;  %3705 = vmatmul.f32.gmra.mxu0 %v3574_v56  ;;  %v3607_v56 = vld [vmem:[%s8438_s12 + $0x40] sm:$0xff] }
 0x871   : > { %3661 = vmatmul.f32.gmra.mxu3 %v3587_v20 }
 0x878   : > { %3720 = vmatmul.f32.gmra.mxu2 %v3584_v5 }
 0x879   : > { %3664 = vmatmul.f32.gmra.mxu3 %v3589_v45 }
 0x880   : > { %3723 = vmatmul.f32.gmra.mxu2 %v3586_v16 }
 0x881   : > { %3667 = vmatmul.f32.gmra.mxu3 %v3591_v42 }
 0x888   : > { %3726 = vmatmul.f32.gmra.mxu2 %v3588_v25  ;;  %v3608_v25 = vld [vmem:[%s8438_s12 + $0x48] sm:$0xff] }
 0x889   : > { %3670 = vmatmul.f32.gmra.mxu3 %v3593_v19 }
 0x890   : > { %3729 = vmatmul.f32.gmra.mxu2 %v3590_v15 }
 0x891   : > { %3673 = vmatmul.f32.gmra.mxu3 %v3595_v47 }
 0x898   : > { %3732 = vmatmul.f32.gmra.mxu2 %v3592_v12 }
 0x899   : > { %3676 = vmatmul.f32.gmra.mxu3 %v3597_v54 }
 0x8a0   : > { %3735 = vmatmul.f32.gmra.mxu2 %v3594_v29  ;;  %v3609_v29 = vld [vmem:[%s8438_s12 + $0x50] sm:$0xff] }
 0x8a8   : > { %3738 = vmatmul.f32.gmra.mxu2 %v3596_v9  ;;  %v3635_v0 = vpop.f32.mrf.mxu3 }
 0x8a9   : > { %v3636_v4 = vadd.f32 %v3635_v0, %v3600_v62  ;;  %v3610_v0 = vld [vmem:[%s8438_s12 + $0x58] sm:$0xff] }
 0x8b0   : > { %3741 = vmatmul.f32.gmra.mxu2 %v3598_v3 }
 0x8b3   : > { %v3638_v23 = vpop.f32.mrf.mxu3 }
 0x8b4   : > { %v3639_v7 = vadd.f32 %v3638_v23, %v3601_v55 }
 0x8bb   : > { %v3641_v63 = vpop.f32.mrf.mxu3 }
 0x8bc   : > { %v3642_v35 = vadd.f32 %v3641_v63, %v3602_v24 }
 0x8c3   : > { %v3644_v41 = vpop.f32.mrf.mxu3 }
 0x8c4   : > { %v3645_v1 = vadd.f32 %v3644_v41, %v3603_v18  ;;  %v3611_v41 = vld [vmem:[%s8438_s12 + $0x60] sm:$0xff] }
 0x8cb   : > { %v3647_v58 = vpop.f32.mrf.mxu3 }
 0x8cc   : > { %v3648_v6 = vadd.f32 %v3647_v58, %v3604_v61 }
 0x8d3   : > { %v3650_v51 = vpop.f32.mrf.mxu3 }
 0x8d4   : > { %v3651_v22 = vadd.f32 %v3650_v51, %v3605_v28  ;;  %v3614_v51 = vld [vmem:[%s8438_s12 + $0x78] sm:$0xff] }
 0x8d5   : > { %v3697_v36 = vpop.f32.mrf.mxu0 }
 0x8d6   : > { %v3698_v50 = vadd.f32 %v3697_v36, %v3633_v31 }
 0x8d8   : > { %v7583_v2 = vmax.f32 %v3698_v50, 0.0 }
 0x8da   : > { %3761 = vst.msk [vmem:[%s7581_s19] sm:$0xff] %vm631_vm4, %v7583_v2 }
 0x8db   : > { %v3709_v30 = vpop.f32.mrf.mxu2 }
 0x8dc   : > { %v3710_v57 = vadd.f32 %v3709_v30, %v3645_v1  ;;  %v3653_v40 = vpop.f32.mrf.mxu3 }
 0x8dd   : > { %v3700_v43 = vpop.f32.mrf.mxu0  ;;  %v3654_v39 = vadd.f32 %v3653_v40, %v3606_v49  ;;  %v3783_v49 = vld [vmem:[%s8439_s13 + $0x30] sm:$0xff]  ;;  %v3784_v40 = vld [vmem:[%s8439_s13 + $0x38] sm:$0xff] }
 0x8de   : > { %v7594_v46 = vmax.f32 %v3710_v57, 0.0  ;;  %v3701_v27 = vadd.f32 %v3700_v43, %v3636_v4  ;;  %v3612_v4 = vld [vmem:[%s8438_s12 + $0x68] sm:$0xff] }
 0x8e0   : > { %3765 = vst.msk [vmem:[%s7581_s19 + $0x20] sm:$0xff] %vm631_vm4, %v7594_v46  ;;  %v7599_v21 = vmax.f32 %v3701_v27, 0.0 }
 0x8e2   : > { %3762 = vst.msk [vmem:[%s7581_s19 + $0x8] sm:$0xff] %vm631_vm4, %v7599_v21 }
 0x8e3   : > { %v3712_v34 = vpop.f32.mrf.mxu2 }
 0x8e4   : > { %v3713_v26 = vadd.f32 %v3712_v34, %v3648_v6  ;;  %v3656_v10 = vpop.f32.mrf.mxu3  ;;  %v3613_v6 = vld [vmem:[%s8438_s12 + $0x70] sm:$0xff] }
 0x8e5   : > { %v3703_v60 = vpop.f32.mrf.mxu0  ;;  %v3657_v37 = vadd.f32 %v3656_v10, %v3607_v56  ;;  %v3792_v56 = vld [vmem:[%s8439_s13 + $0x78] sm:$0xff] }
 0x8e6   : > { %v7610_v52 = vmax.f32 %v3713_v26, 0.0  ;;  %v3704_v32 = vadd.f32 %v3703_v60, %v3639_v7 }
 0x8e8   : > { %3766 = vst.msk [vmem:[%s7581_s19 + $0x28] sm:$0xff] %vm631_vm4, %v7610_v52  ;;  %v7615_v8 = vmax.f32 %v3704_v32, 0.0 }
 0x8ea   : > { %3763 = vst.msk [vmem:[%s7581_s19 + $0x10] sm:$0xff] %vm631_vm4, %v7615_v8 }
 0x8eb   : > { %v3715_v44 = vpop.f32.mrf.mxu2 }
 0x8ec   : > { %v3716_v33 = vadd.f32 %v3715_v44, %v3651_v22  ;;  %v3659_v45 = vpop.f32.mrf.mxu3 }
 0x8ed   : > { %v3706_v11 = vpop.f32.mrf.mxu0  ;;  %v3660_v42 = vadd.f32 %v3659_v45, %v3608_v25  ;;  %v3795_v25 = vld [vmem:[%s8439_s13 + $0x90] sm:$0xff] }
 0x8ee   : > { %v7626_v17 = vmax.f32 %v3716_v33, 0.0  ;;  %v3707_v59 = vadd.f32 %v3706_v11, %v3642_v35  ;;  %v3782_v33 = vld [vmem:[%s8439_s13 + $0x28] sm:$0xff]  ;;  %v3785_v11 = vld [vmem:[%s8439_s13 + $0x40] sm:$0xff] }
 0x8f0   : > { %3767 = vst.msk [vmem:[%s7581_s19 + $0x30] sm:$0xff] %vm631_vm4, %v7626_v17  ;;  %v7631_v14 = vmax.f32 %v3707_v59, 0.0  ;;  %v3787_v59 = vld [vmem:[%s8439_s13 + $0x50] sm:$0xff] }
 0x8f2   : > { %3764 = vst.msk [vmem:[%s7581_s19 + $0x18] sm:$0xff] %vm631_vm4, %v7631_v14 }
 0x8f3   : > { %v3718_v53 = vpop.f32.mrf.mxu2 }
 0x8f4   : > { %v3719_v48 = vadd.f32 %v3718_v53, %v3654_v39  ;;  %v3662_v47 = vpop.f32.mrf.mxu3  ;;  %v3788_v39 = vld [vmem:[%s8439_s13 + $0x58] sm:$0xff]  ;;  %v3790_v53 = vld [vmem:[%s8439_s13 + $0x68] sm:$0xff] }
 0x8f5   : > { %v3663_v54 = vadd.f32 %v3662_v47, %v3609_v29  ;;  %v3798_v29 = vld [vmem:[%s8439_s13 + $0xa8] sm:$0xff] }
 0x8f6   : > { %v7639_v5 = vmax.f32 %v3719_v48, 0.0  ;;  %v3791_v48 = vld [vmem:[%s8439_s13 + $0x70] sm:$0xff] }
 0x8f8   : > { %3768 = vst.msk [vmem:[%s7581_s19 + $0x38] sm:$0xff] %vm631_vm4, %v7639_v5 }
 0x8fb   : > { %v3721_v16 = vpop.f32.mrf.mxu2 }
 0x8fc   : > { %v3722_v20 = vadd.f32 %v3721_v16, %v3657_v37  ;;  %v3665_v23 = vpop.f32.mrf.mxu3  ;;  %v3794_v16 = vld [vmem:[%s8439_s13 + $0x88] sm:$0xff] }
 0x8fd   : > { %v3666_v38 = vadd.f32 %v3665_v23, %v3610_v0  ;;  %v3801_v0 = vld [vmem:[%s8439_s13 + $0xc0] sm:$0xff] }
 0x8fe   : > { %v7647_v15 = vmax.f32 %v3722_v20, 0.0 }
 0x900   : > { %3769 = vst.msk [vmem:[%s7581_s19 + $0x40] sm:$0xff] %vm631_vm4, %v7647_v15 }
 0x903   : > { %v3724_v12 = vpop.f32.mrf.mxu2 }
 0x904   : > { %v3725_v19 = vadd.f32 %v3724_v12, %v3660_v42  ;;  %v3668_v36 = vpop.f32.mrf.mxu3  ;;  %v3797_v12 = vld [vmem:[%s8439_s13 + $0xa0] sm:$0xff] }
 0x905   : > { %v3669_v1 = vadd.f32 %v3668_v36, %v3611_v41  ;;  %v3804_v41 = vld [vmem:[%s8439_s13 + $0xd8] sm:$0xff] }
 0x906   : > { %v3754_v9 = vmax.f32 %v3725_v19, 0.0 }
 0x908   : > { %3770 = vst.msk [vmem:[%s7581_s19 + $0x48] sm:$0xff] %vm631_vm4, %v3754_v9 }
 0x90b   : > { %v3727_v3 = vpop.f32.mrf.mxu2 }
 0x90c   : > { %v3728_v13 = vadd.f32 %v3727_v3, %v3663_v54  ;;  %v3671_v57 = vpop.f32.mrf.mxu3  ;;  %v3800_v3 = vld [vmem:[%s8439_s13 + $0xb8] sm:$0xff] }
 0x90d   : > { %v3672_v58 = vadd.f32 %v3671_v57, %v3612_v4  ;;  %v3807_v4 = vld [vmem:[%s8439_s13 + $0xf0] sm:$0xff] }
 0x90e   : > { %v3755_v63 = vmax.f32 %v3728_v13, 0.0  ;;  %v3887_v57 = vld [vmem:[%s8440_s14 + $0x70] sm:$0xff] }
 0x910   : > { %3771 = vst.msk [vmem:[%s7581_s19 + $0x50] sm:$0xff] %vm631_vm4, %v3755_v63 }
 0x913   : > { %v3730_v31 = vpop.f32.mrf.mxu2 }
 0x914   : > { %v3731_v18 = vadd.f32 %v3730_v31, %v3666_v38  ;;  %v3674_v55 = vpop.f32.mrf.mxu3  ;;  %v3803_v31 = vld [vmem:[%s8439_s13 + $0xd0] sm:$0xff] }
 0x915   : > { %v3675_v7 = vadd.f32 %v3674_v55, %v3613_v6 }
 0x916   : > { %v3756_v50 = vmax.f32 %v3731_v18, 0.0 }
 0x918   : > { %3772 = vst.msk [vmem:[%s7581_s19 + $0x58] sm:$0xff] %vm631_vm4, %v3756_v50 }
 0x91b   : > { %v3733_v62 = vpop.f32.mrf.mxu2 }
 0x91c   : > { %v3734_v30 = vadd.f32 %v3733_v62, %v3669_v1  ;;  %v3677_v60 = vpop.f32.mrf.mxu3  ;;  %v3806_v62 = vld [vmem:[%s8439_s13 + $0xe8] sm:$0xff] }
 0x91d   : > { %v3678_v22 = vadd.f32 %v3677_v60, %v3614_v51 }
 0x91e   : > { %v3757_v61 = vmax.f32 %v3734_v30, 0.0 }
 0x920   : > { %3773 = vst.msk [vmem:[%s7581_s19 + $0x60] sm:$0xff] %vm631_vm4, %v3757_v61 }
 0x923   : > { %v3736_v43 = vpop.f32.mrf.mxu2 }
 0x924   : > { %v3737_v27 = vadd.f32 %v3736_v43, %v3672_v58  ;;  %v3886_v58 = vld [vmem:[%s8440_s14 + $0x68] sm:$0xff] }
 0x926   : > { %v3758_v34 = vmax.f32 %v3737_v27, 0.0  ;;  %v3808_v27 = vld [vmem:[%s8439_s13 + $0xf8] sm:$0xff] }
 0x928   : > { %3774 = vst.msk [vmem:[%s7581_s19 + $0x68] sm:$0xff] %vm631_vm4, %v3758_v34 }
 0x92b   : > { %v3739_v26 = vpop.f32.mrf.mxu2 }
 0x92c   : > { %v3740_v28 = vadd.f32 %v3739_v26, %v3675_v7 }
 0x92e   : > { %v3759_v32 = vmax.f32 %v3740_v28, 0.0  ;;  %v3884_v28 = vld [vmem:[%s8440_s14 + $0x58] sm:$0xff] }
 0x930   : > { %3775 = vst.msk [vmem:[%s7581_s19 + $0x70] sm:$0xff] %vm631_vm4, %v3759_v32 }
 0x933   : > { %v3742_v24 = vpop.f32.mrf.mxu2 }
 0x934   : > { %v3743_v44 = vadd.f32 %v3742_v24, %v3678_v22 }
 0x936   : > { %v3760_v35 = vmax.f32 %v3743_v44, 0.0  ;;  %v3882_v44 = vld [vmem:[%s8440_s14 + $0x48] sm:$0xff] }
 0x938   : > { %3776 = vst.msk [vmem:[%s7581_s19 + $0x78] sm:$0xff] %vm631_vm4, %v3760_v35  ;;  %3969 = vmatpush.msra.mxu1 %v3760_v35  ;;  %4746 = vmatpush.msrb.mxu2 %v3760_v35  ;;  %s4650_s19 = sshll.u32 %s8476_s27, 3 }
 0x939   : > { %s621_s29 = scalar_lea.vmem %s8443_s17, %s4650_s19 }
 0x93a   : > { %3970 = vmatpush.msra.mxu1 %v3759_v32  ;;  %4747 = vmatpush.msrb.mxu2 %v3759_v32  ;;  %v3883_v32 = vld [vmem:[%s8440_s14 + $0x50] sm:$0xff] }
 0x93c   : > { %3971 = vmatpush.msra.mxu1 %v3758_v34  ;;  %4748 = vmatpush.msrb.mxu2 %v3758_v34  ;;  %v3885_v34 = vld [vmem:[%s8440_s14 + $0x60] sm:$0xff] }
 0x93e   : > { %3972 = vmatpush.msra.mxu1 %v3757_v61  ;;  %4749 = vmatpush.msrb.mxu2 %v3757_v61  ;;  %v3888_v61 = vld [vmem:[%s8440_s14 + $0x78] sm:$0xff] }
 0x940   : > { %3973 = vmatpush.msra.mxu1 %v3756_v50  ;;  %4750 = vmatpush.msrb.mxu2 %v3756_v50  ;;  %v3805_v50 = vld [vmem:[%s8439_s13 + $0xe0] sm:$0xff] }
 0x942   : > { %3974 = vmatpush.msra.mxu1 %v3755_v63  ;;  %4751 = vmatpush.msrb.mxu2 %v3755_v63  ;;  %v3802_v63 = vld [vmem:[%s8439_s13 + $0xc8] sm:$0xff] }
 0x944   : > { %3975 = vmatpush.msra.mxu1 %v3754_v9  ;;  %4752 = vmatpush.msrb.mxu2 %v3754_v9  ;;  %v3799_v9 = vld [vmem:[%s8439_s13 + $0xb0] sm:$0xff] }
 0x946   : > { %3976 = vmatpush.msra.mxu1 %v7647_v15  ;;  %4753 = vmatpush.msrb.mxu2 %v7647_v15  ;;  %v3796_v15 = vld [vmem:[%s8439_s13 + $0x98] sm:$0xff] }
 0x948   : > { %3977 = vmatpush.msra.mxu1 %v7639_v5  ;;  %4754 = vmatpush.msrb.mxu2 %v7639_v5  ;;  %v3793_v5 = vld [vmem:[%s8439_s13 + $0x80] sm:$0xff] }
 0x94a   : > { %3978 = vmatpush.msra.mxu1 %v7626_v17  ;;  %4755 = vmatpush.msrb.mxu2 %v7626_v17  ;;  %v3786_v17 = vld [vmem:[%s8439_s13 + $0x48] sm:$0xff] }
 0x94c   : > { %3979 = vmatpush.msra.mxu1 %v7610_v52  ;;  %4756 = vmatpush.msrb.mxu2 %v7610_v52  ;;  %v3777_v52 = vld [vmem:[%s8439_s13] sm:$0xff] }
 0x94e   : > { %3980 = vmatpush.msra.mxu1 %v7594_v46  ;;  %4757 = vmatpush.msrb.mxu2 %v7594_v46  ;;  %v3778_v46 = vld [vmem:[%s8439_s13 + $0x8] sm:$0xff] }
 0x950   : > { %3981 = vmatpush.msra.mxu1 %v7631_v14  ;;  %4758 = vmatpush.msrb.mxu2 %v7631_v14  ;;  %v3789_v14 = vld [vmem:[%s8439_s13 + $0x60] sm:$0xff] }
 0x952   : > { %3982 = vmatpush.msra.mxu1 %v7615_v8  ;;  %4759 = vmatpush.msrb.mxu2 %v7615_v8  ;;  %v3779_v8 = vld [vmem:[%s8439_s13 + $0x10] sm:$0xff] }
 0x954   : > { %3983 = vmatpush.msra.mxu1 %v7599_v21  ;;  %4760 = vmatpush.msrb.mxu2 %v7599_v21  ;;  %v3780_v21 = vld [vmem:[%s8439_s13 + $0x18] sm:$0xff] }
 0x956   : > { %3984 = vmatpush.msra.mxu1 %v7583_v2  ;;  %4761 = vmatpush.msrb.mxu2 %v7583_v2  ;;  %v3781_v2 = vld [vmem:[%s8439_s13 + $0x20] sm:$0xff] }
 0x957   : > { %3985 = vmatmul.f32.vlgmr.msra.gmra.mxu1 %v3777_v52  ;;  %v3809_v52 = vld [vmem:[%s8439_s13 + $0x100] sm:$0xff] }
 0x95f   : > { %3988 = vmatmul.f32.gmra.mxu1 %v3778_v46 }
 0x967   : > { %3991 = vmatmul.f32.gmra.mxu1 %v3779_v8 }
 0x96f   : > { %3994 = vmatmul.f32.gmra.mxu1 %v3780_v21  ;;  %v3881_v21 = vld [vmem:[%s8440_s14 + $0x40] sm:$0xff] }
 0x977   : > { %3997 = vmatmul.f32.gmra.mxu1 %v3781_v2 }
 0x97f   : > { %4000 = vmatmul.f32.gmra.mxu1 %v3782_v33 }
 0x987   : > { %4003 = vmatmul.f32.gmra.mxu1 %v3783_v49  ;;  %v3880_v49 = vld [vmem:[%s8440_s14 + $0x38] sm:$0xff] }
 0x98f   : > { %4006 = vmatmul.f32.gmra.mxu1 %v3784_v40 }
 0x997   : > { %4009 = vmatmul.f32.gmra.mxu1 %v3785_v11 }
 0x99f   : > { %4012 = vmatmul.f32.gmra.mxu1 %v3786_v17  ;;  %v3879_v17 = vld [vmem:[%s8440_s14 + $0x30] sm:$0xff] }
 0x9a7   : > { %4015 = vmatmul.f32.gmra.mxu1 %v3787_v59 }
 0x9af   : > { %4018 = vmatmul.f32.gmra.mxu1 %v3788_v39 }
 0x9b7   : > { %4021 = vmatmul.f32.gmra.mxu1 %v3789_v14  ;;  %v3878_v14 = vld [vmem:[%s8440_s14 + $0x28] sm:$0xff] }
 0x9bf   : > { %4024 = vmatmul.f32.gmra.mxu1 %v3790_v53 }
 0x9c7   : > { %4027 = vmatmul.f32.gmra.mxu1 %v3791_v48  ;;  %v3810_v48 = vld [vmem:[%s8439_s13 + $0x108] sm:$0xff] }
 0x9cf   : > { %4030 = vmatmul.f32.gmra.mxu1 %v3792_v56 }
 0x9d4   : > { %v7750_v10 = vpop.f32.mrf.mxu1 }
 0x9d7   : > { %4033 = vmatmul.f32.gmra.mxu1 %v3793_v5 }
 0x9dc   : > { %v7755_v37 = vpop.f32.mrf.mxu1 }
 0x9df   : > { %4036 = vmatmul.f32.gmra.mxu1 %v3794_v16  ;;  %v3877_v16 = vld [vmem:[%s8440_s14 + $0x20] sm:$0xff] }
 0x9e4   : > { %v7760_v20 = vpop.f32.mrf.mxu1 }
 0x9e7   : > { %4039 = vmatmul.f32.gmra.mxu1 %v3795_v25 }
 0x9ec   : > { %v7765_v45 = vpop.f32.mrf.mxu1 }
 0x9ef   : > { %4042 = vmatmul.f32.gmra.mxu1 %v3796_v15 }
 0x9f4   : > { %v7770_v42 = vpop.f32.mrf.mxu1 }
 0x9f7   : > { %4045 = vmatmul.f32.gmra.mxu1 %v3797_v12  ;;  %v3876_v12 = vld [vmem:[%s8440_s14 + $0x18] sm:$0xff] }
 0x9fc   : > { %v7775_v19 = vpop.f32.mrf.mxu1 }
 0x9fd   : > { %v4002_v25 = vadd.f32 %v7775_v19, %v3878_v14  ;;  %v3874_v19 = vld [vmem:[%s8440_s14 + $0x8] sm:$0xff]  ;;  %v3899_v14 = vld [vmem:[%s8440_s14 + $0xd0] sm:$0xff] }
 0x9ff   : > { %4048 = vmatmul.f32.gmra.mxu1 %v3798_v29  ;;  %v3999_v29 = vadd.f32 %v7770_v42, %v3877_v16  ;;  %v3811_v42 = vld [vmem:[%s8439_s13 + $0x110] sm:$0xff] }
 0xa04   : > { %v7780_v47 = vpop.f32.mrf.mxu1 }
 0xa05   : > { %v4005_v56 = vadd.f32 %v7780_v47, %v3879_v17  ;;  %v3875_v47 = vld [vmem:[%s8440_s14 + $0x10] sm:$0xff]  ;;  %v3900_v17 = vld [vmem:[%s8440_s14 + $0xd8] sm:$0xff] }
 0xa07   : > { %4051 = vmatmul.f32.gmra.mxu1 %v3799_v9  ;;  %v4280_v9 = vmax.f32 %v4005_v56, 0.0 }
 0xa0c   : > { %v4007_v54 = vpop.f32.mrf.mxu1 }
 0xa0d   : > { %v4008_v59 = vadd.f32 %v4007_v54, %v3880_v49  ;;  %v3996_v54 = vadd.f32 %v7765_v45, %v3876_v12  ;;  %v3873_v45 = vld [vmem:[%s8440_s14] sm:$0xff] }
 0xa0e   : > { %v3901_v49 = vld [vmem:[%s8440_s14 + $0xe0] sm:$0xff] }
 0xa0f   : > { %4054 = vmatmul.f32.gmra.mxu1 %v3800_v3  ;;  %v4281_v15 = vmax.f32 %v4008_v59, 0.0  ;;  %v4279_v3 = vmax.f32 %v4002_v25, 0.0  ;;  %v3825_v25 = vld [vmem:[%s8439_s13 + $0x180] sm:$0xff] }
 0xa14   : > { %v4010_v13 = vpop.f32.mrf.mxu1 }
 0xa15   : > { %v4011_v40 = vadd.f32 %v4010_v13, %v3881_v21  ;;  %v3824_v21 = vld [vmem:[%s8439_s13 + $0x178] sm:$0xff] }
 0xa17   : > { %4057 = vmatmul.f32.gmra.mxu1 %v3801_v0  ;;  %v4282_v5 = vmax.f32 %v4011_v40, 0.0  ;;  %v3993_v0 = vadd.f32 %v7760_v20, %v3875_v47  ;;  %v3812_v20 = vld [vmem:[%s8439_s13 + $0x118] sm:$0xff] }
 0xa1c   : > { %v4013_v23 = vpop.f32.mrf.mxu1 }
 0xa1d   : > { %v4014_v2 = vadd.f32 %v4013_v23, %v3882_v44  ;;  %v4278_v23 = vmax.f32 %v3999_v29, 0.0  ;;  %v3903_v44 = vld [vmem:[%s8440_s14 + $0xf0] sm:$0xff]  ;;  %v3897_v29 = vld [vmem:[%s8440_s14 + $0xc0] sm:$0xff] }
 0xa1f   : > { %4060 = vmatmul.f32.gmra.mxu1 %v3802_v63  ;;  %v4283_v39 = vmax.f32 %v4014_v2, 0.0  ;;  %v3990_v63 = vadd.f32 %v7755_v37, %v3874_v19 }
 0xa24   : > { %v4016_v38 = vpop.f32.mrf.mxu1 }
 0xa25   : > { %v4017_v46 = vadd.f32 %v4016_v38, %v3883_v32  ;;  %v4277_v38 = vmax.f32 %v3996_v54, 0.0  ;;  %v3822_v32 = vld [vmem:[%s8439_s13 + $0x168] sm:$0xff]  ;;  %v3896_v54 = vld [vmem:[%s8440_s14 + $0xb8] sm:$0xff] }
 0xa27   : > { %4063 = vmatmul.f32.gmra.mxu1 %v3803_v31  ;;  %v4284_v11 = vmax.f32 %v4017_v46, 0.0  ;;  %v3987_v31 = vadd.f32 %v7750_v10, %v3873_v45  ;;  %v3813_v10 = vld [vmem:[%s8439_s13 + $0x120] sm:$0xff]  ;;  %v3902_v46 = vld [vmem:[%s8440_s14 + $0xe8] sm:$0xff] }
 0xa28   : > { %v3894_v45 = vld [vmem:[%s8440_s14 + $0xa8] sm:$0xff] }
 0xa2c   : > { %v4019_v18 = vpop.f32.mrf.mxu1 }
 0xa2d   : > { %v4020_v22 = vadd.f32 %v4019_v18, %v3884_v28  ;;  %v4276_v18 = vmax.f32 %v3993_v0, 0.0 }
 0xa2f   : > { %4066 = vmatmul.f32.gmra.mxu1 %v3804_v41  ;;  %v4285_v33 = vmax.f32 %v4020_v22, 0.0  ;;  %v4275_v41 = vmax.f32 %v3990_v63, 0.0 }
 0xa34   : > { %v4022_v36 = vpop.f32.mrf.mxu1 }
 0xa35   : > { %v4023_v51 = vadd.f32 %v4022_v36, %v3885_v34  ;;  %v3819_v34 = vld [vmem:[%s8439_s13 + $0x150] sm:$0xff] }
 0xa37   : > { %4069 = vmatmul.f32.gmra.mxu1 %v3805_v50  ;;  %v4286_v8 = vmax.f32 %v4023_v51, 0.0  ;;  %v4274_v50 = vmax.f32 %v3987_v31, 0.0  ;;  %v3821_v51 = vld [vmem:[%s8439_s13 + $0x160] sm:$0xff] }
 0xa3c   : > { %v4025_v1 = vpop.f32.mrf.mxu1 }
 0xa3d   : > { %v4026_v7 = vadd.f32 %v4025_v1, %v3886_v58 }
 0xa3f   : > { %4072 = vmatmul.f32.gmra.mxu1 %v3806_v62  ;;  %v4287_v24 = vmax.f32 %v4026_v7, 0.0  ;;  %v3814_v62 = vld [vmem:[%s8439_s13 + $0x128] sm:$0xff] }
 0xa44   : > { %v4028_v30 = vpop.f32.mrf.mxu1 }
 0xa45   : > { %v4029_v6 = vadd.f32 %v4028_v30, %v3887_v57 }
 0xa47   : > { %4075 = vmatmul.f32.gmra.mxu1 %v3807_v4  ;;  %v4288_v60 = vmax.f32 %v4029_v6, 0.0  ;;  %v3815_v4 = vld [vmem:[%s8439_s13 + $0x130] sm:$0xff]  ;;  %v3818_v6 = vld [vmem:[%s8439_s13 + $0x148] sm:$0xff] }
 0xa4c   : > { %v4031_v43 = vpop.f32.mrf.mxu1 }
 0xa4d   : > { %v4032_v55 = vadd.f32 %v4031_v43, %v3888_v61  ;;  %v3816_v61 = vld [vmem:[%s8439_s13 + $0x138] sm:$0xff]  ;;  %v3817_v43 = vld [vmem:[%s8439_s13 + $0x140] sm:$0xff] }
 0xa4f   : > { %v4289_v26 = vmax.f32 %v4032_v55, 0.0  ;;  %4078 = vmatmul.f32.gmra.mxu1 %v3808_v27 }
 0xa51   : > { %4376 = vmatpush.msra.mxu3 %v4289_v26  ;;  %v3820_v26 = vld [vmem:[%s8439_s13 + $0x158] sm:$0xff] }
 0xa53   : > { %4377 = vmatpush.msra.mxu3 %v4288_v60 }
 0xa54   : > { %v7833_v35 = vpop.f32.mrf.mxu1 }
 0xa55   : > { %4378 = vmatpush.msra.mxu3 %v4287_v24  ;;  %v3823_v24 = vld [vmem:[%s8439_s13 + $0x170] sm:$0xff] }
 0xa57   : > { %4081 = vmatmul.f32.gmra.mxu1 %v3809_v52  ;;  %4379 = vmatpush.msra.mxu3 %v4286_v8  ;;  %v3904_v52 = vld [vmem:[%s8440_s14 + $0xf8] sm:$0xff] }
 0xa59   : > { %4380 = vmatpush.msra.mxu3 %v4285_v33 }
 0xa5b   : > { %4381 = vmatpush.msra.mxu3 %v4284_v11 }
 0xa5c   : > { %v7850_v53 = vpop.f32.mrf.mxu1 }
 0xa5d   : > { %4382 = vmatpush.msra.mxu3 %v4283_v39 }
 0xa5f   : > { %4084 = vmatmul.f32.gmra.mxu1 %v3810_v48  ;;  %4383 = vmatpush.msra.mxu3 %v4282_v5  ;;  %v3898_v5 = vld [vmem:[%s8440_s14 + $0xc8] sm:$0xff] }
 0xa61   : > { %4384 = vmatpush.msra.mxu3 %v4281_v15 }
 0xa63   : > { %4385 = vmatpush.msra.mxu3 %v4280_v9 }
 0xa64   : > { %v7871_v13 = vpop.f32.mrf.mxu1 }
 0xa65   : > { %4386 = vmatpush.msra.mxu3 %v4279_v3 }
 0xa67   : > { %4087 = vmatmul.f32.gmra.mxu1 %v3811_v42  ;;  %4387 = vmatpush.msra.mxu3 %v4278_v23  ;;  %v3895_v42 = vld [vmem:[%s8440_s14 + $0xb0] sm:$0xff] }
 0xa69   : > { %4388 = vmatpush.msra.mxu3 %v4277_v38  ;;  %v3826_v38 = vld [vmem:[%s8439_s13 + $0x188] sm:$0xff] }
 0xa6b   : > { %4389 = vmatpush.msra.mxu3 %v4276_v18 }
 0xa6c   : > { %v7882_v36 = vpop.f32.mrf.mxu1 }
 0xa6d   : > { %4390 = vmatpush.msra.mxu3 %v4275_v41  ;;  %v3893_v41 = vld [vmem:[%s8440_s14 + $0xa0] sm:$0xff] }
 0xa6f   : > { %4090 = vmatmul.f32.gmra.mxu1 %v3812_v20  ;;  %4391 = vmatpush.msra.mxu3 %v4274_v50 }
 0xa74   : > { %v7887_v37 = vpop.f32.mrf.mxu1 }
 0xa77   : > { %4093 = vmatmul.f32.gmra.mxu1 %v3813_v10  ;;  %v3892_v10 = vld [vmem:[%s8440_s14 + $0x98] sm:$0xff] }
 0xa7c   : > { %v7892_v1 = vpop.f32.mrf.mxu1 }
 0xa7d   : > { %v4050_v20 = vadd.f32 %v7892_v1, %v3894_v45  ;;  %v3890_v1 = vld [vmem:[%s8440_s14 + $0x88] sm:$0xff]  ;;  %v3915_v45 = vld [vmem:[%s8440_s14 + $0x150] sm:$0xff] }
 0xa7f   : > { %4096 = vmatmul.f32.gmra.mxu1 %v3814_v62  ;;  %v4047_v62 = vadd.f32 %v7887_v37, %v3893_v41  ;;  %v3827_v37 = vld [vmem:[%s8439_s13 + $0x190] sm:$0xff] }
 0xa84   : > { %v7897_v30 = vpop.f32.mrf.mxu1 }
 0xa85   : > { %v4053_v31 = vadd.f32 %v7897_v30, %v3895_v42  ;;  %v3891_v30 = vld [vmem:[%s8440_s14 + $0x90] sm:$0xff]  ;;  %v3916_v42 = vld [vmem:[%s8440_s14 + $0x158] sm:$0xff] }
 0xa87   : > { %4099 = vmatmul.f32.gmra.mxu1 %v3815_v4  ;;  %v4296_v4 = vmax.f32 %v4053_v31, 0.0 }
 0xa8c   : > { %v4055_v57 = vpop.f32.mrf.mxu1 }
 0xa8d   : > { %v4056_v0 = vadd.f32 %v4055_v57, %v3896_v54  ;;  %v4044_v57 = vadd.f32 %v7882_v36, %v3892_v10  ;;  %v3889_v36 = vld [vmem:[%s8440_s14 + $0x80] sm:$0xff] }
 0xa8e   : > { %v3917_v54 = vld [vmem:[%s8440_s14 + $0x160] sm:$0xff] }
 0xa8f   : > { %4102 = vmatmul.f32.gmra.mxu1 %v3816_v61  ;;  %v4297_v50 = vmax.f32 %v4056_v0, 0.0  ;;  %v4295_v61 = vmax.f32 %v4050_v20, 0.0  ;;  %v3841_v20 = vld [vmem:[%s8439_s13 + $0x200] sm:$0xff] }
 0xa94   : > { %v4058_v58 = vpop.f32.mrf.mxu1 }
 0xa95   : > { %v4059_v3 = vadd.f32 %v4058_v58, %v3897_v29  ;;  %v3840_v29 = vld [vmem:[%s8439_s13 + $0x1f8] sm:$0xff] }
 0xa97   : > { %4105 = vmatmul.f32.gmra.mxu1 %v3817_v43  ;;  %v4298_v18 = vmax.f32 %v4059_v3, 0.0  ;;  %v4041_v43 = vadd.f32 %v7871_v13, %v3891_v30  ;;  %v3828_v13 = vld [vmem:[%s8439_s13 + $0x198] sm:$0xff] }
 0xa9c   : > { %v4061_v27 = vpop.f32.mrf.mxu1 }
 0xa9d   : > { %v4062_v9 = vadd.f32 %v4061_v27, %v3898_v5  ;;  %v4294_v27 = vmax.f32 %v4047_v62, 0.0  ;;  %v3919_v5 = vld [vmem:[%s8440_s14 + $0x170] sm:$0xff]  ;;  %v3913_v62 = vld [vmem:[%s8440_s14 + $0x140] sm:$0xff] }
 0xa9f   : > { %4108 = vmatmul.f32.gmra.mxu1 %v3818_v6  ;;  %v4299_v23 = vmax.f32 %v4062_v9, 0.0  ;;  %v4038_v6 = vadd.f32 %v7850_v53, %v3890_v1 }
 0xaa4   : > { %v4064_v55 = vpop.f32.mrf.mxu1 }
 0xaa5   : > { %v4065_v15 = vadd.f32 %v4064_v55, %v3899_v14  ;;  %v4293_v55 = vmax.f32 %v4044_v57, 0.0  ;;  %v3838_v14 = vld [vmem:[%s8439_s13 + $0x1e8] sm:$0xff]  ;;  %v3912_v57 = vld [vmem:[%s8440_s14 + $0x138] sm:$0xff] }
 0xaa7   : > { %4111 = vmatmul.f32.gmra.mxu1 %v3819_v34  ;;  %v4300_v19 = vmax.f32 %v4065_v15, 0.0  ;;  %v4035_v34 = vadd.f32 %v7833_v35, %v3889_v36  ;;  %v3829_v35 = vld [vmem:[%s8439_s13 + $0x1a0] sm:$0xff]  ;;  %v3918_v15 = vld [vmem:[%s8440_s14 + $0x168] sm:$0xff] }
 0xaa8   : > { %v3910_v36 = vld [vmem:[%s8440_s14 + $0x128] sm:$0xff] }
 0xaac   : > { %v4067_v7 = vpop.f32.mrf.mxu1 }
 0xaad   : > { %v4068_v48 = vadd.f32 %v4067_v7, %v3900_v17  ;;  %v4292_v7 = vmax.f32 %v4041_v43, 0.0 }
 0xaaf   : > { %4114 = vmatmul.f32.gmra.mxu1 %v3820_v26  ;;  %v4301_v47 = vmax.f32 %v4068_v48, 0.0  ;;  %v4291_v26 = vmax.f32 %v4038_v6, 0.0 }
 0xab4   : > { %v4070_v28 = vpop.f32.mrf.mxu1 }
 0xab5   : > { %v4071_v59 = vadd.f32 %v4070_v28, %v3901_v49  ;;  %v3835_v49 = vld [vmem:[%s8439_s13 + $0x1d0] sm:$0xff] }
 0xab7   : > { %4117 = vmatmul.f32.gmra.mxu1 %v3821_v51  ;;  %v4302_v12 = vmax.f32 %v4071_v59, 0.0  ;;  %v4290_v51 = vmax.f32 %v4035_v34, 0.0  ;;  %v3837_v59 = vld [vmem:[%s8439_s13 + $0x1e0] sm:$0xff] }
 0xabc   : > { %v4073_v60 = vpop.f32.mrf.mxu1 }
 0xabd   : > { %v4074_v40 = vadd.f32 %v4073_v60, %v3902_v46 }
 0xabf   : > { %4120 = vmatmul.f32.gmra.mxu1 %v3822_v32  ;;  %v4303_v56 = vmax.f32 %v4074_v40, 0.0  ;;  %v3830_v32 = vld [vmem:[%s8439_s13 + $0x1a8] sm:$0xff] }
 0xac4   : > { %v4076_v22 = vpop.f32.mrf.mxu1 }
 0xac5   : > { %v4077_v2 = vadd.f32 %v4076_v22, %v3903_v44 }
 0xac7   : > { %4123 = vmatmul.f32.gmra.mxu1 %v3823_v24  ;;  %v4304_v39 = vmax.f32 %v4077_v2, 0.0  ;;  %v3831_v24 = vld [vmem:[%s8439_s13 + $0x1b0] sm:$0xff]  ;;  %v3834_v2 = vld [vmem:[%s8439_s13 + $0x1c8] sm:$0xff] }
 0xacc   : > { %v4079_v8 = vpop.f32.mrf.mxu1 }
 0xacd   : > { %v4080_v33 = vadd.f32 %v4079_v8, %v3904_v52  ;;  %v3832_v52 = vld [vmem:[%s8439_s13 + $0x1b8] sm:$0xff]  ;;  %v3833_v8 = vld [vmem:[%s8439_s13 + $0x1c0] sm:$0xff] }
 0xacf   : > { %v4305_v11 = vmax.f32 %v4080_v33, 0.0  ;;  %4126 = vmatmul.f32.gmra.mxu1 %v3824_v21 }
 0xad1   : > { %4396 = vmatpush.msrb.mxu3 %v4305_v11  ;;  %v3836_v11 = vld [vmem:[%s8439_s13 + $0x1d8] sm:$0xff] }
 0xad3   : > { %4397 = vmatpush.msrb.mxu3 %v4304_v39 }
 0xad4   : > { %v7950_v16 = vpop.f32.mrf.mxu1 }
 0xad5   : > { %4398 = vmatpush.msrb.mxu3 %v4303_v56  ;;  %v3839_v56 = vld [vmem:[%s8439_s13 + $0x1f0] sm:$0xff] }
 0xad7   : > { %4129 = vmatmul.f32.gmra.mxu1 %v3825_v25  ;;  %4399 = vmatpush.msrb.mxu3 %v4302_v12  ;;  %v3920_v25 = vld [vmem:[%s8440_s14 + $0x178] sm:$0xff] }
 0xad9   : > { %4400 = vmatpush.msrb.mxu3 %v4301_v47 }
 0xadb   : > { %4401 = vmatpush.msrb.mxu3 %v4300_v19 }
 0xadc   : > { %v7967_v63 = vpop.f32.mrf.mxu1 }
 0xadd   : > { %4402 = vmatpush.msrb.mxu3 %v4299_v23 }
 0xadf   : > { %4132 = vmatmul.f32.gmra.mxu1 %v3826_v38  ;;  %4403 = vmatpush.msrb.mxu3 %v4298_v18  ;;  %v3914_v18 = vld [vmem:[%s8440_s14 + $0x148] sm:$0xff] }
 0xae1   : > { %4404 = vmatpush.msrb.mxu3 %v4297_v50 }
 0xae3   : > { %4405 = vmatpush.msrb.mxu3 %v4296_v4 }
 0xae4   : > { %v7988_v58 = vpop.f32.mrf.mxu1 }
 0xae5   : > { %4406 = vmatpush.msrb.mxu3 %v4295_v61 }
 0xae7   : > { %4135 = vmatmul.f32.gmra.mxu1 %v3827_v37  ;;  %4407 = vmatpush.msrb.mxu3 %v4294_v27  ;;  %v3911_v37 = vld [vmem:[%s8440_s14 + $0x130] sm:$0xff] }
 0xae9   : > { %4408 = vmatpush.msrb.mxu3 %v4293_v55  ;;  %v3842_v55 = vld [vmem:[%s8439_s13 + $0x208] sm:$0xff] }
 0xaeb   : > { %4409 = vmatpush.msrb.mxu3 %v4292_v7 }
 0xaec   : > { %v7999_v28 = vpop.f32.mrf.mxu1 }
 0xaed   : > { %4410 = vmatpush.msrb.mxu3 %v4291_v26  ;;  %v3909_v26 = vld [vmem:[%s8440_s14 + $0x120] sm:$0xff] }
 0xaef   : > { %4138 = vmatmul.f32.gmra.mxu1 %v3828_v13  ;;  %4411 = vmatpush.msrb.mxu3 %v4290_v51 }
 0xaf4   : > { %v8004_v53 = vpop.f32.mrf.mxu1 }
 0xaf7   : > { %4141 = vmatmul.f32.gmra.mxu1 %v3829_v35  ;;  %v3908_v35 = vld [vmem:[%s8440_s14 + $0x118] sm:$0xff] }
 0xafc   : > { %v8009_v60 = vpop.f32.mrf.mxu1 }
 0xafd   : > { %v4098_v13 = vadd.f32 %v8009_v60, %v3910_v36  ;;  %v3906_v60 = vld [vmem:[%s8440_s14 + $0x108] sm:$0xff] }
 0xaff   : > { %4144 = vmatmul.f32.gmra.mxu1 %v3830_v32  ;;  %v4095_v32 = vadd.f32 %v8004_v53, %v3909_v26  ;;  %v3843_v53 = vld [vmem:[%s8439_s13 + $0x210] sm:$0xff]  ;;  %v3930_v26 = vld [vmem:[%s8440_s14 + $0x1c8] sm:$0xff] }
 0xb04   : > { %v8014_v22 = vpop.f32.mrf.mxu1 }
 0xb05   : > { %v4101_v34 = vadd.f32 %v8014_v22, %v3911_v37  ;;  %v3907_v22 = vld [vmem:[%s8440_s14 + $0x110] sm:$0xff] }
 0xb07   : > { %4147 = vmatmul.f32.gmra.mxu1 %v3831_v24  ;;  %v4312_v24 = vmax.f32 %v4101_v34, 0.0 }
 0xb0c   : > { %v4103_v44 = vpop.f32.mrf.mxu1 }
 0xb0d   : > { %v4104_v43 = vadd.f32 %v4103_v44, %v3912_v57  ;;  %v4092_v44 = vadd.f32 %v7999_v28, %v3908_v35  ;;  %v3905_v28 = vld [vmem:[%s8440_s14 + $0x100] sm:$0xff] }
 0xb0f   : > { %4150 = vmatmul.f32.gmra.mxu1 %v3832_v52  ;;  %v4313_v51 = vmax.f32 %v4104_v43, 0.0  ;;  %v4311_v52 = vmax.f32 %v4098_v13, 0.0  ;;  %v3932_v43 = vld [vmem:[%s8440_s14 + $0x1d8] sm:$0xff] }
 0xb14   : > { %v4106_v46 = vpop.f32.mrf.mxu1 }
 0xb15   : > { %v4107_v61 = vadd.f32 %v4106_v46, %v3913_v62 }
 0xb17   : > { %4153 = vmatmul.f32.gmra.mxu1 %v3833_v8  ;;  %v4314_v7 = vmax.f32 %v4107_v61, 0.0  ;;  %v4089_v8 = vadd.f32 %v7988_v58, %v3907_v22  ;;  %v3844_v58 = vld [vmem:[%s8439_s13 + $0x218] sm:$0xff]  ;;  %v3933_v61 = vld [vmem:[%s8440_s14 + $0x1e0] sm:$0xff] }
 0xb1c   : > { %v4109_v21 = vpop.f32.mrf.mxu1 }
 0xb1d   : > { %v4110_v4 = vadd.f32 %v4109_v21, %v3914_v18  ;;  %v4310_v21 = vmax.f32 %v4095_v32, 0.0  ;;  %v3855_v18 = vld [vmem:[%s8439_s13 + $0x270] sm:$0xff] }
 0xb1f   : > { %4156 = vmatmul.f32.gmra.mxu1 %v3834_v2  ;;  %v4315_v27 = vmax.f32 %v4110_v4, 0.0  ;;  %v4086_v2 = vadd.f32 %v7967_v63, %v3906_v60  ;;  %v3856_v4 = vld [vmem:[%s8439_s13 + $0x278] sm:$0xff] }
 0xb24   : > { %v4112_v33 = vpop.f32.mrf.mxu1 }
 0xb25   : > { %v4113_v50 = vadd.f32 %v4112_v33, %v3915_v45  ;;  %v4309_v33 = vmax.f32 %v4092_v44, 0.0 }
 0xb27   : > { %4159 = vmatmul.f32.gmra.mxu1 %v3835_v49  ;;  %v4316_v1 = vmax.f32 %v4113_v50, 0.0  ;;  %v4083_v49 = vadd.f32 %v7950_v16, %v3905_v28  ;;  %v3845_v16 = vld [vmem:[%s8439_s13 + $0x220] sm:$0xff]  ;;  %v3936_v50 = vld [vmem:[%s8440_s14 + $0x1f8] sm:$0xff] }
 0xb2c   : > { %v4115_v40 = vpop.f32.mrf.mxu1 }
 0xb2d   : > { %v4116_v38 = vadd.f32 %v4115_v40, %v3916_v42  ;;  %v4308_v40 = vmax.f32 %v4089_v8, 0.0  ;;  %v4370_v42 = vld [vmem:[%s8441_s15] sm:$0x7f]  ;;  %v3927_v8 = vld [vmem:[%s8440_s14 + $0x1b0] sm:$0xff] }
 0xb2e   : > { %4392 = vmatmul.f32.vlgmr.msra.gmra.mxu3 %v4370_v42 }
 0xb2f   : > { %4162 = vmatmul.f32.gmra.mxu1 %v3836_v11  ;;  %v4317_v30 = vmax.f32 %v4116_v38, 0.0  ;;  %v4307_v11 = vmax.f32 %v4086_v2, 0.0  ;;  %v3854_v38 = vld [vmem:[%s8439_s13 + $0x268] sm:$0xff] }
 0xb30   : > { %v3926_v2 = vld [vmem:[%s8440_s14 + $0x1a8] sm:$0xff] }
 0xb34   : > { %v4118_v17 = vpop.f32.mrf.mxu1 }
 0xb35   : > { %v4119_v0 = vadd.f32 %v4118_v17, %v3917_v54  ;;  %v3851_v54 = vld [vmem:[%s8439_s13 + $0x250] sm:$0xff] }
 0xb37   : > { %4165 = vmatmul.f32.gmra.mxu1 %v3837_v59  ;;  %v4318_v10 = vmax.f32 %v4119_v0, 0.0  ;;  %v4306_v59 = vmax.f32 %v4083_v49, 0.0  ;;  %v3858_v49 = vld [vmem:[%s8439_s13 + $0x288] sm:$0xff] }
 0xb3c   : > { %v4121_v39 = vpop.f32.mrf.mxu1 }
 0xb3d   : > { %v4122_v3 = vadd.f32 %v4121_v39, %v3918_v15 }
 0xb3f   : > { %4168 = vmatmul.f32.gmra.mxu1 %v3838_v14  ;;  %v4319_v31 = vmax.f32 %v4122_v3, 0.0  ;;  %v3846_v14 = vld [vmem:[%s8439_s13 + $0x228] sm:$0xff] }
 0xb44   : > { %v4124_v48 = vpop.f32.mrf.mxu1 }
 0xb45   : > { %v4125_v9 = vadd.f32 %v4124_v48, %v3919_v5 }
 0xb47   : > { %4171 = vmatmul.f32.gmra.mxu1 %v3839_v56  ;;  %v4320_v23 = vmax.f32 %v4125_v9, 0.0  ;;  %v3847_v56 = vld [vmem:[%s8439_s13 + $0x230] sm:$0xff]  ;;  %v3850_v9 = vld [vmem:[%s8439_s13 + $0x248] sm:$0xff] }
 0xb4c   : > { %v4127_v12 = vpop.f32.mrf.mxu1 }
 0xb4d   : > { %v4128_v47 = vadd.f32 %v4127_v12, %v3920_v25  ;;  %v3848_v25 = vld [vmem:[%s8439_s13 + $0x238] sm:$0xff]  ;;  %v3849_v12 = vld [vmem:[%s8439_s13 + $0x240] sm:$0xff] }
 0xb4f   : > { %v4321_v19 = vmax.f32 %v4128_v47, 0.0  ;;  %4174 = vmatmul.f32.gmra.mxu1 %v3840_v29 }
 0xb51   : > { %4416 = vmatpush.msra.mxu0 %v4321_v19  ;;  %v3852_v19 = vld [vmem:[%s8439_s13 + $0x258] sm:$0xff] }
 0xb53   : > { %4417 = vmatpush.msra.mxu0 %v4320_v23  ;;  %v3853_v23 = vld [vmem:[%s8439_s13 + $0x260] sm:$0xff] }
 0xb54   : > { %v8067_v41 = vpop.f32.mrf.mxu1 }
 0xb55   : > { %4418 = vmatpush.msra.mxu0 %v4319_v31 }
 0xb57   : > { %4177 = vmatmul.f32.gmra.mxu1 %v3841_v20  ;;  %4419 = vmatpush.msra.mxu0 %v4318_v10  ;;  %v3935_v20 = vld [vmem:[%s8440_s14 + $0x1f0] sm:$0xff]  ;;  %v3934_v10 = vld [vmem:[%s8440_s14 + $0x1e8] sm:$0xff] }
 0xb59   : > { %4420 = vmatpush.msra.mxu0 %v4317_v30 }
 0xb5b   : > { %4421 = vmatpush.msra.mxu0 %v4316_v1 }
 0xb5c   : > { %v8084_v6 = vpop.f32.mrf.mxu1 }
 0xb5d   : > { %4422 = vmatpush.msra.mxu0 %v4315_v27 }
 0xb5f   : > { %4180 = vmatmul.f32.gmra.mxu1 %v3842_v55  ;;  %4423 = vmatpush.msra.mxu0 %v4314_v7  ;;  %v3931_v55 = vld [vmem:[%s8440_s14 + $0x1d0] sm:$0xff] }
 0xb61   : > { %4424 = vmatpush.msra.mxu0 %v4313_v51  ;;  %v3857_v51 = vld [vmem:[%s8439_s13 + $0x280] sm:$0xff] }
 0xb63   : > { %4425 = vmatpush.msra.mxu0 %v4312_v24  ;;  %v3929_v24 = vld [vmem:[%s8440_s14 + $0x1c0] sm:$0xff] }
 0xb64   : > { %v8105_v46 = vpop.f32.mrf.mxu1 }
 0xb65   : > { %4426 = vmatpush.msra.mxu0 %v4311_v52  ;;  %v3928_v52 = vld [vmem:[%s8440_s14 + $0x1b8] sm:$0xff] }
 0xb67   : > { %4183 = vmatmul.f32.gmra.mxu1 %v3843_v53  ;;  %4427 = vmatpush.msra.mxu0 %v4310_v21 }
 0xb69   : > { %4428 = vmatpush.msra.mxu0 %v4309_v33 }
 0xb6b   : > { %4429 = vmatpush.msra.mxu0 %v4308_v40 }
 0xb6c   : > { %v8116_v17 = vpop.f32.mrf.mxu1 }
 0xb6d   : > { %4430 = vmatpush.msra.mxu0 %v4307_v11 }
 0xb6f   : > { %4186 = vmatmul.f32.gmra.mxu1 %v3844_v58  ;;  %4431 = vmatpush.msra.mxu0 %v4306_v59  ;;  %v3925_v58 = vld [vmem:[%s8440_s14 + $0x1a0] sm:$0xff] }
 0xb74   : > { %v8121_v63 = vpop.f32.mrf.mxu1 }
 0xb77   : > { %4189 = vmatmul.f32.gmra.mxu1 %v3845_v16 }
 0xb7c   : > { %v8126_v39 = vpop.f32.mrf.mxu1 }
 0xb7d   : > { %v4146_v59 = vadd.f32 %v8126_v39, %v3926_v2  ;;  %v3922_v39 = vld [vmem:[%s8440_s14 + $0x188] sm:$0xff]  ;;  %v3947_v2 = vld [vmem:[%s8440_s14 + $0x250] sm:$0xff] }
 0xb7f   : > { %4192 = vmatmul.f32.gmra.mxu1 %v3846_v14  ;;  %v3924_v14 = vld [vmem:[%s8440_s14 + $0x198] sm:$0xff] }
 0xb84   : > { %v8131_v48 = vpop.f32.mrf.mxu1 }
 0xb85   : > { %v4149_v40 = vadd.f32 %v8131_v48, %v3927_v8  ;;  %v3923_v48 = vld [vmem:[%s8440_s14 + $0x190] sm:$0xff]  ;;  %v3948_v8 = vld [vmem:[%s8440_s14 + $0x258] sm:$0xff] }
 0xb87   : > { %4195 = vmatmul.f32.gmra.mxu1 %v3847_v56  ;;  %v4143_v56 = vadd.f32 %v8121_v63, %v3925_v58  ;;  %v3859_v63 = vld [vmem:[%s8439_s13 + $0x290] sm:$0xff] }
 0xb8c   : > { %v4151_v5 = vpop.f32.mrf.mxu1 }
 0xb8d   : > { %v4152_v21 = vadd.f32 %v4151_v5, %v3928_v52  ;;  %v4328_v5 = vmax.f32 %v4149_v40, 0.0  ;;  %v3949_v52 = vld [vmem:[%s8440_s14 + $0x260] sm:$0xff] }
 0xb8f   : > { %4198 = vmatmul.f32.gmra.mxu1 %v3848_v25  ;;  %v4329_v16 = vmax.f32 %v4152_v21, 0.0  ;;  %v4140_v25 = vadd.f32 %v8116_v17, %v3924_v14  ;;  %v3921_v17 = vld [vmem:[%s8440_s14 + $0x180] sm:$0xff] }
 0xb90   : > { %v3945_v14 = vld [vmem:[%s8440_s14 + $0x240] sm:$0xff] }
 0xb94   : > { %v4154_v15 = vpop.f32.mrf.mxu1 }
 0xb95   : > { %v4155_v60 = vadd.f32 %v4154_v15, %v3929_v24  ;;  %v4327_v15 = vmax.f32 %v4146_v59, 0.0 }
 0xb97   : > { %4201 = vmatmul.f32.gmra.mxu1 %v3849_v12  ;;  %v4330_v11 = vmax.f32 %v4155_v60, 0.0 }
 0xb9c   : > { %v4157_v29 = vpop.f32.mrf.mxu1 }
 0xb9d   : > { %v4158_v22 = vadd.f32 %v4157_v29, %v3930_v26  ;;  %v4137_v29 = vadd.f32 %v8105_v46, %v3923_v48  ;;  %v3860_v46 = vld [vmem:[%s8439_s13 + $0x298] sm:$0xff]  ;;  %v3871_v26 = vld [vmem:[%s8439_s13 + $0x2f0] sm:$0xff] }
 0xb9e   : > { %v3944_v48 = vld [vmem:[%s8440_s14 + $0x238] sm:$0xff] }
 0xb9f   : > { %4204 = vmatmul.f32.gmra.mxu1 %v3850_v9  ;;  %v4331_v28 = vmax.f32 %v4158_v22, 0.0  ;;  %v4326_v9 = vmax.f32 %v4143_v56, 0.0 }
 0xba4   : > { %v4160_v47 = vpop.f32.mrf.mxu1 }
 0xba5   : > { %v4161_v35 = vadd.f32 %v4160_v47, %v3931_v55  ;;  %v4134_v47 = vadd.f32 %v8084_v6, %v3922_v39  ;;  %v3943_v39 = vld [vmem:[%s8440_s14 + $0x230] sm:$0xff] }
 0xba7   : > { %4207 = vmatmul.f32.gmra.mxu1 %v3851_v54  ;;  %v4332_v53 = vmax.f32 %v4161_v35, 0.0  ;;  %v4325_v54 = vmax.f32 %v4140_v25, 0.0  ;;  %v4323_v42 = vmax.f32 %v4134_v47, 0.0  ;;  %v3952_v35 = vld [vmem:[%s8440_s14 + $0x278] sm:$0xff] }
 0xbac   : > { %v4163_v3 = vpop.f32.mrf.mxu1 }
 0xbad   : > { %v4164_v34 = vadd.f32 %v4163_v3, %v3932_v43  ;;  %v4131_v3 = vadd.f32 %v8067_v41, %v3921_v17  ;;  %v3861_v41 = vld [vmem:[%s8439_s13 + $0x2a0] sm:$0xff]  ;;  %v3868_v43 = vld [vmem:[%s8439_s13 + $0x2d8] sm:$0xff] }
 0xbaf   : > { %4210 = vmatmul.f32.gmra.mxu1 %v3852_v19  ;;  %v4333_v44 = vmax.f32 %v4164_v34, 0.0  ;;  %v4324_v19 = vmax.f32 %v4137_v29, 0.0  ;;  %v3870_v34 = vld [vmem:[%s8439_s13 + $0x2e8] sm:$0xff] }
 0xbb4   : > { %v4166_v0 = vpop.f32.mrf.mxu1 }
 0xbb5   : > { %v4167_v27 = vadd.f32 %v4166_v0, %v3933_v61  ;;  %v3867_v61 = vld [vmem:[%s8439_s13 + $0x2d0] sm:$0xff] }
 0xbb7   : > { %4213 = vmatmul.f32.gmra.mxu1 %v3853_v23  ;;  %v4334_v32 = vmax.f32 %v4167_v27, 0.0  ;;  %v4322_v23 = vmax.f32 %v4131_v3, 0.0  ;;  %v3941_v3 = vld [vmem:[%s8440_s14 + $0x220] sm:$0xff] }
 0xbbc   : > { %v4169_v45 = vpop.f32.mrf.mxu1 }
 0xbbd   : > { %v4170_v1 = vadd.f32 %v4169_v45, %v3934_v10 }
 0xbbf   : > { %4216 = vmatmul.f32.gmra.mxu1 %v3854_v38  ;;  %v4335_v7 = vmax.f32 %v4170_v1, 0.0  ;;  %v3862_v38 = vld [vmem:[%s8439_s13 + $0x2a8] sm:$0xff]  ;;  %v3872_v1 = vld [vmem:[%s8439_s13 + $0x2f8] sm:$0xff] }
 0xbc0   : > { %4270 = vmatmul.f32.vlgmr.msrb.gmra.mxu2 %v3872_v1 }
 0xbc4   : > { %v4172_v31 = vpop.f32.mrf.mxu1 }
 0xbc5   : > { %v4173_v30 = vadd.f32 %v4172_v31, %v3935_v20 }
 0xbc7   : > { %4219 = vmatmul.f32.gmra.mxu1 %v3855_v18  ;;  %v4336_v36 = vmax.f32 %v4173_v30, 0.0  ;;  %v3863_v18 = vld [vmem:[%s8439_s13 + $0x2b0] sm:$0xff]  ;;  %v3866_v30 = vld [vmem:[%s8439_s13 + $0x2c8] sm:$0xff] }
 0xbcc   : > { %v4175_v62 = vpop.f32.mrf.mxu1 }
 0xbcd   : > { %v4176_v57 = vadd.f32 %v4175_v62, %v3936_v50  ;;  %v3864_v50 = vld [vmem:[%s8439_s13 + $0x2b8] sm:$0xff]  ;;  %v3865_v62 = vld [vmem:[%s8439_s13 + $0x2c0] sm:$0xff] }
 0xbcf   : > { %v4337_v37 = vmax.f32 %v4176_v57, 0.0  ;;  %4222 = vmatmul.f32.gmra.mxu1 %v3856_v4 }
 0xbd1   : > { %4436 = vmatpush.msra.mxu3 %v4337_v37 }
 0xbd3   : > { %4437 = vmatpush.msra.mxu3 %v4336_v36  ;;  %v3869_v36 = vld [vmem:[%s8439_s13 + $0x2e0] sm:$0xff] }
 0xbd4   : > { %v8187_v13 = vpop.f32.mrf.mxu1 }
 0xbd5   : > { %4438 = vmatpush.msra.mxu3 %v4335_v7 }
 0xbd7   : > { %4439 = vmatpush.msra.mxu3 %v4334_v32  ;;  %4225 = vmatmul.f32.gmra.mxu1 %v3857_v51  ;;  %v3951_v51 = vld [vmem:[%s8440_s14 + $0x270] sm:$0xff]  ;;  %v3950_v32 = vld [vmem:[%s8440_s14 + $0x268] sm:$0xff] }
 0xbd9   : > { %4440 = vmatpush.msra.mxu3 %v4333_v44 }
 0xbdb   : > { %4441 = vmatpush.msra.mxu3 %v4332_v53 }
 0xbdc   : > { %v8204_v33 = vpop.f32.mrf.mxu1 }
 0xbdd   : > { %4442 = vmatpush.msra.mxu3 %v4331_v28 }
 0xbdf   : > { %4443 = vmatpush.msra.mxu3 %v4330_v11  ;;  %4228 = vmatmul.f32.gmra.mxu1 %v3858_v49  ;;  %v3946_v11 = vld [vmem:[%s8440_s14 + $0x248] sm:$0xff] }
 0xbe1   : > { %4444 = vmatpush.msra.mxu3 %v4329_v16 }
 0xbe3   : > { %4445 = vmatpush.msra.mxu3 %v4328_v5 }
 0xbe4   : > { %v8225_v12 = vpop.f32.mrf.mxu1 }
 0xbe5   : > { %4446 = vmatpush.msra.mxu3 %v4327_v15 }
 0xbe7   : > { %4447 = vmatpush.msra.mxu3 %v4326_v9  ;;  %4231 = vmatmul.f32.gmra.mxu1 %v3859_v63  ;;  %v3942_v9 = vld [vmem:[%s8440_s14 + $0x228] sm:$0xff] }
 0xbe9   : > { %4448 = vmatpush.msra.mxu3 %v4325_v54 }
 0xbeb   : > { %4449 = vmatpush.msra.mxu3 %v4324_v19 }
 0xbec   : > { %v8236_v0 = vpop.f32.mrf.mxu1 }
 0xbed   : > { %4450 = vmatpush.msra.mxu3 %v4323_v42 }
 0xbef   : > { %4451 = vmatpush.msra.mxu3 %v4322_v23  ;;  %4234 = vmatmul.f32.gmra.mxu1 %v3860_v46  ;;  %v3940_v46 = vld [vmem:[%s8440_s14 + $0x218] sm:$0xff] }
 0xbf4   : > { %v8241_v6 = vpop.f32.mrf.mxu1 }
 0xbf5   : > { %v4191_v23 = vadd.f32 %v8241_v6, %v3941_v3  ;;  %v3937_v6 = vld [vmem:[%s8440_s14 + $0x200] sm:$0xff] }
 0xbf7   : > { %4237 = vmatmul.f32.gmra.mxu1 %v3861_v41 }
 0xbfc   : > { %v8246_v45 = vpop.f32.mrf.mxu1 }
 0xbfd   : > { %v4194_v19 = vadd.f32 %v8246_v45, %v3942_v9  ;;  %v3938_v45 = vld [vmem:[%s8440_s14 + $0x208] sm:$0xff] }
 0xbff   : > { %4240 = vmatmul.f32.gmra.mxu1 %v3862_v38  ;;  %v3939_v38 = vld [vmem:[%s8440_s14 + $0x210] sm:$0xff] }
 0xc04   : > { %v8251_v31 = vpop.f32.mrf.mxu1 }
 0xc05   : > { %v4197_v47 = vadd.f32 %v8251_v31, %v3943_v39  ;;  %v4188_v31 = vadd.f32 %v8236_v0, %v3940_v46  ;;  %v4179_v0 = vadd.f32 %v8187_v13, %v3937_v6 }
 0xc07   : > { %4243 = vmatmul.f32.gmra.mxu1 %v3863_v18  ;;  %v4344_v41 = vmax.f32 %v4197_v47, 0.0  ;;  %v4343_v18 = vmax.f32 %v4194_v19, 0.0  ;;  %v4338_v1 = vmax.f32 %v4179_v0, 0.0  ;;  %v3959_v47 = vld [vmem:[%s8440_s14 + $0x2b0] sm:$0xff]  ;;  %v3958_v19 = vld [vmem:[%s8440_s14 + $0x2a8] sm:$0xff] }
 0xc0c   : > { %v4199_v20 = vpop.f32.mrf.mxu1 }
 0xc0d   : > { %v4200_v63 = vadd.f32 %v4199_v20, %v3944_v48 }
 0xc0f   : > { %4246 = vmatmul.f32.gmra.mxu1 %v3864_v50  ;;  %v4345_v42 = vmax.f32 %v4200_v63, 0.0  ;;  %v4185_v50 = vadd.f32 %v8225_v12, %v3939_v38  ;;  %v3960_v63 = vld [vmem:[%s8440_s14 + $0x2b8] sm:$0xff] }
 0xc14   : > { %v4202_v10 = vpop.f32.mrf.mxu1 }
 0xc15   : > { %v4203_v25 = vadd.f32 %v4202_v10, %v3945_v14  ;;  %v4342_v10 = vmax.f32 %v4191_v23, 0.0  ;;  %v3957_v23 = vld [vmem:[%s8440_s14 + $0x2a0] sm:$0xff] }
 0xc17   : > { %4249 = vmatmul.f32.gmra.mxu1 %v3865_v62  ;;  %v4346_v54 = vmax.f32 %v4203_v25, 0.0  ;;  %v4182_v62 = vadd.f32 %v8204_v33, %v3938_v45  ;;  %v4371_v33 = vld [vmem:[%s8441_s15 + $0x8] sm:$0x7f]  ;;  %v3961_v25 = vld [vmem:[%s8440_s14 + $0x2c0] sm:$0xff] }
 0xc18   : > { %4412 = vmatmul.f32.vlgmr.msrb.gmra.mxu3 %v4371_v33 }
 0xc1c   : > { %v4205_v4 = vpop.f32.mrf.mxu1 }
 0xc1d   : > { %v4206_v56 = vadd.f32 %v4205_v4, %v3946_v11  ;;  %v4341_v4 = vmax.f32 %v4188_v31, 0.0  ;;  %v3956_v31 = vld [vmem:[%s8440_s14 + $0x298] sm:$0xff] }
 0xc1f   : > { %4252 = vmatmul.f32.gmra.mxu1 %v3866_v30  ;;  %v4347_v29 = vmax.f32 %v4206_v56, 0.0  ;;  %v4340_v30 = vmax.f32 %v4185_v50, 0.0  ;;  %v3962_v56 = vld [vmem:[%s8440_s14 + $0x2c8] sm:$0xff]  ;;  %v3955_v50 = vld [vmem:[%s8440_s14 + $0x290] sm:$0xff] }
 0xc24   : > { %v4208_v57 = vpop.f32.mrf.mxu1 }
 0xc25   : > { %v4209_v59 = vadd.f32 %v4208_v57, %v3947_v2  ;;  %v4339_v57 = vmax.f32 %v4182_v62, 0.0  ;;  %v3954_v62 = vld [vmem:[%s8440_s14 + $0x288] sm:$0xff] }
 0xc27   : > { %4255 = vmatmul.f32.gmra.mxu1 %v3867_v61  ;;  %v4348_v15 = vmax.f32 %v4209_v59, 0.0  ;;  %v3963_v59 = vld [vmem:[%s8440_s14 + $0x2d0] sm:$0xff] }
 0xc2c   : > { %v4211_v37 = vpop.f32.mrf.mxu1 }
 0xc2d   : > { %v4212_v49 = vadd.f32 %v4211_v37, %v3948_v8  ;;  %v3965_v8 = vld [vmem:[%s8440_s14 + $0x2e0] sm:$0xff] }
 0xc2f   : > { %4258 = vmatmul.f32.gmra.mxu1 %v3868_v43  ;;  %v4349_v5 = vmax.f32 %v4212_v49, 0.0  ;;  %v3964_v49 = vld [vmem:[%s8440_s14 + $0x2d8] sm:$0xff] }
 0xc34   : > { %v4214_v27 = vpop.f32.mrf.mxu1 }
 0xc35   : > { %v4215_v21 = vadd.f32 %v4214_v27, %v3949_v52 }
 0xc37   : > { %4261 = vmatmul.f32.gmra.mxu1 %v3869_v36  ;;  %v4350_v16 = vmax.f32 %v4215_v21, 0.0 }
 0xc3c   : > { %v4217_v55 = vpop.f32.mrf.mxu1 }
 0xc3d   : > { %v4218_v60 = vadd.f32 %v4217_v55, %v3950_v32 }
 0xc3f   : > { %4264 = vmatmul.f32.gmra.mxu1 %v3870_v34  ;;  %v4351_v40 = vmax.f32 %v4218_v60, 0.0  ;;  %v4373_v34 = vld [vmem:[%s8441_s15 + $0x18] sm:$0x7f]  ;;  %v3966_v60 = vld [vmem:[%s8440_s14 + $0x2e8] sm:$0xff] }
 0xc40   : > { %4452 = vmatmul.f32.vlgmr.msra.gmra.mxu3 %v4373_v34 }
 0xc44   : > { %v4220_v7 = vpop.f32.mrf.mxu1 }
 0xc45   : > { %v4221_v22 = vadd.f32 %v4220_v7, %v3951_v51  ;;  %v4372_v7 = vld [vmem:[%s8441_s15 + $0x10] sm:$0x7f]  ;;  %v4271_v51 = vpop.f32.mrf.mxu2 }
 0xc46   : > { %4432 = vmatmul.f32.vlgmr.msra.gmra.mxu0 %v4372_v7 }
 0xc47   : > { %4267 = vmatmul.f32.gmra.mxu1 %v3871_v26  ;;  %v4352_v28 = vmax.f32 %v4221_v22, 0.0  ;;  %v3968_v26 = vld [vmem:[%s8440_s14 + $0x2f8] sm:$0xff]  ;;  %v4374_v22 = vld [vmem:[%s8441_s15 + $0x20] sm:$0x7f] }
 0xc48   : > { %v4272_v32 = vadd.f32 %v4271_v51, %v3968_v26 }
 0xc4c   : > { %v4223_v24 = vpop.f32.mrf.mxu1 }
 0xc4d   : > { %v4224_v44 = vadd.f32 %v4223_v24, %v3952_v35  ;;  %v4369_v24 = vmax.f32 %v4272_v32, 0.0 }
 0xc4f   : > { %v4353_v53 = vmax.f32 %v4224_v44, 0.0  ;;  %4476 = vmatpush.msrb.mxu3 %v4369_v24 }
 0xc51   : > { %4456 = vmatpush.msrb.mxu0 %v4353_v53  ;;  %v3967_v53 = vld [vmem:[%s8440_s14 + $0x2f0] sm:$0xff] }
 0xc53   : > { %4457 = vmatpush.msrb.mxu0 %v4352_v28 }
 0xc54   : > { %v8304_v58 = vpop.f32.mrf.mxu1 }
 0xc55   : > { %4458 = vmatpush.msrb.mxu0 %v4351_v40 }
 0xc57   : > { %4459 = vmatpush.msrb.mxu0 %v4350_v16 }
 0xc59   : > { %4460 = vmatpush.msrb.mxu0 %v4349_v5 }
 0xc5b   : > { %4461 = vmatpush.msrb.mxu0 %v4348_v15 }
 0xc5c   : > { %v8318_v17 = vpop.f32.mrf.mxu1 }
 0xc5d   : > { %4462 = vmatpush.msrb.mxu0 %v4347_v29 }
 0xc5f   : > { %4463 = vmatpush.msrb.mxu0 %v4346_v54 }
 0xc61   : > { %4464 = vmatpush.msrb.mxu0 %v4345_v42 }
 0xc63   : > { %4465 = vmatpush.msrb.mxu0 %v4344_v41 }
 0xc64   : > { %v8336_v20 = vpop.f32.mrf.mxu1 }
 0xc65   : > { %4466 = vmatpush.msrb.mxu0 %v4343_v18 }
 0xc67   : > { %4467 = vmatpush.msrb.mxu0 %v4342_v10 }
 0xc69   : > { %4468 = vmatpush.msrb.mxu0 %v4341_v4  ;;  %v4233_v4 = vadd.f32 %v8336_v20, %v3955_v50  ;;  %v4375_v20 = vld [vmem:[%s8441_s15 + $0x28] sm:$0x7f] }
 0xc6b   : > { %4469 = vmatpush.msrb.mxu0 %v4340_v30  ;;  %v3953_v30 = vld [vmem:[%s8440_s14 + $0x280] sm:$0xff] }
 0xc6c   : > { %v8344_v61 = vpop.f32.mrf.mxu1 }
 0xc6d   : > { %4470 = vmatpush.msrb.mxu0 %v4339_v57  ;;  %v4236_v10 = vadd.f32 %v8344_v61, %v3956_v31  ;;  %v4230_v57 = vadd.f32 %v8318_v17, %v3954_v62  ;;  %v4227_v61 = vadd.f32 %v8304_v58, %v3953_v30 }
 0xc6f   : > { %4471 = vmatpush.msrb.mxu0 %v4338_v1  ;;  %v4357_v1 = vmax.f32 %v4236_v10, 0.0 }
 0xc70   : > { %4472 = vmatmul.f32.vlgmr.msrb.gmra.mxu0 %v4374_v22 }
 0xc74   : > { %v4238_v12 = vpop.f32.mrf.mxu1 }
 0xc75   : > { %v4239_v18 = vadd.f32 %v4238_v12, %v3957_v23  ;;  %v4356_v12 = vmax.f32 %v4233_v4, 0.0 }
 0xc77   : > { %v4358_v0 = vmax.f32 %v4239_v18, 0.0 }
 0xc7c   : > { %v4241_v37 = vpop.f32.mrf.mxu1 }
 0xc7d   : > { %v4242_v41 = vadd.f32 %v4241_v37, %v3958_v19  ;;  %v4355_v37 = vmax.f32 %v4230_v57, 0.0 }
 0xc7f   : > { %v4359_v6 = vmax.f32 %v4242_v41, 0.0 }
 0xc84   : > { %v4244_v43 = vpop.f32.mrf.mxu1 }
 0xc85   : > { %v4245_v42 = vadd.f32 %v4244_v43, %v3959_v47  ;;  %v4354_v43 = vmax.f32 %v4227_v61, 0.0 }
 0xc87   : > { %v4360_v45 = vmax.f32 %v4245_v42, 0.0 }
 0xc8c   : > { %v4247_v27 = vpop.f32.mrf.mxu1 }
 0xc8d   : > { %v4248_v54 = vadd.f32 %v4247_v27, %v3960_v63  ;;  %v4393_v27 = vpop.f32.mrf.mxu3 }
 0xc8f   : > { %v4361_v38 = vmax.f32 %v4248_v54, 0.0 }
 0xc94   : > { %v4250_v36 = vpop.f32.mrf.mxu1 }
 0xc95   : > { %v4251_v29 = vadd.f32 %v4250_v36, %v3961_v25 }
 0xc97   : > { %v4362_v46 = vmax.f32 %v4251_v29, 0.0 }
 0xc9b   : > { %v4413_v36 = vpop.f32.mrf.mxu3 }
 0xc9c   : > { %v4253_v55 = vpop.f32.mrf.mxu1 }
 0xc9d   : > { %v4254_v15 = vadd.f32 %v4253_v55, %v3962_v56  ;;  %v4414_v55 = vadd.f32 %v4413_v36, %v4393_v27 }
 0xc9f   : > { %v4363_v3 = vmax.f32 %v4254_v15, 0.0 }
 0xca4   : > { %v4256_v13 = vpop.f32.mrf.mxu1 }
 0xca5   : > { %v4257_v5 = vadd.f32 %v4256_v13, %v3963_v59 }
 0xca7   : > { %v4364_v9 = vmax.f32 %v4257_v5, 0.0 }
 0xcac   : > { %v4259_v35 = vpop.f32.mrf.mxu1 }
 0xcad   : > { %v4260_v16 = vadd.f32 %v4259_v35, %v3964_v49 }
 0xcaf   : > { %v4365_v39 = vmax.f32 %v4260_v16, 0.0 }
 0xcb4   : > { %v4262_v44 = vpop.f32.mrf.mxu1 }
 0xcb5   : > { %v4263_v40 = vadd.f32 %v4262_v44, %v3965_v8 }
 0xcb7   : > { %v4366_v48 = vmax.f32 %v4263_v40, 0.0 }
 0xcbc   : > { %v4265_v52 = vpop.f32.mrf.mxu1 }
 0xcbd   : > { %v4266_v28 = vadd.f32 %v4265_v52, %v3966_v60 }
 0xcbf   : > { %v4367_v14 = vmax.f32 %v4266_v28, 0.0 }
 0xcc3   : > { %v4433_v17 = vpop.f32.mrf.mxu0  ;;  %v4453_v13 = vpop.f32.mrf.mxu3 }
 0xcc4   : > { %v4268_v21 = vpop.f32.mrf.mxu1  ;;  %v4434_v33 = vadd.f32 %v4433_v17, %v4414_v55 }
 0xcc5   : > { %v4269_v2 = vadd.f32 %v4268_v21, %v3967_v53 }
 0xcc6   : > { %v4454_v58 = vadd.f32 %v4453_v13, %v4434_v33 }
 0xcc7   : > { %v4368_v11 = vmax.f32 %v4269_v2, 0.0 }
 0xcc9   : > { %4477 = vmatpush.msrb.mxu3 %v4368_v11 }
 0xccb   : > { %4478 = vmatpush.msrb.mxu3 %v4367_v14 }
 0xccd   : > { %4479 = vmatpush.msrb.mxu3 %v4366_v48 }
 0xccf   : > { %4480 = vmatpush.msrb.mxu3 %v4365_v39 }
 0xcd1   : > { %4481 = vmatpush.msrb.mxu3 %v4364_v9 }
 0xcd3   : > { %4482 = vmatpush.msrb.mxu3 %v4363_v3 }
 0xcd5   : > { %4483 = vmatpush.msrb.mxu3 %v4362_v46 }
 0xcd7   : > { %4484 = vmatpush.msrb.mxu3 %v4361_v38 }
 0xcd9   : > { %4485 = vmatpush.msrb.mxu3 %v4360_v45 }
 0xcdb   : > { %4486 = vmatpush.msrb.mxu3 %v4359_v6 }
 0xcdd   : > { %4487 = vmatpush.msrb.mxu3 %v4358_v0 }
 0xcdf   : > { %4488 = vmatpush.msrb.mxu3 %v4357_v1 }
 0xce1   : > { %4489 = vmatpush.msrb.mxu3 %v4356_v12 }
 0xce3   : > { %4490 = vmatpush.msrb.mxu3 %v4355_v37 }
 0xce5   : > { %4491 = vmatpush.msrb.mxu3 %v4354_v43 }
 0xce6   : > { %4492 = vmatmul.f32.vlgmr.msrb.gmra.mxu3 %v4375_v20 }
 0xced   : > { %v4473_v34 = vpop.f32.mrf.mxu0 }
 0xcee   : > { %v4474_v7 = vadd.f32 %v4473_v34, %v4454_v58 }
 0xd69   : > { %v4493_v26 = vpop.f32.mrf.mxu3 }
 0xd6a   : > { %v4494_v51 = vadd.f32 %v4493_v26, %v4474_v7 }
 0xd6c   : > { %4497 = vst.msk [vmem:[%s621_s29] sm:$0x7f] %vm4496_vm5, %v4494_v51 }
 0xd6d PF: > { %s8470_s26 = sld [smem:[#allocation4_spill]] }
 0xd6e   : > { %s8471_s27 = sld [smem:[#allocation3_spill]] }
 0xd6f   : > { %s8472_s28 = sld [smem:[#allocation5_spill]] }
 0xd73   : > { %s29_s29 = sadd.s32 1, %s8470_s26  }
 0xd74   : > { %p26_p5 = scmp.ge.s32.totalorder %s29_s29, 4  }
 0xd76   :  { %28 = sbr.rel (!%p26_p5) target bundleno = 4 (0x4), region = 146 }

</bundles_post_ra>
